<compile_context>
chip_gen: v7x
topology: tpu7x:2x2x1
jax: 0.10.0
libtpu: 0.0.40
codegen_flags: <defaults>
</compile_context>

<pallas_src>
from math import sqrt

import jax
import jax.numpy as jnp
import numpy as np
from jax.experimental import pallas as pl
from jax.experimental.pallas import tpu as pltpu

IN_CHANNELS = 4
NUM_CLASSES = 10
H = W = 14                      # AvgPool2d(5, 3): 14 -> 4, and 128*4*4 = 2048 = fc1.in_features
POOL_K, POOL_S = 5, 3
POOL_OUT = 4
POOL_PIX = POOL_OUT * POOL_OUT  # 16
CONV_CH = 128
FEAT = CONV_CH * POOL_PIX       # 2048
HID = 1024


def _select_tiling():
    """(NJ, KC): HID halves (one per TensorCore) and #w1 row-blocks per core."""
    try:
        kind = jax.devices()[0].device_kind.lower()
    except Exception:
        kind = ""
    if "v7" in kind or "7x" in kind:
        return 2, 4             # v7x: 2 TCs; 512 KiB bf16 w1 blocks -> small exposed prologue DMA
    return 1, 2                 # v5e / v6e: single TC; 2 MiB bf16 w1 blocks, 2 reduction steps


NJ, KC = _select_tiling()
HID_BLK = HID // NJ             # 1024 or 512
BLK_ROWS = FEAT // KC           # 1024 or 512 (w1 rows == feats lanes consumed per step)


def _pooling_matrix(h, w):
    """(POOL_PIX, h*w) matrix whose rows average one 5x5 / stride-3 window."""
    pm = np.zeros((POOL_PIX, h * w), np.float32)
    for oh in range(POOL_OUT):
        for ow in range(POOL_OUT):
            for kh in range(POOL_K):
                for kw in range(POOL_K):
                    pm[oh * POOL_OUT + ow,
                       (POOL_S * oh + kh) * w + (POOL_S * ow + kw)] = 1.0 / (POOL_K * POOL_K)
    return pm


def prepare_params(params):
    """One-time (off the hot path) repack of the PyTorch-layout weights for the kernel."""
    wc, bc, w1, b1, w2, b2 = (params[k] for k in ("wc", "bc", "w1", "b1", "w2", "b2"))
    c = wc.shape[0]
    hw = H * W
    pm = _pooling_matrix(H, W)                                         # (16, hw), numpy static
    # rp[cc*hw+pix, p*c+cc'] = pm[p,pix] * delta(cc,cc')  ->  x_flat @ rp = pooled[i, p*c+cc]
    rp = np.einsum("ph,cd->chpd", pm, np.eye(c, dtype=np.float32)).reshape(c * hw, POOL_PIX * c)
    # wconv[p*c+cc, k*16+p'] = wc[cc,k] * delta(p,p'): pooled @ wconv is the 1x1 conv, laid out
    # directly in PyTorch's NCHW-flatten order (feature index = k*POOL_PIX + p).
    eye_p = jnp.eye(POOL_PIX, dtype=jnp.float32)
    wconv = jnp.einsum("ck,pq->pckq", wc, eye_p).reshape(POOL_PIX * c, FEAT)
    bc_flat = jnp.repeat(bc, POOL_PIX, axis=1)                         # (1, FEAT), flatten order
    return dict(rp=jnp.asarray(rp), wconv=wconv, bc_flat=bc_flat,
                w1=w1.astype(jnp.bfloat16),      # bf16 stream: halves the dominant HBM traffic
                b1=b1, w2=w2, b2=b2)


def _incept_aux_kernel(x_ref, rp_ref, wcv_ref, bcf_ref, w1_ref, b1_ref, w2_ref,
                       o_ref, feats_ref, acc_ref):
    kc = pl.program_id(1)       # reduction step over w1 row-blocks ("arbitrary", last axis)

    @pl.when(kc == 0)
    def _init():
        # AvgPool + 1x1 conv + ReLU as two small matmuls; output already in flatten order.
        pooled = jnp.dot(x_ref[...], rp_ref[...], preferred_element_type=jnp.float32)   # (n, 16*c)
        conv = jnp.dot(pooled, wcv_ref[...], preferred_element_type=jnp.float32)        # (n, FEAT)
        feats_ref[...] = jnp.maximum(conv + bcf_ref[...], 0.0)
        acc_ref[...] = jnp.zeros_like(acc_ref)

    # fc1 partial: one wide-K bf16 matmul per step against a contiguous w1 row-block.
    start = pl.multiple_of(kc * BLK_ROWS, BLK_ROWS)
    lhs = feats_ref[:, pl.ds(start, BLK_ROWS)].astype(jnp.bfloat16)                     # (n, BLK_ROWS)
    acc_ref[...] += jnp.dot(lhs, w1_ref[...], preferred_element_type=jnp.float32)

    @pl.when(kc == pl.num_programs(1) - 1)
    def _finalize():
        hdn = jnp.maximum(acc_ref[...] + b1_ref[...], 0.0)
        # TODO(synk): nn.Dropout(p=0.7) is identity in eval mode; a training-mode path would
        # mask/scale hdn via pltpu.prng_seed / pltpu.prng_random_bits.
        o_ref[0] = jnp.dot(hdn, w2_ref[...], preferred_element_type=jnp.float32)


@jax.jit
def incept_aux_forward(x_nchw, prepped):
    n, c, h, w = x_nchw.shape
    assert (c, h, w) == (IN_CHANNELS, H, W)
    chw = c * h * w
    pc = POOL_PIX * c
    x_flat = x_nchw.reshape(n, chw)              # lane-dense (n, 784) input

    partials = pl.pallas_call(
        _incept_aux_kernel,
        out_shape=jax.ShapeDtypeStruct((NJ, n, NUM_CLASSES), jnp.float32),
        grid_spec=pltpu.PrefetchScalarGridSpec(
            num_scalar_prefetch=0,
            grid=(NJ, KC),
            in_specs=[
                pl.BlockSpec((n, chw), lambda j, k: (0, 0)),                  # x (flattened NCHW)
                pl.BlockSpec((chw, pc), lambda j, k: (0, 0)),                 # pooling gather matrix
                pl.BlockSpec((pc, FEAT), lambda j, k: (0, 0)),                # block-diag 1x1-conv weight
                pl.BlockSpec((1, FEAT), lambda j, k: (0, 0)),                 # conv bias (flatten order)
                pl.BlockSpec((BLK_ROWS, HID_BLK), lambda j, k: (k, j)),       # w1 (bf16), streamed
                pl.BlockSpec((1, HID_BLK), lambda j, k: (0, j)),              # b1
                pl.BlockSpec((HID_BLK, NUM_CLASSES), lambda j, k: (j, 0)),    # w2
            ],
            out_specs=pl.BlockSpec((1, n, NUM_CLASSES), lambda j, k: (j, 0, 0)),
            scratch_shapes=[
                pltpu.VMEM((n, FEAT), jnp.float32),      # pool+conv+ReLU activations (flatten order)
                pltpu.VMEM((n, HID_BLK), jnp.float32),   # fc1 accumulator
            ],
        ),
        compiler_params=pltpu.CompilerParams(
            dimension_semantics=("parallel", "arbitrary"),
            vmem_limit_bytes=32 << 20,   # actual use is a few MiB; safe on v7x's 64 MiB
        ),
    )(x_flat, prepped["rp"], prepped["wconv"], prepped["bc_flat"],
      prepped["w1"], prepped["b1"], prepped["w2"])

    # Sum the per-TensorCore HID-half partials; fc2 bias added once, outside the kernel.
    return jnp.sum(partials, axis=0) + prepped["b2"]


def reference_forward(x_nchw, params):
    """Pure-JAX replica of the PyTorch forward (eval mode)."""
    wc, bc, w1, b1, w2, b2 = (params[k] for k in ("wc", "bc", "w1", "b1", "w2", "b2"))
    hi = jax.lax.Precision.HIGHEST
    pooled = jax.lax.reduce_window(x_nchw, 0.0, jax.lax.add,
                                   (1, 1, POOL_K, POOL_K), (1, 1, POOL_S, POOL_S),
                                   "VALID") / float(POOL_K * POOL_K)
    conv = jnp.einsum("nchw,ck->nkhw", pooled, wc, precision=hi) + bc.reshape(1, CONV_CH, 1, 1)
    conv = jnp.maximum(conv, 0.0)
    f = conv.reshape(x_nchw.shape[0], -1)        # NCHW flatten (channel-major)
    hdn = jnp.maximum(jnp.dot(f, w1, precision=hi) + b1, 0.0)
    return jnp.dot(hdn, w2, precision=hi) + b2


if __name__ == "__main__":
    key = jax.random.PRNGKey(0)
    ks = jax.random.split(key, 7)
    n = 2
    x = jax.random.normal(ks[0], (n, IN_CHANNELS, H, W), jnp.float32)

    params = dict(
        wc=jax.random.normal(ks[1], (IN_CHANNELS, CONV_CH), jnp.float32) / sqrt(IN_CHANNELS),
        bc=jax.random.normal(ks[2], (1, CONV_CH), jnp.float32) * 0.1,
        w1=jax.random.normal(ks[3], (FEAT, HID), jnp.float32) / sqrt(FEAT),
        b1=jax.random.normal(ks[4], (1, HID), jnp.float32) * 0.1,
        w2=jax.random.normal(ks[5], (HID, NUM_CLASSES), jnp.float32) / sqrt(HID),
        b2=jax.random.normal(ks[6], (1, NUM_CLASSES), jnp.float32) * 0.1,
    )

    prepped = prepare_params(params)             # one-time weight repack (bf16 w1, conv matrices)
    out = incept_aux_forward(x, prepped)
    jax.block_until_ready(out)
    assert out.shape == (n, NUM_CLASSES)

    ref = reference_forward(x, params)
    np.testing.assert_allclose(np.asarray(out), np.asarray(ref), rtol=2e-2, atol=2e-2)
    print("KERNEL_OK")
</pallas_src>

<mosaic_0001>
module attributes {stable_mosaic.version = 11 : i64} {
  func.func @_incept_aux_kernel(%arg0: i32, %arg1: i32, %arg2: memref<2x784xf32, #tpu.memory_space<vmem>>, %arg3: memref<784x64xf32, #tpu.memory_space<vmem>>, %arg4: memref<64x2048xf32, #tpu.memory_space<vmem>>, %arg5: memref<1x2048xf32, #tpu.memory_space<vmem>>, %arg6: memref<1024x1024xbf16, #tpu.memory_space<vmem>>, %arg7: memref<1x1024xf32, #tpu.memory_space<vmem>>, %arg8: memref<1024x10xf32, #tpu.memory_space<vmem>>, %arg9: memref<1x2x10xf32, #tpu.memory_space<vmem>>, %arg10: memref<2x2048xf32, #tpu.memory_space<vmem>>, %arg11: memref<2x1024xf32, #tpu.memory_space<vmem>>) attributes {dimension_semantics = [#tpu.dimension_semantics<parallel>, #tpu.dimension_semantics<arbitrary>], iteration_bounds = array<i64: 1, 2>, scalar_prefetch = 0 : i64, scratch_operands = 2 : i64, tpu.core_type = #tpu.core_type<tc>, window_params = [{pipeline_mode = #tpu.pipeline_mode<synchronous>, transform_indices = @transform_0, window_bounds = array<i64: 2, 784>}, {pipeline_mode = #tpu.pipeline_mode<synchronous>, transform_indices = @transform_1, window_bounds = array<i64: 784, 64>}, {pipeline_mode = #tpu.pipeline_mode<synchronous>, transform_indices = @transform_2, window_bounds = array<i64: 64, 2048>}, {pipeline_mode = #tpu.pipeline_mode<synchronous>, transform_indices = @transform_3, window_bounds = array<i64: 1, 2048>}, {transform_indices = @transform_4, window_bounds = array<i64: 1024, 1024>}, {transform_indices = @transform_5, window_bounds = array<i64: 1, 1024>}, {transform_indices = @transform_6, window_bounds = array<i64: 1024, 10>}, {transform_indices = @transform_7, window_bounds = array<i64: 1, 2, 10>}]} {
    %c0_i32 = arith.constant 0 : i32
    %0 = arith.cmpi eq, %arg1, %c0_i32 : i32
    %1 = arith.extui %0 : i1 to i32
    %c0_i32_0 = arith.constant 0 : i32
    %2 = arith.cmpi ne, %1, %c0_i32_0 : i32
    scf.if %2 {
      %c0_8 = arith.constant 0 : index
      %c0_9 = arith.constant 0 : index
      %16 = vector.load %arg2[%c0_8, %c0_9] : memref<2x784xf32, #tpu.memory_space<vmem>>, vector<2x784xf32>
      %c0_10 = arith.constant 0 : index
      %c0_11 = arith.constant 0 : index
      %17 = vector.load %arg3[%c0_10, %c0_11] : memref<784x64xf32, #tpu.memory_space<vmem>>, vector<784x64xf32>
      %cst_12 = arith.constant dense<0.000000e+00> : vector<2x64xf32>
      %18 = tpu.matmul %16, %17, %cst_12 {dimension_numbers = #tpu.dot_dimension_numbers<[1], [0], [0], [1], [0, 0, 1, 1], [], []>} : vector<2x784xf32>, vector<784x64xf32>, vector<2x64xf32> -> vector<2x64xf32>
      %c0_13 = arith.constant 0 : index
      %c0_14 = arith.constant 0 : index
      %19 = vector.load %arg4[%c0_13, %c0_14] : memref<64x2048xf32, #tpu.memory_space<vmem>>, vector<64x2048xf32>
      %cst_15 = arith.constant dense<0.000000e+00> : vector<2x2048xf32>
      %20 = tpu.matmul %18, %19, %cst_15 {dimension_numbers = #tpu.dot_dimension_numbers<[1], [0], [0], [1], [0, 0, 1, 1], [], []>} : vector<2x64xf32>, vector<64x2048xf32>, vector<2x2048xf32> -> vector<2x2048xf32>
      %c0_16 = arith.constant 0 : index
      %c0_17 = arith.constant 0 : index
      %21 = vector.load %arg5[%c0_16, %c0_17] : memref<1x2048xf32, #tpu.memory_space<vmem>>, vector<1x2048xf32>
      %22 = vector.broadcast %21 : vector<1x2048xf32> to vector<2x2048xf32>
      %23 = arith.addf %20, %22 : vector<2x2048xf32>
      %cst_18 = arith.constant 0.000000e+00 : f32
      %24 = vector.broadcast %cst_18 : f32 to vector<2x2048xf32>
      %25 = arith.maximumf %23, %24 : vector<2x2048xf32>
      %c0_19 = arith.constant 0 : index
      %c0_20 = arith.constant 0 : index
      %26 = vector.load %arg10[%c0_19, %c0_20] : memref<2x2048xf32, #tpu.memory_space<vmem>>, vector<2x2048xf32>
      tpu.vector_store %arg10[%c0_19, %c0_20], %25 {strides = array<i32>} : memref<2x2048xf32, #tpu.memory_space<vmem>>, vector<2x2048xf32>,
      %cst_21 = arith.constant 0.000000e+00 : f32
      %27 = vector.broadcast %cst_21 : f32 to vector<2x1024xf32>
      %c0_22 = arith.constant 0 : index
      %c0_23 = arith.constant 0 : index
      %28 = vector.load %arg11[%c0_22, %c0_23] : memref<2x1024xf32, #tpu.memory_space<vmem>>, vector<2x1024xf32>
      tpu.vector_store %arg11[%c0_22, %c0_23], %27 {strides = array<i32>} : memref<2x1024xf32, #tpu.memory_space<vmem>>, vector<2x1024xf32>,
    } else {
    }
    %c1024_i32 = arith.constant 1024 : i32
    %3 = arith.muli %arg1, %c1024_i32 : i32
    %4 = tpu.assume_multiple %3, 1024 : i32
    %c0 = arith.constant 0 : index
    %5 = arith.index_cast %4 : i32 to index
    %6 = vector.load %arg10[%c0, %5] : memref<2x2048xf32, #tpu.memory_space<vmem>>, vector<2x1024xf32>
    %7 = arith.truncf %6 : vector<2x1024xf32> to vector<2x1024xbf16>
    %c0_1 = arith.constant 0 : index
    %c0_2 = arith.constant 0 : index
    %8 = vector.load %arg11[%c0_1, %c0_2] : memref<2x1024xf32, #tpu.memory_space<vmem>>, vector<2x1024xf32>
    %c0_3 = arith.constant 0 : index
    %c0_4 = arith.constant 0 : index
    %9 = vector.load %arg6[%c0_3, %c0_4] : memref<1024x1024xbf16, #tpu.memory_space<vmem>>, vector<1024x1024xbf16>
    %cst = arith.constant dense<0.000000e+00> : vector<2x1024xf32>
    %10 = tpu.matmul %7, %9, %cst {dimension_numbers = #tpu.dot_dimension_numbers<[1], [0], [0], [1], [0, 0, 1, 1], [], []>} : vector<2x1024xbf16>, vector<1024x1024xbf16>, vector<2x1024xf32> -> vector<2x1024xf32>
    %11 = arith.addf %8, %10 : vector<2x1024xf32>
    %c0_5 = arith.constant 0 : index
    %c0_6 = arith.constant 0 : index
    %12 = vector.load %arg11[%c0_5, %c0_6] : memref<2x1024xf32, #tpu.memory_space<vmem>>, vector<2x1024xf32>
    tpu.vector_store %arg11[%c0_5, %c0_6], %11 {strides = array<i32>} : memref<2x1024xf32, #tpu.memory_space<vmem>>, vector<2x1024xf32>,
    %c1_i32 = arith.constant 1 : i32
    %13 = arith.cmpi eq, %arg1, %c1_i32 : i32
    %14 = arith.extui %13 : i1 to i32
    %c0_i32_7 = arith.constant 0 : i32
    %15 = arith.cmpi ne, %14, %c0_i32_7 : i32
    scf.if %15 {
      %c0_8 = arith.constant 0 : index
      %c0_9 = arith.constant 0 : index
      %16 = vector.load %arg11[%c0_8, %c0_9] : memref<2x1024xf32, #tpu.memory_space<vmem>>, vector<2x1024xf32>
      %c0_10 = arith.constant 0 : index
      %c0_11 = arith.constant 0 : index
      %17 = vector.load %arg7[%c0_10, %c0_11] : memref<1x1024xf32, #tpu.memory_space<vmem>>, vector<1x1024xf32>
      %18 = vector.broadcast %17 : vector<1x1024xf32> to vector<2x1024xf32>
      %19 = arith.addf %16, %18 : vector<2x1024xf32>
      %cst_12 = arith.constant 0.000000e+00 : f32
      %20 = vector.broadcast %cst_12 : f32 to vector<2x1024xf32>
      %21 = arith.maximumf %19, %20 : vector<2x1024xf32>
      %c0_13 = arith.constant 0 : index
      %c0_14 = arith.constant 0 : index
      %22 = vector.load %arg8[%c0_13, %c0_14] : memref<1024x10xf32, #tpu.memory_space<vmem>>, vector<1024x10xf32>
      %cst_15 = arith.constant dense<0.000000e+00> : vector<2x10xf32>
      %23 = tpu.matmul %21, %22, %cst_15 {dimension_numbers = #tpu.dot_dimension_numbers<[1], [0], [0], [1], [0, 0, 1, 1], [], []>} : vector<2x1024xf32>, vector<1024x10xf32>, vector<2x10xf32> -> vector<2x10xf32>
      %c0_16 = arith.constant 0 : index
      %c0_17 = arith.constant 0 : index
      %c0_18 = arith.constant 0 : index
      %24 = vector.load %arg9[%c0_16, %c0_17, %c0_18] : memref<1x2x10xf32, #tpu.memory_space<vmem>>, vector<1x2x10xf32>
      %25 = vector.shape_cast %24 : vector<1x2x10xf32> to vector<2x10xf32>
      %26 = vector.shape_cast %23 : vector<2x10xf32> to vector<1x2x10xf32>
      tpu.vector_store %arg9[%c0_16, %c0_17, %c0_18], %26 {strides = array<i32>} : memref<1x2x10xf32, #tpu.memory_space<vmem>>, vector<1x2x10xf32>,
    } else {
    }
    return
  }
  func.func @transform_0(%arg0: i32, %arg1: i32) -> (i32, i32) {
    %c0_i32 = arith.constant 0 : i32
    %c0_i32_0 = arith.constant 0 : i32
    %c0_i32_1 = arith.constant 0 : i32
    return %c0_i32, %c0_i32_0 : i32, i32
  }
  func.func @transform_1(%arg0: i32, %arg1: i32) -> (i32, i32) {
    %c0_i32 = arith.constant 0 : i32
    %c0_i32_0 = arith.constant 0 : i32
    %c0_i32_1 = arith.constant 0 : i32
    return %c0_i32, %c0_i32_0 : i32, i32
  }
  func.func @transform_2(%arg0: i32, %arg1: i32) -> (i32, i32) {
    %c0_i32 = arith.constant 0 : i32
    %c0_i32_0 = arith.constant 0 : i32
    %c0_i32_1 = arith.constant 0 : i32
    return %c0_i32, %c0_i32_0 : i32, i32
  }
  func.func @transform_3(%arg0: i32, %arg1: i32) -> (i32, i32) {
    %c0_i32 = arith.constant 0 : i32
    %c0_i32_0 = arith.constant 0 : i32
    %c0_i32_1 = arith.constant 0 : i32
    return %c0_i32, %c0_i32_0 : i32, i32
  }
  func.func @transform_4(%arg0: i32, %arg1: i32) -> (i32, i32) {
    %c0_i32 = arith.constant 0 : i32
    return %arg1, %arg0 : i32, i32
  }
  func.func @transform_5(%arg0: i32, %arg1: i32) -> (i32, i32) {
    %c0_i32 = arith.constant 0 : i32
    %c0_i32_0 = arith.constant 0 : i32
    return %c0_i32, %arg0 : i32, i32
  }
  func.func @transform_6(%arg0: i32, %arg1: i32) -> (i32, i32) {
    %c0_i32 = arith.constant 0 : i32
    %c0_i32_0 = arith.constant 0 : i32
    return %arg0, %c0_i32 : i32, i32
  }
  func.func @transform_7(%arg0: i32, %arg1: i32) -> (i32, i32, i32) {
    %c0_i32 = arith.constant 0 : i32
    %c0_i32_0 = arith.constant 0 : i32
    %c0_i32_1 = arith.constant 0 : i32
    return %arg0, %c0_i32, %c0_i32_0 : i32, i32, i32
  }
}

</mosaic_0001>

<bundles_post_ra>
// kernel: incept_aux_forward.1
= control target key start
LH: loop header
LB: loop body
LE: loop exit
PB: predicated region body
PF: predicated region fallthrough
CT: control target
= control target key end

     0   :  { %s9332_s0 = inlined_call_operand.vmem [shape: f32[2,784], index: 0, kind: input, shape index: {}]   ;;  %s9333_s1 = inlined_call_operand.vmem [shape: f32[784,64], index: 1, kind: input, shape index: {}]   ;;  %s9334_s2 = inlined_call_operand.hbm [shape: f32[64,2048], index: 2, kind: input, shape index: {}]   ;;  %s9335_s3 = inlined_call_operand.hbm [shape: f32[1,2048], index: 3, kind: input, shape index: {}]   ;;  %s9336_s4 = inlined_call_operand.hbm [shape: bf16[2048,1024], index: 4, kind: input, shape index: {}]   ;;  %s9337_s5 = inlined_call_operand.hbm [shape: f32[1,1024], index: 5, kind: input, shape index: {}]   ;;  %s9338_s6 = inlined_call_operand.vmem [shape: f32[1024,10], index: 6, kind: input, shape index: {}]   ;;  %s9339_s7 = inlined_call_operand.vmem [shape: f32[1,2,10], index: 7, kind: output, shape index: {}]  }
   0x1   :  { %9349 = sst [smem:[#allocation14_spill]] %s9332_s0 }
   0x2   :  { %9350 = sst [smem:[#allocation15_spill]] %s9333_s1 }
   0x3   :  { %9351 = sst [smem:[#allocation16_spill]] %s9338_s6 }
   0x4   :  { %9352 = sst [smem:[#allocation17_spill]] %s9339_s7 }
   0x5   :  { %12 = vsyncpa [#allocation5], 0 }
   0x6   :  { %13 = vsyncpa [#allocation7], 0  ;;  %s7731_s24 = smov 0   ;;  %s7733_s25 = smov 0  }
   0x7   :  { %s7735_s26 = smov 0   ;;  %s7737_s27 = smov 0  }
   0x8   :  { %s7739_s28 = smov 0   ;;  %s7741_s29 = smov 0  }
   0x9 LB: > { %s9345_s30 = sadd.s32 4294967295, %s7676_s29   ;;  %p131_p0 = scmp.ne.s32.totalorder %s7664_s26, %s7660_s25  ;;  %s7676_s29 = sphi %s7741_s29, %s19_s29   ;;  %s7672_s28 = sphi %s7739_s28, %s9372_s28   ;;  %s7668_s27 = sphi %s7737_s27, %s9371_s27   ;;  %s7664_s26 = sphi %s7735_s26, %s9370_s26   ;;  %s7660_s25 = sphi %s7733_s25, %s9369_s25   ;;  %s7656_s24 = sphi %s7731_s24, %s9368_s24  }
   0xa   : > { %p132_p1 = scmp.eq.s32.totalorder %s7676_s29, 0  ;;  %p137_p2 = scmp.ne.s32.totalorder %s7660_s25, %s7656_s24 }
   0xb   : > { %p7766_p3 = scmp.eq.s32.totalorder %s9345_s30, 0  ;;  %p6198_p4 = scmp.ge.s32.totalorder %s7676_s29, 1 }
   0xc   : > { %p133_p5 = por %p132_p1, %p131_p0  ;;  %p226_p6 = scmp.lt.s32.totalorder %s7676_s29, 3 }
   0xd   : > { %s9353_s8 = scalar_select %p7766_p3, 1, 0 }
   0xe   : > { %p7774_p7 = por %p7766_p3, %p137_p2  ;;  %p7778_p8 = pnand %p6198_p4, %p226_p6 }
   0xf   : > { %s7678_s11 = smov [#allocation4]   ;;  %p7432_p11 = scmp.lt.s32.totalorder %s7676_s29, 2 }
  0x10   : > { %s9354_s9 = scalar_select %p7774_p7, 1, 0 }
  0x11   : > { %s9355_s10 = scalar_select %p7778_p8, 1, 0 }
  0x12   : > { %s244_s12 = sshll.u32 %s7678_s11, 4  ;;  %p7415_p9 = pneg %p7778_p8  ;;  %s245_s12 = int_to_ptr.vmem [resolvable:$true] %s244_s12 }
  0x13   : > { %p7791_p12 = pnand %p7432_p11, %p133_p5  ;;  %s7500_s17 = scalar_lea.hbm %s9334_s2, 16384 }
  0x14   : > { %p7786_p10 = pnand %p7415_p9, %p7766_p3  ;;  %p7501_p13 = scmp.ne.s32.totalorder %s9334_s2, %s7500_s17 }
  0x15   : > { %s9357_s14 = scalar_select %p7791_p12, 1, 0 }
  0x16   : > { %p7803_p0 = pneg %p7786_p10  ;;  %p7507_p4 = scmp.lt.u32.totalorder %s7500_s17, %s9334_s2 }
  0x18   : > { %p7503_p1 = pnand %p7803_p0, %p7501_p13 }
  0x1a   : > { %p7504_p2 = pneg %p7503_p1 }
  0x1c   : > { %p7509_p5 = pnand %p7507_p4, %p7504_p2 }
  0x1e   : > { %7512 = shalt.err (!%p7509_p5)
}
  0x1f   : > { %s7513_s23 = scalar_lea.vmem %s245_s12, 16384  ;;  %p7521_p7 = scmp.lt.s32.totalorder %s245_s12, %s245_s12 }
  0x20   : > { %p7514_p6 = scmp.ne.s32.totalorder %s245_s12, %s7513_s23  ;;  %p7522_p3 = scmp.lt.s32.totalorder %s7513_s23, %s7513_s23 }
  0x22   : > { %p7516_p9 = pnand %p7514_p6, %p7803_p0  ;;  %p7523_p8 = por %p7522_p3, %p7521_p7 }
  0x24   : > { %p7517_p11 = pneg %p7516_p9 }
  0x26   : > { %p7524_p12 = pnand %p7523_p8, %p7517_p11 }
  0x28   : > { %7527 = shalt.err (!%p7524_p12)
}
  0x29   : > { %s7679_s24 = smov 2048   ;;  %s7680_s11 = smov 128  }
  0x2a   : > { %7418 = dma.hbm_to_vmem [thread:$0]  (!%p7786_p10), %s9334_s2, 16384, %s245_s12, [#allocation5], %s7679_s24, %s7679_s24, %s7680_s11  }
  0x2b   : > { %s7681_s17 = smov [#allocation6]   ;;  %s7682_s19 = smov [#allocation9]  }
  0x2c   : > { %s258_s18 = sshll.u32 %s7681_s17, 4  ;;  %s272_s21 = sshll.u32 %s7682_s19, 4  ;;  %s259_s18 = int_to_ptr.vmem [resolvable:$true] %s258_s18  ;;  %s273_s21 = int_to_ptr.vmem [resolvable:$true] %s272_s21 }
  0x2d   : > { %s7528_s23 = scalar_lea.hbm %s9335_s3, 256 }
  0x2e   : > { %p7529_p3 = scmp.ne.s32.totalorder %s9335_s3, %s7528_s23  ;;  %p7535_p12 = scmp.lt.u32.totalorder %s7528_s23, %s9335_s3 }
  0x30   : > { %p7531_p7 = pnand %p7529_p3, %p7803_p0 }
  0x32   : > { %p7532_p8 = pneg %p7531_p7 }
  0x34   : > { %p7537_p13 = pnand %p7535_p12, %p7532_p8 }
  0x36   : > { %7540 = shalt.err (!%p7537_p13)
}
  0x37   : > { %s7541_s12 = scalar_lea.vmem %s259_s18, 256  ;;  %p7549_p5 = scmp.lt.s32.totalorder %s259_s18, %s259_s18 }
  0x38   : > { %p7542_p1 = scmp.ne.s32.totalorder %s259_s18, %s7541_s12  ;;  %p7550_p6 = scmp.lt.s32.totalorder %s7541_s12, %s7541_s12 }
  0x3a   : > { %p7544_p2 = pnand %p7542_p1, %p7803_p0  ;;  %p7551_p9 = por %p7550_p6, %p7549_p5 }
  0x3c   : > { %p7545_p4 = pneg %p7544_p2 }
  0x3e   : > { %p7552_p11 = pnand %p7551_p9, %p7545_p4 }
  0x40   : > { %7555 = shalt.err (!%p7552_p11)
}
  0x41   : > { %7421 = dma.hbm_to_vmem [thread:$0]  (!%p7786_p10), %s9335_s3, 256, %s259_s18, [#allocation7]  }
  0x42   : > { %s7556_s30 = scalar_lea.hbm %s9337_s5, 128 }
  0x43   : > { %p7557_p3 = scmp.ne.s32.totalorder %s9337_s5, %s7556_s30  ;;  %p7563_p12 = scmp.lt.u32.totalorder %s7556_s30, %s9337_s5 }
  0x45   : > { %p7559_p7 = pnand %p7557_p3, %p7803_p0 }
  0x47   : > { %p7560_p8 = pneg %p7559_p7 }
  0x49   : > { %p7565_p13 = pnand %p7563_p12, %p7560_p8 }
  0x4b   : > { %7568 = shalt.err (!%p7565_p13)
}
  0x4c   : > { %s7569_s17 = scalar_lea.vmem %s273_s21, 128  ;;  %p7577_p5 = scmp.lt.s32.totalorder %s273_s21, %s273_s21 }
  0x4d   : > { %p7570_p1 = scmp.ne.s32.totalorder %s273_s21, %s7569_s17  ;;  %p7578_p6 = scmp.lt.s32.totalorder %s7569_s17, %s7569_s17 }
  0x4f   : > { %p7572_p2 = pnand %p7570_p1, %p7803_p0  ;;  %p7579_p9 = por %p7578_p6, %p7577_p5 }
  0x51   : > { %p7573_p4 = pneg %p7572_p2 }
  0x53   : > { %p7580_p11 = pnand %p7579_p9, %p7573_p4 }
  0x55   : > { %7583 = shalt.err (!%p7580_p11)
}
  0x56   : > { %7424 = dma.hbm_to_vmem [thread:$0]  (!%p7786_p10), %s9337_s5, 128, %s273_s21, [#allocation7]  }
  0x57   : > { %s124_s20 = sadd.s32 1, %s7664_s26  ;;  %s28_s22 = sadd.s32 1, %s7672_s28 }
  0x58   : > { %s292_s23 = sand.u32 1, %s7676_s29   ;;  %p29_p0 = scmp.ge.s32.totalorder %s28_s22, 2 }
  0x59   : > { %s294_s12 = sand.u32 1, %s7664_s26   ;;  %s6742_s6 = sshll.u32 %s7672_s28, 16 }
  0x5a   : > { %s9374_s22 = smov (%p29_p0, %s28_s22), 0  ;;  %s6204_s13 = sshll.u32 %s294_s12, 12 }
  0x5b   : > { %s7865_s1 = scalar_lea.hbm %s9336_s4, %s6742_s6  ;;  %s119_s21 = ssub.s32 %s7672_s28, %s9374_s22 }
  0x5c   : > { %p122_p10 = scmp.eq.s32.totalorder %s119_s21, 0  ;;  %s296_s30 = scalar_lea.vmem [#allocation8], %s6204_s13 }
  0x5d   : > { %s306_s24 = sshll.u32 %s296_s30, 4  ;;  %s7874_s15 = scalar_lea.sflag [#allocation5], %s292_s23  ;;  %s7869_s24 = int_to_ptr.vmem [resolvable:$true] %s306_s24 }
  0x5e   : > { %s7872_s11 = scalar_select %p122_p10, %s7664_s26, %s124_s20  }
  0x5f   : > { %s7584_s16 = scalar_lea.hbm %s7865_s1, 65536  ;;  %p9359_p7 = scmp.ne.s32.totalorder %s9357_s14, 0 }
  0x60   : > { %p7585_p3 = scmp.ne.s32.totalorder %s7865_s1, %s7584_s16  ;;  %s7589_s19 = scalar_lea.hbm %s9336_s4, 131072 }
  0x61   : > { %p7586_p8 = pneg %p9359_p7  ;;  %p7590_p1 = scmp.lt.u32.totalorder %s7865_s1, %s9336_s4 }
  0x62   : > { %p7591_p2 = scmp.lt.u32.totalorder %s7589_s19, %s7584_s16  ;;  %p7593_p5 = scmp.lt.u32.totalorder %s7584_s16, %s7865_s1 }
  0x63   : > { %p7587_p12 = pnand %p7586_p8, %p7585_p3 }
  0x64   : > { %p7592_p4 = por %p7591_p2, %p7590_p1 }
  0x65   : > { %p7588_p13 = pneg %p7587_p12 }
  0x66   : > { %p7594_p6 = por %p7593_p5, %p7592_p4 }
  0x68   : > { %p7595_p9 = pnand %p7594_p6, %p7588_p13 }
  0x6a   : > { %7598 = shalt.err (!%p7595_p9)
}
  0x6b   : > { %s7599_s20 = scalar_lea.vmem %s7869_s24, 65536  ;;  %s7683_s23 = smov [#allocation8]  }
  0x6c   : > { %p7600_p11 = scmp.ne.s32.totalorder %s7869_s24, %s7599_s20  ;;  %s7604_s13 = sshll.u32 %s7683_s23, 4  ;;  %s7605_s13 = int_to_ptr.vmem [resolvable:$false] %s7604_s13 }
  0x6d   : > { %s7606_s7 = scalar_lea.vmem %s7605_s13, 131072  ;;  %p7607_p3 = scmp.lt.s32.totalorder %s7869_s24, %s7605_s13 }
  0x6e   : > { %p7602_p0 = pnand %p7600_p11, %p7586_p8  ;;  %p7608_p12 = scmp.lt.s32.totalorder %s7606_s7, %s7599_s20 }
  0x70   : > { %p7603_p10 = pneg %p7602_p0  ;;  %p7609_p1 = por %p7608_p12, %p7607_p3 }
  0x72   : > { %p7610_p2 = pnand %p7609_p1, %p7603_p10 }
  0x74   : > { %7613 = shalt.err (!%p7610_p2)
}
  0x75   : > { %s7684_s0 = smov 512   ;;  %s7685_s21 = smov 32  }
  0x76   : > { %7428 = dma.hbm_to_vmem [thread:$0]  (!%p9359_p7), %s7865_s1, 65536, %s7869_s24, %s7874_s15, %s7684_s0, %s7684_s0, %s7685_s21  }
  0x77   : > { %p9360_p8 = scmp.ne.s32.totalorder %s9355_s10, 0 }
  0x78   : > { %p9361_p13 = scmp.ne.s32.totalorder (!%p9360_p8), %s9353_s8, 0 }
  0x79   : > { %318 = sbr.rel (%p9360_p8) target bundleno = 1725 (0x6bd), region = 48 }
  0x80   : > { %7639 = dma.done.wait (%p9361_p13), [#allocation5], 16384  }
  0x81   : > { %7641 = vsyncadd (%p9361_p13), [#allocation5], 4294950912 }
  0x82   : > { %7643 = dma.done.wait (%p9361_p13), [#allocation7], 256  }
  0x83   : > { %7645 = vsyncadd (%p9361_p13), [#allocation7], 4294967040  ;;  %s9362_s30 = sadd.s32 4294967295, %s7676_s29   ;;  %s330_s1 = sand.u32 1, %s7660_s25  }
  0x84   : > { %s328_s14 = sand.u32 1, %s9362_s30   ;;  %s6211_s10 = sshll.u32 %s330_s1, 12 }
  0x85   : > { %s329_s24 = scalar_lea.sflag [#allocation5], %s328_s14  ;;  %s7915_s15 = scalar_lea.vmem [#allocation8], %s6211_s10 }
  0x86   : > { %p9363_p7 = scmp.ne.s32.totalorder %s9354_s9, 0 }
  0x88   : > { %7647 = dma.done.wait (%p9363_p7), %s329_s24, 65536  }
  0x89   : > { %7649 = vsyncadd (%p9363_p7), %s329_s24, 4294901760 }
  0x8a   : > { %7651 = dma.done.wait (%p9361_p13), [#allocation7], 128  }
  0x8b   : > { %7653 = vsyncadd (%p9361_p13), [#allocation7], 4294967168  ;;  %p6213_p4 = scmp.ne.s32.totalorder %s7668_s27, 0 }
  0x8c   : > { %s9364_s18 = sld [smem:[#allocation15_spill]] (!%p6213_p4)  ;;  %v7686_v12 = vmov (!%p6213_p4), 0.0   ;;  %v7687_v48 = vmov (!%p6213_p4), 1983009808   ;;  %v494_v50 = vlaneseq (!%p6213_p4)  ;;  %s9365_s6 = sld [smem:[#allocation14_spill]] (!%p6213_p4)  ;;  %vm7689_vm0 = vmmov (!%p6213_p4), 0  }
  0x8d   : > { %387 = sbr.rel (%p6213_p4) target bundleno = 721 (0x2d1), region = 68  ;;  %1704 = vst [vmem:[#allocation3] sm:$0xff] (!%p6213_p4), %v7686_v12  ;;  %1705 = vst [vmem:[#allocation3 + $0x8] sm:$0xff] (!%p6213_p4), %v7686_v12  ;;  %v492_v49 = vunpack.c.l.s4 (!%p6213_p4), %v7687_v48  ;;  %vm529_vm1 = vcmask (!%p6213_p4), 130048   ;;  %vm1024_vm2 = vcmask (!%p6213_p4), 523264  }
  0x92   : > { %v406_v0 = vld [vmem:[%s9364_s18 + $0x80] sm:$0xff] (!%p6213_p4)  ;;  %v407_v1 = vld [vmem:[%s9364_s18 + $0x88] sm:$0xff] (!%p6213_p4)  ;;  %v408_v11 = vld [vmem:[%s9364_s18 + $0x90] sm:$0xff] (!%p6213_p4) }
  0x93   : > { %v438_v2 = vld [vmem:[%s9364_s18 + $0x180] sm:$0xff] (!%p6213_p4)  ;;  %v6998_v3 = vpack.c.bf16 (!%p6213_p4), %v407_v1, %v406_v0  ;;  %v439_v4 = vld [vmem:[%s9364_s18 + $0x188] sm:$0xff] (!%p6213_p4)  ;;  %v409_v14 = vld [vmem:[%s9364_s18 + $0x98] sm:$0xff] (!%p6213_p4)  ;;  %v493_v0 = vunpack.c.0.s8 (!%p6213_p4), %v492_v49  ;;  %v8054_v1 = vshrl.u32 (!%p6213_p4), %v494_v50, 7 }
  0x94   : > { %v390_v5 = vld [vmem:[%s9364_s18] sm:$0xff]  ;;  %v391_v6 = vld [vmem:[%s9364_s18 + $0x8] sm:$0xff]  ;;  %v7030_v7 = vpack.c.bf16 %v439_v4, %v438_v2  ;;  %v440_v15 = vld [vmem:[%s9364_s18 + $0x190] sm:$0xff]  ;;  %v7002_v17 = vpack.c.bf16 %v409_v14, %v408_v11 }
  0x95   : > { %v7000_v8 = vpack.c.bf16 %v391_v6, %v390_v5  ;;  %v422_v9 = vld [vmem:[%s9364_s18 + $0x100] sm:$0xff]  ;;  %v423_v10 = vld [vmem:[%s9364_s18 + $0x108] sm:$0xff]  ;;  %6999 = vmatprep.subr.bf16.mxu0 %v6998_v3  ;;  %v441_v16 = vld [vmem:[%s9364_s18 + $0x198] sm:$0xff] }
  0x96   : > { %v7032_v13 = vpack.c.bf16 %v423_v10, %v422_v9  ;;  %7031 = vmatprep.subr.bf16.mxu1 %v7030_v7  ;;  %v7034_v18 = vpack.c.bf16 %v441_v16, %v440_v15  ;;  %v392_v19 = vld [vmem:[%s9364_s18 + $0x10] sm:$0xff]  ;;  %v393_v20 = vld [vmem:[%s9364_s18 + $0x18] sm:$0xff]  ;;  %v410_v24 = vld [vmem:[%s9364_s18 + $0xa0] sm:$0xff]  ;;  %v8081_v15 = vsub.s32 %v493_v0, %v8054_v1  ;;  %v7688_v0 = vmov 0.0|0.0  }
  0x97   : > { %7001 = vmatpush3.bf16.msra.mxu0 %v7000_v8  ;;  %v424_v21 = vld [vmem:[%s9364_s18 + $0x110] sm:$0xff]  ;;  %v7004_v22 = vpack.c.bf16 %v393_v20, %v392_v19  ;;  %v425_v23 = vld [vmem:[%s9364_s18 + $0x118] sm:$0xff]  ;;  %v411_v25 = vld [vmem:[%s9364_s18 + $0xa8] sm:$0xff] }
  0x98   : > { %7033 = vmatpush3.bf16.msra.mxu1 %v7032_v13  ;;  %7003 = vmatprep.subr.bf16.mxu0 %v7002_v17  ;;  %v7036_v26 = vpack.c.bf16 %v425_v23, %v424_v21  ;;  %v7006_v27 = vpack.c.bf16 %v411_v25, %v410_v24  ;;  %v442_v28 = vld [vmem:[%s9364_s18 + $0x1a0] sm:$0xff]  ;;  %v443_v29 = vld [vmem:[%s9364_s18 + $0x1a8] sm:$0xff]  ;;  %v412_v36 = vld [vmem:[%s9364_s18 + $0xb0] sm:$0xff] }
  0x99   : > { %7035 = vmatprep.subr.bf16.mxu1 %v7034_v18  ;;  %v394_v30 = vld [vmem:[%s9364_s18 + $0x20] sm:$0xff]  ;;  %v7038_v31 = vpack.c.bf16 %v443_v29, %v442_v28  ;;  %v395_v32 = vld [vmem:[%s9364_s18 + $0x28] sm:$0xff]  ;;  %v413_v37 = vld [vmem:[%s9364_s18 + $0xb8] sm:$0xff] }
  0x9a   : > { %v426_v33 = vld [vmem:[%s9364_s18 + $0x120] sm:$0xff]  ;;  %v427_v34 = vld [vmem:[%s9364_s18 + $0x128] sm:$0xff]  ;;  %v7008_v35 = vpack.c.bf16 %v395_v32, %v394_v30  ;;  %v444_v38 = vld [vmem:[%s9364_s18 + $0x1b0] sm:$0xff]  ;;  %v7010_v40 = vpack.c.bf16 %v413_v37, %v412_v36 }
  0x9b   : > { %7005 = vmatpush3.bf16.msra.mxu0 %v7004_v22  ;;  %v7040_v39 = vpack.c.bf16 %v427_v34, %v426_v33  ;;  %v445_v41 = vld [vmem:[%s9364_s18 + $0x1b8] sm:$0xff]  ;;  %v396_v42 = vld [vmem:[%s9364_s18 + $0x30] sm:$0xff]  ;;  %v414_v47 = vld [vmem:[%s9364_s18 + $0xc0] sm:$0xff] }
  0x9c   : > { %7037 = vmatpush3.bf16.msra.mxu1 %v7036_v26  ;;  %7007 = vmatprep.subr.bf16.mxu0 %v7006_v27  ;;  %v397_v43 = vld [vmem:[%s9364_s18 + $0x38] sm:$0xff]  ;;  %v7042_v44 = vpack.c.bf16 %v445_v41, %v444_v38  ;;  %v428_v45 = vld [vmem:[%s9364_s18 + $0x130] sm:$0xff]  ;;  %v415_v51 = vld [vmem:[%s9364_s18 + $0xc8] sm:$0xff] }
  0x9d   : > { %7039 = vmatprep.subr.bf16.mxu1 %v7038_v31  ;;  %v429_v46 = vld [vmem:[%s9364_s18 + $0x138] sm:$0xff]  ;;  %v446_v52 = vld [vmem:[%s9364_s18 + $0x1c0] sm:$0xff]  ;;  %v447_v53 = vld [vmem:[%s9364_s18 + $0x1c8] sm:$0xff]  ;;  %v7012_v54 = vpack.c.bf16 %v397_v43, %v396_v42  ;;  %v7014_v56 = vpack.c.bf16 %v415_v51, %v414_v47 }
  0x9e   : > { %v7044_v55 = vpack.c.bf16 %v429_v46, %v428_v45  ;;  %v398_v57 = vld [vmem:[%s9364_s18 + $0x40] sm:$0xff]  ;;  %v399_v58 = vld [vmem:[%s9364_s18 + $0x48] sm:$0xff]  ;;  %v7046_v60 = vpack.c.bf16 %v447_v53, %v446_v52  ;;  %v416_v62 = vld [vmem:[%s9364_s18 + $0xd0] sm:$0xff] }
  0x9f   : > { %7009 = vmatpush3.bf16.msra.mxu0 %v7008_v35  ;;  %v430_v59 = vld [vmem:[%s9364_s18 + $0x140] sm:$0xff]  ;;  %v431_v61 = vld [vmem:[%s9364_s18 + $0x148] sm:$0xff]  ;;  %v417_v63 = vld [vmem:[%s9364_s18 + $0xd8] sm:$0xff]  ;;  %v7016_v4 = vpack.c.bf16 %v399_v58, %v398_v57 }
  0xa0   : > { %7041 = vmatpush3.bf16.msra.mxu1 %v7040_v39  ;;  %7011 = vmatprep.subr.bf16.mxu0 %v7010_v40  ;;  %v448_v2 = vld [vmem:[%s9364_s18 + $0x1d0] sm:$0xff]  ;;  %v449_v3 = vld [vmem:[%s9364_s18 + $0x1d8] sm:$0xff]  ;;  %v7048_v5 = vpack.c.bf16 %v431_v61, %v430_v59  ;;  %v7018_v6 = vpack.c.bf16 %v417_v63, %v416_v62  ;;  %v418_v13 = vld [vmem:[%s9364_s18 + $0xe0] sm:$0xff] }
  0xa1   : > { %7043 = vmatprep.subr.bf16.mxu1 %v7042_v44  ;;  %v400_v7 = vld [vmem:[%s9364_s18 + $0x50] sm:$0xff]  ;;  %v401_v8 = vld [vmem:[%s9364_s18 + $0x58] sm:$0xff]  ;;  %v7050_v10 = vpack.c.bf16 %v449_v3, %v448_v2  ;;  %v419_v14 = vld [vmem:[%s9364_s18 + $0xe8] sm:$0xff] }
  0xa2   : > { %v432_v9 = vld [vmem:[%s9364_s18 + $0x150] sm:$0xff]  ;;  %v433_v11 = vld [vmem:[%s9364_s18 + $0x158] sm:$0xff]  ;;  %v450_v16 = vld [vmem:[%s9364_s18 + $0x1e0] sm:$0xff]  ;;  %v7020_v18 = vpack.c.bf16 %v401_v8, %v400_v7  ;;  %v7022_v21 = vpack.c.bf16 %v419_v14, %v418_v13 }
  0xa3   : > { %7013 = vmatpush3.bf16.msra.mxu0 %v7012_v54  ;;  %v451_v17 = vld [vmem:[%s9364_s18 + $0x1e8] sm:$0xff]  ;;  %v402_v19 = vld [vmem:[%s9364_s18 + $0x60] sm:$0xff]  ;;  %v7052_v20 = vpack.c.bf16 %v433_v11, %v432_v9  ;;  %v420_v27 = vld [vmem:[%s9364_s18 + $0xf0] sm:$0xff] }
  0xa4   : > { %7045 = vmatpush3.bf16.msra.mxu1 %v7044_v55  ;;  %7015 = vmatprep.subr.bf16.mxu0 %v7014_v56  ;;  %v403_v22 = vld [vmem:[%s9364_s18 + $0x68] sm:$0xff]  ;;  %v434_v23 = vld [vmem:[%s9364_s18 + $0x160] sm:$0xff]  ;;  %v7054_v25 = vpack.c.bf16 %v451_v17, %v450_v16  ;;  %v421_v28 = vld [vmem:[%s9364_s18 + $0xf8] sm:$0xff] }
  0xa5   : > { %7047 = vmatprep.subr.bf16.mxu1 %v7046_v60  ;;  %v388_v24 = vld [vmem:[%s9365_s6] sm:$0xff]  ;;  %v435_v26 = vld [vmem:[%s9364_s18 + $0x168] sm:$0xff]  ;;  %v452_v31 = vld [vmem:[%s9364_s18 + $0x1f0] sm:$0xff]  ;;  %v7024_v33 = vpack.c.bf16 %v403_v22, %v402_v19  ;;  %v7026_v37 = vpack.c.bf16 %v421_v28, %v420_v27 }
  0xa6   : > { %v497_v29 = vrot.slane %v388_v24, %v8081_v15  ;;  %v490_v30 = vcombine.high %v388_v24, %v388_v24  ;;  %v453_v32 = vld [vmem:[%s9364_s18 + $0x1f8] sm:$0xff]  ;;  %v7056_v36 = vpack.c.bf16 %v435_v26, %v434_v23  ;;  %v404_v38 = vld [vmem:[%s9364_s18 + $0x70] sm:$0xff]  ;;  %v470_v44 = vld [vmem:[%s9364_s18 + $0x280] sm:$0xff] }
  0xa7   : > { %7017 = vmatpush3.bf16.msra.mxu0 %v7016_v4  ;;  %v405_v39 = vld [vmem:[%s9364_s18 + $0x78] sm:$0xff]  ;;  %v436_v40 = vld [vmem:[%s9364_s18 + $0x170] sm:$0xff]  ;;  %v7058_v41 = vpack.c.bf16 %v453_v32, %v452_v31  ;;  %v471_v45 = vld [vmem:[%s9364_s18 + $0x288] sm:$0xff] }
  0xa8   : > { %7049 = vmatpush3.bf16.msra.mxu1 %v7048_v5  ;;  %7019 = vmatprep.subr.bf16.mxu0 %v7018_v6  ;;  %v505_v34 = vcombine.high %v497_v29, %v497_v29  ;;  %v504_v35 = vrot.slane %v490_v30, %v8081_v15  ;;  %v437_v42 = vld [vmem:[%s9364_s18 + $0x178] sm:$0xff]  ;;  %v7028_v46 = vpack.c.bf16 %v405_v39, %v404_v38  ;;  %v454_v49 = vld [vmem:[%s9364_s18 + $0x200] sm:$0xff]  ;;  %v455_v50 = vld [vmem:[%s9364_s18 + $0x208] sm:$0xff] }
  0xa9   : > { %7051 = vmatprep.subr.bf16.mxu1 %v7050_v10  ;;  %v7060_v47 = vpack.c.bf16 %v437_v42, %v436_v40  ;;  %v7062_v48 = vpack.c.bf16 %v471_v45, %v470_v44  ;;  %v472_v51 = vld [vmem:[%s9364_s18 + $0x290] sm:$0xff]  ;;  %v473_v52 = vld [vmem:[%s9364_s18 + $0x298] sm:$0xff]  ;;  %v7064_v53 = vpack.c.bf16 %v455_v50, %v454_v49  ;;  %v389_v54 = vld [vmem:[%s9365_s6 + $0x8] sm:$0x3f] }
  0xaa   : > { %596 = vmatprep.mubr.f32.mxu0 %v505_v34  ;;  %v506_v43 = vcombine.high %v504_v35, %v504_v35  ;;  %v486_v55 = vld [vmem:[%s9364_s18 + $0x300] sm:$0xff]  ;;  %v7066_v56 = vpack.c.bf16 %v473_v52, %v472_v51  ;;  %v456_v57 = vld [vmem:[%s9364_s18 + $0x210] sm:$0xff]  ;;  %v457_v58 = vld [vmem:[%s9364_s18 + $0x218] sm:$0xff]  ;;  %v507_v59 = vcombine.high %v389_v54, %v389_v54  ;;  %v8161_v60 = vrot.slane %v389_v54, %v8081_v15 }
  0xab   : > { %7021 = vmatpush3.bf16.msra.mxu0 %v7020_v18  ;;  %v487_v61 = vld [vmem:[%s9364_s18 + $0x308] sm:$0xff]  ;;  %v474_v62 = vld [vmem:[%s9364_s18 + $0x2a0] sm:$0xff]  ;;  %v7068_v4 = vpack.c.bf16 %v457_v58, %v456_v57  ;;  %v476_v9 = vld [vmem:[%s9364_s18 + $0x2b0] sm:$0xff] }
  0xac   : > { %7053 = vmatpush3.bf16.msra.mxu1 %v7052_v20  ;;  %7023 = vmatprep.subr.bf16.mxu0 %v7022_v21  ;;  %v475_v63 = vld [vmem:[%s9364_s18 + $0x2a8] sm:$0xff]  ;;  %v7095_v2 = vpack.c.bf16 %v487_v61, %v486_v55  ;;  %v522_v3 = vcombine.high %v8161_v60, %v8161_v60  ;;  %v458_v6 = vld [vmem:[%s9364_s18 + $0x220] sm:$0xff]  ;;  %v521_v8 = vrot.slane %v507_v59, %v8081_v15  ;;  %v477_v10 = vld [vmem:[%s9364_s18 + $0x2b8] sm:$0xff] }
  0xad   : > { %7055 = vmatprep.subr.bf16.mxu1 %v7054_v25  ;;  %666 = vmatprep.mubr.f32.mxu1 %v506_v43  ;;  %v7070_v5 = vpack.c.bf16 %v475_v63, %v474_v62  ;;  %v459_v7 = vld [vmem:[%s9364_s18 + $0x228] sm:$0xff]  ;;  %v7074_v13 = vpack.c.bf16 %v477_v10, %v476_v9  ;;  %v460_v14 = vld [vmem:[%s9364_s18 + $0x230] sm:$0xff]  ;;  %v461_v16 = vld [vmem:[%s9364_s18 + $0x238] sm:$0xff] }
  0xae   : > { %v7072_v11 = vpack.c.bf16 %v459_v7, %v458_v6  ;;  %v478_v17 = vld [vmem:[%s9364_s18 + $0x2c0] sm:$0xff]  ;;  %v479_v18 = vld [vmem:[%s9364_s18 + $0x2c8] sm:$0xff]  ;;  %v7076_v19 = vpack.c.bf16 %v461_v16, %v460_v14  ;;  %v480_v23 = vld [vmem:[%s9364_s18 + $0x2d0] sm:$0xff] }
  0xaf   : > { %7025 = vmatpush3.bf16.msra.mxu0 %v7024_v33  ;;  %v7078_v20 = vpack.c.bf16 %v479_v18, %v478_v17  ;;  %v462_v21 = vld [vmem:[%s9364_s18 + $0x240] sm:$0xff]  ;;  %v463_v22 = vld [vmem:[%s9364_s18 + $0x248] sm:$0xff]  ;;  %v481_v24 = vld [vmem:[%s9364_s18 + $0x2d8] sm:$0xff] }
  0xb0   : > { %7057 = vmatpush3.bf16.msra.mxu1 %v7056_v36  ;;  %7027 = vmatprep.subr.bf16.mxu0 %v7026_v37  ;;  %v7080_v25 = vpack.c.bf16 %v463_v22, %v462_v21  ;;  %v7082_v26 = vpack.c.bf16 %v481_v24, %v480_v23  ;;  %v464_v27 = vld [vmem:[%s9364_s18 + $0x250] sm:$0xff]  ;;  %v465_v28 = vld [vmem:[%s9364_s18 + $0x258] sm:$0xff]  ;;  %v483_v30 = vld [vmem:[%s9364_s18 + $0x2e8] sm:$0xff] }
  0xb1   : > { %7059 = vmatprep.subr.bf16.mxu1 %v7058_v41  ;;  %v7084_v31 = vpack.c.bf16 %v465_v28, %v464_v27  ;;  %v466_v33 = vld [vmem:[%s9364_s18 + $0x260] sm:$0xff]  ;;  %v467_v34 = vld [vmem:[%s9364_s18 + $0x268] sm:$0xff]  ;;  %v485_v36 = vld [vmem:[%s9364_s18 + $0x2f8] sm:$0xff] }
  0xb2   : > { %v7088_v37 = vpack.c.bf16 %v467_v34, %v466_v33  ;;  %v468_v39 = vld [vmem:[%s9364_s18 + $0x270] sm:$0xff]  ;;  %v469_v40 = vld [vmem:[%s9364_s18 + $0x278] sm:$0xff] }
  0xb3   : > { %7029 = vmatpush3.bf16.msra.mxu0 %v7028_v46  ;;  %v7092_v41 = vpack.c.bf16 %v469_v40, %v468_v39  ;;  %v813_v42 = vld [vmem:[#allocation4 + $0x8] sm:$0xff]  ;;  %v816_v51 = vld [vmem:[#allocation4 + $0x20] sm:$0xff] }
  0xb4   : > { %7061 = vmatpush3.bf16.msra.mxu1 %v7060_v47  ;;  %7063 = vmatprep.subr.bf16.mxu0 %v7062_v48  ;;  %v829_v43 = vld [vmem:[#allocation4 + $0x88] sm:$0xff]  ;;  %v812_v47 = vld [vmem:[#allocation4] sm:$0xff] }
  0xb5   : > { %7094 = vmatprep.subr.bf16.mxu1 %v7688_v0  ;;  %v817_v44 = vld [vmem:[#allocation4 + $0x28] sm:$0xff]  ;;  %v7097_v45 = vpack.c.bf16 %v829_v43, %v813_v42  ;;  %v828_v48 = vld [vmem:[#allocation4 + $0x80] sm:$0xff] }
  0xb6   : > { %597 = vmatmul.mubr.f32.vlgmr.msra.gmra.mrb[0].mxu0 %v497_v29  ;;  %v482_v29 = vld [vmem:[%s9364_s18 + $0x2e0] sm:$0xff]  ;;  %v833_v46 = vld [vmem:[#allocation4 + $0xa8] sm:$0xff]  ;;  %v7099_v50 = vpack.c.bf16 %v828_v48, %v812_v47  ;;  %v832_v52 = vld [vmem:[#allocation4 + $0xa0] sm:$0xff] }
  0xb7   : > { %667 = vmatmul.mubr.f32.vlgmr.msra.gmra.mrb[0].mxu1 %v504_v35  ;;  %7065 = vmatpush3.bf16.msra.mxu0 %v7064_v53  ;;  %v7086_v32 = vpack.c.bf16 %v483_v30, %v482_v29  ;;  %v484_v35 = vld [vmem:[%s9364_s18 + $0x2f0] sm:$0xff]  ;;  %v7129_v49 = vpack.c.bf16 %v833_v46, %v817_v44  ;;  %v845_v53 = vld [vmem:[#allocation4 + $0x108] sm:$0xff]  ;;  %v7131_v54 = vpack.c.bf16 %v832_v52, %v816_v51  ;;  %v815_v29 = vld [vmem:[#allocation4 + $0x18] sm:$0xff] }
  0xb8   : > { %7067 = vmatprep.subr.bf16.mxu0 %v7066_v56  ;;  %736 = vmatprep.mubr.f32.mxu0 %v522_v3  ;;  %v7090_v38 = vpack.c.bf16 %v485_v36, %v484_v35  ;;  %v861_v55 = vld [vmem:[#allocation4 + $0x188] sm:$0xff]  ;;  %v860_v61 = vld [vmem:[#allocation4 + $0x180] sm:$0xff]  ;;  %v831_v30 = vld [vmem:[#allocation4 + $0x98] sm:$0xff] }
  0xb9   : > { %7096 = vmatpush3.bf16.msra.mxu1 %v7095_v2  ;;  %6995 = vmatprep.mubr.msk.f32.mxu1 %vm7689_vm0, %v7686_v12  ;;  %v849_v56 = vld [vmem:[#allocation4 + $0x128] sm:$0xff]  ;;  %v7101_v58 = vpack.c.bf16 %v861_v55, %v845_v53  ;;  %v848_v62 = vld [vmem:[#allocation4 + $0x120] sm:$0xff]  ;;  %v814_v46 = vld [vmem:[#allocation4 + $0x10] sm:$0xff] }
  0xba   : > { %7098 = vmatprep.subr.bf16.mxu1 %v7097_v45  ;;  %v865_v57 = vld [vmem:[#allocation4 + $0x1a8] sm:$0xff]  ;;  %v864_v0 = vld [vmem:[#allocation4 + $0x1a0] sm:$0xff]  ;;  %v830_v47 = vld [vmem:[#allocation4 + $0x90] sm:$0xff] }
  0xbb   : > { %7069 = vmatpush3.bf16.msra.mxu0 %v7068_v4  ;;  %v7133_v59 = vpack.c.bf16 %v865_v57, %v849_v56  ;;  %v877_v2 = vld [vmem:[#allocation4 + $0x208] sm:$0xff]  ;;  %v7135_v4 = vpack.c.bf16 %v864_v0, %v848_v62  ;;  %v876_v9 = vld [vmem:[#allocation4 + $0x200] sm:$0xff]  ;;  %v847_v51 = vld [vmem:[#allocation4 + $0x118] sm:$0xff]  ;;  %v7115_v56 = vpack.c.bf16 %v830_v47, %v814_v46 }
  0xbc   : > { %7071 = vmatprep.subr.bf16.mxu0 %v7070_v5  ;;  %6996 = vmatmul.mubr.msk.f32.vlgmr.msra.gmra.mrb[2].mxu1 %vm529_vm1, %v521_v8  ;;  %v893_v3 = vld [vmem:[#allocation4 + $0x288] sm:$0xff]  ;;  %v892_v10 = vld [vmem:[#allocation4 + $0x280] sm:$0xff]  ;;  %v863_v52 = vld [vmem:[#allocation4 + $0x198] sm:$0xff] }
  0xbd   : > { %1092 = vmatprep.mubr.f32.mxu1 %v7686_v12  ;;  %7100 = vmatpush1.bf16.msra.mxu1 %v7099_v50  ;;  %v7105_v5 = vpack.c.bf16 %v893_v3, %v877_v2  ;;  %v881_v6 = vld [vmem:[#allocation4 + $0x228] sm:$0xff]  ;;  %v896_v14 = vld [vmem:[#allocation4 + $0x2a0] sm:$0xff]  ;;  %v879_v2 = vld [vmem:[#allocation4 + $0x218] sm:$0xff] }
  0xbe   : > { %7102 = vmatprep.subr.bf16.mxu1 %v7101_v58  ;;  %v897_v7 = vld [vmem:[#allocation4 + $0x2a8] sm:$0xff]  ;;  %v908_v22 = vld [vmem:[#allocation4 + $0x300] sm:$0xff]  ;;  %v846_v58 = vld [vmem:[#allocation4 + $0x110] sm:$0xff] }
  0xbf   : > { %7073 = vmatpush3.bf16.msra.mxu0 %v7072_v11  ;;  %v7137_v8 = vpack.c.bf16 %v897_v7, %v881_v6  ;;  %v880_v11 = vld [vmem:[#allocation4 + $0x220] sm:$0xff]  ;;  %v909_v17 = vld [vmem:[#allocation4 + $0x308] sm:$0xff]  ;;  %v895_v3 = vld [vmem:[#allocation4 + $0x298] sm:$0xff] }
  0xc0   : > { %7075 = vmatprep.subr.bf16.mxu0 %v7074_v13  ;;  %v7107_v13 = vpack.c.bf16 %v892_v10, %v876_v9  ;;  %v7139_v16 = vpack.c.bf16 %v896_v14, %v880_v11  ;;  %v925_v18 = vld [vmem:[#allocation4 + $0x388] sm:$0xff]  ;;  %v924_v23 = vld [vmem:[#allocation4 + $0x380] sm:$0xff]  ;;  %v894_v9 = vld [vmem:[#allocation4 + $0x290] sm:$0xff]  ;;  %v7121_v10 = vpack.c.bf16 %v895_v3, %v879_v2 }
  0xc1   : > { %v929_v21 = vld [vmem:[#allocation4 + $0x3a8] sm:$0xff]  ;;  %v928_v27 = vld [vmem:[#allocation4 + $0x3a0] sm:$0xff]  ;;  %v850_v46 = vld [vmem:[#allocation4 + $0x130] sm:$0xff] }
  0xc2   : > { %v837_v33 = vld [vmem:[#allocation4 + $0xc8] sm:$0xff]  ;;  %v836_v50 = vld [vmem:[#allocation4 + $0xc0] sm:$0xff]  ;;  %v866_v47 = vld [vmem:[#allocation4 + $0x1b0] sm:$0xff] }
  0xc3   : > { %7077 = vmatpush3.bf16.msra.mxu0 %v7076_v19  ;;  %v913_v19 = vld [vmem:[#allocation4 + $0x328] sm:$0xff]  ;;  %v868_v0 = vld [vmem:[#allocation4 + $0x1c0] sm:$0xff]  ;;  %v915_v2 = vld [vmem:[#allocation4 + $0x338] sm:$0xff] }
  0xc4   : > { %7079 = vmatprep.subr.bf16.mxu0 %v7078_v20  ;;  %v7109_v20 = vpack.c.bf16 %v925_v18, %v909_v17  ;;  %v7141_v24 = vpack.c.bf16 %v929_v21, %v913_v19  ;;  %v853_v53 = vld [vmem:[#allocation4 + $0x148] sm:$0xff]  ;;  %v900_v14 = vld [vmem:[#allocation4 + $0x2c0] sm:$0xff]  ;;  %v927_v17 = vld [vmem:[#allocation4 + $0x398] sm:$0xff] }
  0xc5   : > { %v917_v18 = vld [vmem:[#allocation4 + $0x348] sm:$0xff]  ;;  %v931_v3 = vld [vmem:[#allocation4 + $0x3b8] sm:$0xff] }
  0xc6   : > { %v933_v19 = vld [vmem:[#allocation4 + $0x3c8] sm:$0xff] }
  0xc7   : > { %7081 = vmatpush3.bf16.msra.mxu0 %v7080_v25  ;;  %v7111_v25 = vpack.c.bf16 %v924_v23, %v908_v22  ;;  %v910_v22 = vld [vmem:[#allocation4 + $0x310] sm:$0xff] }
  0xc8   : > { %7083 = vmatprep.subr.bf16.mxu0 %v7082_v26  ;;  %v912_v26 = vld [vmem:[#allocation4 + $0x320] sm:$0xff]  ;;  %v926_v23 = vld [vmem:[#allocation4 + $0x390] sm:$0xff] }
  0xc9   : > { %v7143_v28 = vpack.c.bf16 %v928_v27, %v912_v26  ;;  %v916_v26 = vld [vmem:[#allocation4 + $0x340] sm:$0xff] }
  0xca   : > { %v932_v27 = vld [vmem:[#allocation4 + $0x3c0] sm:$0xff] }
  0xcb   : > { %7085 = vmatpush3.bf16.msra.mxu0 %v7084_v31  ;;  %v821_v31 = vld [vmem:[#allocation4 + $0x48] sm:$0xff] }
  0xcc   : > { %7087 = vmatprep.subr.bf16.mxu0 %v7086_v32  ;;  %v7113_v32 = vpack.c.bf16 %v831_v30, %v815_v29  ;;  %v7161_v34 = vpack.c.bf16 %v837_v33, %v821_v31  ;;  %v835_v29 = vld [vmem:[#allocation4 + $0xb8] sm:$0xff]  ;;  %v825_v30 = vld [vmem:[#allocation4 + $0x68] sm:$0xff]  ;;  %v7175_v33 = vpack.c.bf16 %v932_v27, %v916_v26  ;;  %v854_v27 = vld [vmem:[#allocation4 + $0x150] sm:$0xff] }
  0xcd   : > { %v841_v31 = vld [vmem:[#allocation4 + $0xe8] sm:$0xff] }
  0xcf   : > { %7089 = vmatpush3.bf16.msra.mxu0 %v7088_v37 }
  0xd0   : > { %7091 = vmatprep.subr.bf16.mxu0 %v7090_v38 }
  0xd3   : > { %7093 = vmatpush3.bf16.msra.mxu0 %v7092_v41 }
  0xd4   : > { %7130 = vmatprep.subr.bf16.mxu0 %v7129_v49  ;;  %v820_v49 = vld [vmem:[#allocation4 + $0x40] sm:$0xff] }
  0xd5   : > { %v7163_v57 = vpack.c.bf16 %v836_v50, %v820_v49  ;;  %v856_v50 = vld [vmem:[#allocation4 + $0x160] sm:$0xff] }
  0xd6   : > { %737 = vmatmul.mubr.f32.vlgmr.msra.gmra.mrb[2].mxu0 %v8161_v60  ;;  %v844_v60 = vld [vmem:[#allocation4 + $0x100] sm:$0xff] }
  0xd7   : > { %1234 = vmatprep.mubr.f32.mxu0 %v7686_v12  ;;  %7132 = vmatpush1.bf16.msra.mxu0 %v7131_v54  ;;  %v7103_v63 = vpack.c.bf16 %v860_v61, %v844_v60  ;;  %v869_v54 = vld [vmem:[#allocation4 + $0x1c8] sm:$0xff]  ;;  %v7117_v61 = vpack.c.bf16 %v863_v52, %v847_v51  ;;  %v872_v51 = vld [vmem:[#allocation4 + $0x1e0] sm:$0xff]  ;;  %v883_v52 = vld [vmem:[#allocation4 + $0x238] sm:$0xff] }
  0xd8   : > { %7134 = vmatprep.subr.bf16.mxu0 %v7133_v59  ;;  %v862_v59 = vld [vmem:[#allocation4 + $0x190] sm:$0xff]  ;;  %v7165_v62 = vpack.c.bf16 %v869_v54, %v853_v53  ;;  %v899_v53 = vld [vmem:[#allocation4 + $0x2b8] sm:$0xff]  ;;  %v889_v54 = vld [vmem:[#allocation4 + $0x268] sm:$0xff] }
  0xd9   : > { %7104 = vmatpush1.bf16.msra.mxu1 %v7103_v63  ;;  %v852_v63 = vld [vmem:[#allocation4 + $0x140] sm:$0xff]  ;;  %v7119_v6 = vpack.c.bf16 %v862_v59, %v846_v58  ;;  %v882_v58 = vld [vmem:[#allocation4 + $0x230] sm:$0xff] }
  0xda   : > { %7106 = vmatprep.subr.bf16.mxu1 %v7105_v5  ;;  %v901_v5 = vld [vmem:[#allocation4 + $0x2c8] sm:$0xff]  ;;  %v7167_v7 = vpack.c.bf16 %v868_v0, %v852_v63  ;;  %v898_v59 = vld [vmem:[#allocation4 + $0x2b0] sm:$0xff]  ;;  %v888_v63 = vld [vmem:[#allocation4 + $0x260] sm:$0xff] }
  0xdb   : > { %7136 = vmatpush1.bf16.msra.mxu0 %v7135_v4  ;;  %v885_v4 = vld [vmem:[#allocation4 + $0x248] sm:$0xff]  ;;  %v904_v0 = vld [vmem:[#allocation4 + $0x2e0] sm:$0xff] }
  0xdc   : > { %7138 = vmatprep.subr.bf16.mxu0 %v7137_v8  ;;  %v878_v8 = vld [vmem:[#allocation4 + $0x210] sm:$0xff]  ;;  %v7169_v11 = vpack.c.bf16 %v901_v5, %v885_v4  ;;  %v921_v4 = vld [vmem:[#allocation4 + $0x368] sm:$0xff] }
  0xdd   : > { %7108 = vmatpush1.bf16.msra.mxu1 %v7107_v13  ;;  %v884_v13 = vld [vmem:[#allocation4 + $0x240] sm:$0xff]  ;;  %v937_v5 = vld [vmem:[#allocation4 + $0x3e8] sm:$0xff] }
  0xde   : > { %7110 = vmatprep.subr.bf16.mxu1 %v7109_v20  ;;  %v7123_v20 = vpack.c.bf16 %v894_v9, %v878_v8  ;;  %v7171_v21 = vpack.c.bf16 %v900_v14, %v884_v13  ;;  %v914_v8 = vld [vmem:[#allocation4 + $0x330] sm:$0xff]  ;;  %v7157_v9 = vpack.c.bf16 %v931_v3, %v915_v2  ;;  %v920_v13 = vld [vmem:[#allocation4 + $0x360] sm:$0xff] }
  0xdf   : > { %7140 = vmatpush1.bf16.msra.mxu0 %v7139_v16  ;;  %v911_v16 = vld [vmem:[#allocation4 + $0x318] sm:$0xff]  ;;  %v936_v14 = vld [vmem:[#allocation4 + $0x3e0] sm:$0xff]  ;;  %v938_v2 = vld [vmem:[#allocation4 + $0x3f0] sm:$0xff] }
  0xe0   : > { %7142 = vmatprep.subr.bf16.mxu0 %v7141_v24  ;;  %v7125_v24 = vpack.c.bf16 %v927_v17, %v911_v16  ;;  %v823_v16 = vld [vmem:[#allocation4 + $0x58] sm:$0xff] }
  0xe1   : > { %7112 = vmatpush1.bf16.msra.mxu1 %v7111_v25  ;;  %v7173_v25 = vpack.c.bf16 %v933_v19, %v917_v18  ;;  %v839_v17 = vld [vmem:[#allocation4 + $0xd8] sm:$0xff]  ;;  %v7207_v19 = vpack.c.bf16 %v936_v14, %v920_v13 }
  0xe2   : > { %7114 = vmatprep.subr.bf16.mxu1 %v7113_v32  ;;  %v7127_v32 = vpack.c.bf16 %v926_v23, %v910_v22  ;;  %v838_v22 = vld [vmem:[#allocation4 + $0xd0] sm:$0xff]  ;;  %v855_v23 = vld [vmem:[#allocation4 + $0x158] sm:$0xff] }
  0xe3   : > { %7144 = vmatpush1.bf16.msra.mxu0 %v7143_v28  ;;  %v819_v28 = vld [vmem:[#allocation4 + $0x38] sm:$0xff] }
  0xe4   : > { %7162 = vmatprep.subr.bf16.mxu0 %v7161_v34  ;;  %v818_v34 = vld [vmem:[#allocation4 + $0x30] sm:$0xff] }
 0x189   : > { %v6775_v35 = vpop.f32.mrb[0].mxu0 }
 0x18a   : > { %v6810_v36 = vpop.f32.mrb[0].mxu1  ;;  %v6776_v37 = vpop.f32.mrb[1].mxu0 }
 0x18b   : > { %v6777_v38 = vadd.f32 %v6776_v37, %v6775_v35  ;;  %v6811_v39 = vpop.f32.mrb[1].mxu1  ;;  %v834_v35 = vld [vmem:[#allocation4 + $0xb0] sm:$0xff]  ;;  %v7193_v37 = vpack.c.bf16 %v841_v31, %v825_v30  ;;  %v903_v30 = vld [vmem:[#allocation4 + $0x2d8] sm:$0xff] }
 0x18c   : > { %v6812_v40 = vadd.f32 %v6811_v39, %v6810_v36  ;;  %v7145_v36 = vpack.c.bf16 %v835_v29, %v819_v28  ;;  %v840_v39 = vld [vmem:[#allocation4 + $0xe0] sm:$0xff]  ;;  %v870_v28 = vld [vmem:[#allocation4 + $0x1d0] sm:$0xff]  ;;  %v887_v29 = vld [vmem:[#allocation4 + $0x258] sm:$0xff] }
 0x18d   : > { %v7183_v31 = vpack.c.bf16 %v870_v28, %v854_v27  ;;  %v954_v27 = vsub.s32 2, %v8054_v1  ;;  %v941_v28 = vld [vmem:[#allocation6 + $0x8] sm:$0xff] }
 0x18e   : > { %v669_v41 = vadd.f32 %v6812_v40, %v6777_v38  ;;  %v824_v38 = vld [vmem:[#allocation4 + $0x60] sm:$0xff]  ;;  %v851_v40 = vld [vmem:[#allocation4 + $0x138] sm:$0xff] }
 0x18f   : > { %v808_v42 = vpop.f32.mrb[2].mxu1 }
 0x190   : > { %v6997_v43 = vpop.f32.mrb[3].mxu1 }
 0x191   : > { %v873_v43 = vld [vmem:[#allocation4 + $0x1e8] sm:$0xff] }
 0x1a9   : > { %v6845_v44 = vpop.f32.mrb[2].mxu0 }
 0x1aa   : > { %v6846_v45 = vpop.f32.mrb[3].mxu0 }
 0x1ab   : > { %v6847_v48 = vadd.f32 %v6846_v45, %v6845_v44  ;;  %v7147_v44 = vpack.c.bf16 %v834_v35, %v818_v34  ;;  %v7195_v45 = vpack.c.bf16 %v840_v39, %v824_v38  ;;  %v902_v34 = vld [vmem:[#allocation4 + $0x2d0] sm:$0xff]  ;;  %v919_v35 = vld [vmem:[#allocation4 + $0x358] sm:$0xff] }
 0x1ac   : > { %v918_v39 = vld [vmem:[#allocation4 + $0x350] sm:$0xff] }
 0x1ad   : > { %v739_v55 = vadd.f32 %v6847_v48, %v669_v41  ;;  %v867_v41 = vld [vmem:[#allocation4 + $0x1b8] sm:$0xff] }
 0x1ae   : > { %v7149_v48 = vpack.c.bf16 %v867_v41, %v851_v40  ;;  %v934_v40 = vld [vmem:[#allocation4 + $0x3d0] sm:$0xff]  ;;  %v827_v41 = vld [vmem:[#allocation4 + $0x78] sm:$0xff] }
 0x1af   : > { %v8245_v60 = vadd.f32 %v808_v42, %v739_v55  ;;  %v857_v42 = vld [vmem:[#allocation4 + $0x168] sm:$0xff] }
 0x1b0   : > { %v7197_v49 = vpack.c.bf16 %v873_v43, %v857_v42  ;;  %v905_v55 = vld [vmem:[#allocation4 + $0x2e8] sm:$0xff]  ;;  %v843_v42 = vld [vmem:[#allocation4 + $0xf8] sm:$0xff]  ;;  %v7191_v43 = vpack.c.bf16 %v934_v40, %v918_v39 }
 0x1b1   : > { %6215 = vmatmul.mubr.msk.f32.vlgmr.msra.gmra.mrb[4].mxu1 %vm1024_vm2, %v8245_v60  ;;  %6217 = vmatmul.mubr.msk.f32.vlgmr.msra.gmra.mrb[4].mxu0 %vm1024_vm2, %v8245_v60 }
 0x1b2   : > { %7116 = vmatpush1.bf16.msra.mxu1 %v7115_v56  ;;  %7164 = vmatpush1.bf16.msra.mxu0 %v7163_v57  ;;  %v7151_v56 = vpack.c.bf16 %v866_v47, %v850_v46  ;;  %v7199_v57 = vpack.c.bf16 %v872_v51, %v856_v50  ;;  %v842_v46 = vld [vmem:[#allocation4 + $0xf0] sm:$0xff]  ;;  %v859_v47 = vld [vmem:[#allocation4 + $0x178] sm:$0xff] }
 0x1b3   : > { %7118 = vmatprep.subr.bf16.mxu1 %v7117_v61  ;;  %7166 = vmatprep.subr.bf16.mxu0 %v7165_v62  ;;  %v7153_v61 = vpack.c.bf16 %v899_v53, %v883_v52  ;;  %v7201_v62 = vpack.c.bf16 %v905_v55, %v889_v54  ;;  %v858_v51 = vld [vmem:[#allocation4 + $0x170] sm:$0xff]  ;;  %v891_v53 = vld [vmem:[#allocation4 + $0x278] sm:$0xff] }
 0x1b4   : > { %1163 = vmatprep.mubr.f32.mxu1 %v7686_v12  ;;  %1376 = vmatprep.mubr.f32.mxu0 %v7686_v12  ;;  %v874_v52 = vld [vmem:[#allocation4 + $0x1f0] sm:$0xff]  ;;  %v907_v54 = vld [vmem:[#allocation4 + $0x2f8] sm:$0xff] }
 0x1b5   : > { %v7215_v55 = vpack.c.bf16 %v874_v52, %v858_v51  ;;  %v974_v52 = vsub.s32 7, %v8054_v1 }
 0x1b6   : > { %7120 = vmatpush1.bf16.msra.mxu1 %v7119_v6  ;;  %7168 = vmatpush1.bf16.msra.mxu0 %v7167_v7  ;;  %v7155_v6 = vpack.c.bf16 %v898_v59, %v882_v58  ;;  %v7203_v7 = vpack.c.bf16 %v904_v0, %v888_v63  ;;  %v906_v58 = vld [vmem:[#allocation4 + $0x2f0] sm:$0xff]  ;;  %v923_v59 = vld [vmem:[#allocation4 + $0x378] sm:$0xff] }
 0x1b7   : > { %7122 = vmatprep.subr.bf16.mxu1 %v7121_v10  ;;  %7170 = vmatprep.subr.bf16.mxu0 %v7169_v11  ;;  %v7205_v10 = vpack.c.bf16 %v937_v5, %v921_v4  ;;  %v930_v11 = vld [vmem:[#allocation4 + $0x3b0] sm:$0xff]  ;;  %v962_v4 = vsub.s32 4, %v8054_v1  ;;  %v940_v5 = vld [vmem:[#allocation6] sm:$0xff] }
 0x1b8   : > { %v7159_v18 = vpack.c.bf16 %v930_v11, %v914_v8  ;;  %v922_v0 = vld [vmem:[#allocation4 + $0x370] sm:$0xff] }
 0x1b9   : > { %v7223_v3 = vpack.c.bf16 %v938_v2, %v922_v0 }
 0x1ba   : > { %7124 = vmatpush1.bf16.msra.mxu1 %v7123_v20  ;;  %7172 = vmatpush1.bf16.msra.mxu0 %v7171_v21  ;;  %v7177_v20 = vpack.c.bf16 %v839_v17, %v823_v16  ;;  %v822_v21 = vld [vmem:[#allocation4 + $0x50] sm:$0xff] }
 0x1bb   : > { %7126 = vmatprep.subr.bf16.mxu1 %v7125_v24  ;;  %7174 = vmatprep.subr.bf16.mxu0 %v7173_v25  ;;  %v871_v24 = vld [vmem:[#allocation4 + $0x1d8] sm:$0xff]  ;;  %v7179_v25 = vpack.c.bf16 %v838_v22, %v822_v21 }
 0x1bc   : > { %v7181_v26 = vpack.c.bf16 %v871_v24, %v855_v23 }
 0x1be   : > { %7128 = vmatpush1.bf16.msra.mxu1 %v7127_v32  ;;  %7176 = vmatpush1.bf16.msra.mxu0 %v7175_v33  ;;  %v7185_v32 = vpack.c.bf16 %v903_v30, %v887_v29  ;;  %v886_v33 = vld [vmem:[#allocation4 + $0x250] sm:$0xff]  ;;  %v958_v29 = vsub.s32 3, %v8054_v1  ;;  %v955_v30 = vrot.slane %v940_v5, %v954_v27 }
 0x1bf   : > { %7146 = vmatprep.subr.bf16.mxu1 %v7145_v36  ;;  %7194 = vmatprep.subr.bf16.mxu0 %v7193_v37  ;;  %v935_v36 = vld [vmem:[#allocation4 + $0x3d8] sm:$0xff]  ;;  %v7187_v37 = vpack.c.bf16 %v902_v34, %v886_v33 }
 0x1c0   : > { %v7189_v38 = vpack.c.bf16 %v935_v36, %v919_v35 }
 0x1c1   : > { %6216 = vmatmul.mubr.msk.f32.vlgmr.msra.gmra.mrb[6].mxu1 %vm1024_vm2, %v8245_v60  ;;  %6219 = vmatmul.mubr.msk.f32.vlgmr.msra.gmra.mrb[6].mxu0 %vm1024_vm2, %v8245_v60 }
 0x1c2   : > { %7148 = vmatpush1.bf16.msra.mxu1 %v7147_v44  ;;  %7196 = vmatpush1.bf16.msra.mxu0 %v7195_v45  ;;  %v7209_v44 = vpack.c.bf16 %v843_v42, %v827_v41  ;;  %v826_v45 = vld [vmem:[#allocation4 + $0x70] sm:$0xff] }
 0x1c3   : > { %7150 = vmatprep.subr.bf16.mxu1 %v7149_v48  ;;  %7198 = vmatprep.subr.bf16.mxu0 %v7197_v49  ;;  %v875_v48 = vld [vmem:[#allocation4 + $0x1f8] sm:$0xff]  ;;  %v7211_v49 = vpack.c.bf16 %v842_v46, %v826_v45 }
 0x1c4   : > { %1305 = vmatprep.mubr.f32.mxu1 %v7686_v12  ;;  %1518 = vmatprep.mubr.f32.mxu0 %v7686_v12  ;;  %v7213_v50 = vpack.c.bf16 %v875_v48, %v859_v47 }
 0x1c6   : > { %7152 = vmatpush1.bf16.msra.mxu1 %v7151_v56  ;;  %7200 = vmatpush1.bf16.msra.mxu0 %v7199_v57  ;;  %v7217_v56 = vpack.c.bf16 %v907_v54, %v891_v53  ;;  %v890_v57 = vld [vmem:[#allocation4 + $0x270] sm:$0xff]  ;;  %v995_v54 = vrot.slane %v941_v28, %v962_v4 }
 0x1c7   : > { %7154 = vmatprep.subr.bf16.mxu1 %v7153_v61  ;;  %7202 = vmatprep.subr.bf16.mxu0 %v7201_v62  ;;  %v939_v61 = vld [vmem:[#allocation4 + $0x3f8] sm:$0xff]  ;;  %v7219_v62 = vpack.c.bf16 %v906_v58, %v890_v57 }
 0x1c8   : > { %v7221_v63 = vpack.c.bf16 %v939_v61, %v923_v59 }
 0x1ca   : > { %7156 = vmatpush1.bf16.msra.mxu1 %v7155_v6  ;;  %7204 = vmatpush1.bf16.msra.mxu0 %v7203_v7  ;;  %v950_v6 = vsub.s32 1, %v8054_v1  ;;  %v966_v7 = vsub.s32 5, %v8054_v1 }
 0x1cb   : > { %7158 = vmatprep.subr.bf16.mxu1 %v7157_v9  ;;  %7206 = vmatprep.subr.bf16.mxu0 %v7205_v10  ;;  %v963_v9 = vrot.slane %v940_v5, %v962_v4 }
 0x1cc   : > { %v951_v10 = vrot.slane %v940_v5, %v950_v6  ;;  %v967_v11 = vrot.slane %v940_v5, %v966_v7  ;;  %v983_v33 = vrot.slane %v941_v28, %v950_v6 }
 0x1ce   : > { %7160 = vmatpush1.bf16.msra.mxu1 %v7159_v18  ;;  %7208 = vmatpush1.bf16.msra.mxu0 %v7207_v19 }
 0x1cf   : > { %7178 = vmatprep.subr.bf16.mxu1 %v7177_v20 }
 0x1d1   : > { %6218 = vmatmul.mubr.msk.f32.vlgmr.msra.gmra.mrb[8].mxu1 %vm1024_vm2, %v8245_v60  ;;  %6221 = vmatmul.mubr.msk.f32.vlgmr.msra.gmra.mrb[8].mxu0 %vm1024_vm2, %v8245_v60 }
 0x1d2   : > { %7180 = vmatpush1.bf16.msra.mxu1 %v7179_v25  ;;  %1447 = vmatprep.mubr.f32.mxu1 %v7686_v12 }
 0x1d3   : > { %7182 = vmatprep.subr.bf16.mxu1 %v7181_v26 }
 0x1d6   : > { %7184 = vmatpush1.bf16.msra.mxu1 %v7183_v31 }
 0x1d7   : > { %7186 = vmatprep.subr.bf16.mxu1 %v7185_v32  ;;  %v959_v32 = vrot.slane %v940_v5, %v958_v29 }
 0x1da   : > { %7188 = vmatpush1.bf16.msra.mxu1 %v7187_v37 }
 0x1db   : > { %7190 = vmatprep.subr.bf16.mxu1 %v7189_v38 }
 0x1de   : > { %7192 = vmatpush1.bf16.msra.mxu1 %v7191_v43 }
 0x1df   : > { %7210 = vmatprep.subr.bf16.mxu1 %v7209_v44 }
 0x1e1   : > { %6220 = vmatmul.mubr.msk.f32.vlgmr.msra.gmra.mrb[10].mxu1 %vm1024_vm2, %v8245_v60 }
 0x1e2   : > { %7212 = vmatpush1.bf16.msra.mxu1 %v7211_v49  ;;  %1589 = vmatprep.mubr.f32.mxu1 %v7686_v12  ;;  %v946_v12 = vsub.s32 0, %v8054_v1 }
 0x1e3   : > { %7214 = vmatprep.subr.bf16.mxu1 %v7213_v50  ;;  %v970_v50 = vsub.s32 6, %v8054_v1 }
 0x1e4   : > { %v947_v8 = vrot.slane %v940_v5, %v946_v12  ;;  %v979_v31 = vrot.slane %v941_v28, %v946_v12 }
 0x1e5   : > { %v971_v53 = vrot.slane %v940_v5, %v970_v50 }
 0x1e6   : > { %7216 = vmatpush1.bf16.msra.mxu1 %v7215_v55  ;;  %v975_v55 = vrot.slane %v940_v5, %v974_v52 }
 0x1e7   : > { %7218 = vmatprep.subr.bf16.mxu1 %v7217_v56  ;;  %v999_v56 = vrot.slane %v941_v28, %v966_v7  ;;  %v987_v7 = vrot.slane %v941_v28, %v954_v27 }
 0x1ea   : > { %7220 = vmatpush1.bf16.msra.mxu1 %v7219_v62 }
 0x1eb   : > { %7222 = vmatprep.subr.bf16.mxu1 %v7221_v63 }
 0x1ee   : > { %7224 = vmatpush1.bf16.msra.mxu1 %v7223_v3 }
 0x1f1   : > { %6222 = vmatmul.mubr.msk.f32.vlgmr.msra.gmra.mrb[12].mxu1 %vm1024_vm2, %v8245_v60 }
 0x284   : > { %v1094_v13 = vpop.f32.mrb[4].mxu1  ;;  %v1236_v14 = vpop.f32.mrb[4].mxu0 }
 0x285   : > { %v1095_v16 = vadd.f32 %v1094_v13, %v947_v8  ;;  %v1237_v17 = vadd.f32 %v1236_v14, %v963_v9  ;;  %v1096_v18 = vpop.f32.mrb[5].mxu1  ;;  %v1238_v19 = vpop.f32.mrb[5].mxu0 }
 0x286   : > { %v1097_v60 = vadd.f32 %v1096_v18, %v951_v10  ;;  %v1239_v20 = vadd.f32 %v1238_v19, %v967_v11  ;;  %v991_v11 = vrot.slane %v941_v28, %v958_v29 }
 0x287   : > { %v1596_v21 = vmax.f32 %v1095_v16, 0.0  ;;  %v1600_v22 = vmax.f32 %v1237_v17, 0.0 }
 0x288   : > { %v1597_v23 = vmax.f32 %v1097_v60, 0.0  ;;  %v1601_v24 = vmax.f32 %v1239_v20, 0.0 }
 0x28a   : > { %v1628_v25 = vcombine.low %v1596_v21, %v1597_v23  ;;  %v1645_v26 = vcombine.low %v1600_v22, %v1601_v24  ;;  %v1003_v23 = vrot.slane %v941_v28, %v970_v50  ;;  %v1007_v24 = vrot.slane %v941_v28, %v974_v52 }
 0x28c   : > { %v1636_v48 = vrot.slane %v1628_v25, %v8081_v15  ;;  %v1653_v1 = vrot.slane %v1645_v26, %v8081_v15 }
 0x294   : > { %v1165_v34 = vpop.f32.mrb[6].mxu1  ;;  %v1378_v35 = vpop.f32.mrb[6].mxu0 }
 0x295   : > { %v1166_v36 = vadd.f32 %v1165_v34, %v955_v30  ;;  %v1379_v37 = vadd.f32 %v1378_v35, %v979_v31  ;;  %v1167_v38 = vpop.f32.mrb[7].mxu1  ;;  %v1380_v39 = vpop.f32.mrb[7].mxu0 }
 0x296   : > { %v1168_v40 = vadd.f32 %v1167_v38, %v959_v32  ;;  %v1381_v41 = vadd.f32 %v1380_v39, %v983_v33 }
 0x297   : > { %v1598_v42 = vmax.f32 %v1166_v36, 0.0  ;;  %v1604_v43 = vmax.f32 %v1379_v37, 0.0 }
 0x298   : > { %v1599_v44 = vmax.f32 %v1168_v40, 0.0  ;;  %v1605_v45 = vmax.f32 %v1381_v41, 0.0 }
 0x29a   : > { %v1629_v46 = vcombine.low %v1598_v42, %v1599_v44  ;;  %v1662_v47 = vcombine.low %v1604_v43, %v1605_v45 }
 0x29c   : > { %v1643_v49 = vrot.slane %v1629_v46, %v8081_v15  ;;  %v1670_v20 = vrot.slane %v1662_v47, %v8081_v15 }
 0x29e   : > { %v1644_v51 = vcombine.low %v1636_v48, %v1643_v49 }
 0x2a0   : > { %1700 = vst [vmem:[#allocation2] sm:$0xff] %v1644_v51 }
 0x2a4   : > { %v1307_v57 = vpop.f32.mrb[8].mxu1  ;;  %v1520_v58 = vpop.f32.mrb[8].mxu0 }
 0x2a5   : > { %v1308_v59 = vadd.f32 %v1307_v57, %v971_v53  ;;  %v1521_v61 = vadd.f32 %v1520_v58, %v995_v54  ;;  %v1309_v62 = vpop.f32.mrb[9].mxu1  ;;  %v1522_v63 = vpop.f32.mrb[9].mxu0 }
 0x2a6   : > { %v1310_v0 = vadd.f32 %v1309_v62, %v975_v55  ;;  %v1523_v2 = vadd.f32 %v1522_v63, %v999_v56 }
 0x2a7   : > { %v1602_v3 = vmax.f32 %v1308_v59, 0.0  ;;  %v1608_v12 = vmax.f32 %v1521_v61, 0.0 }
 0x2a8   : > { %v1603_v6 = vmax.f32 %v1310_v0, 0.0  ;;  %v1609_v8 = vmax.f32 %v1523_v2, 0.0 }
 0x2aa   : > { %v1646_v9 = vcombine.low %v1602_v3, %v1603_v6  ;;  %v1679_v10 = vcombine.low %v1608_v12, %v1609_v8 }
 0x2ac   : > { %v1660_v4 = vrot.slane %v1646_v9, %v8081_v15  ;;  %v1687_v33 = vrot.slane %v1679_v10, %v8081_v15 }
 0x2ae   : > { %v1661_v5 = vcombine.low %v1653_v1, %v1660_v4 }
 0x2b0   : > { %1701 = vst [vmem:[#allocation2 + $0x8] sm:$0xff] %v1661_v5 }
 0x2b4   : > { %v1449_v13 = vpop.f32.mrb[10].mxu1 }
 0x2b5   : > { %v1450_v14 = vadd.f32 %v1449_v13, %v987_v7  ;;  %v1451_v16 = vpop.f32.mrb[11].mxu1 }
 0x2b6   : > { %v1452_v17 = vadd.f32 %v1451_v16, %v991_v11 }
 0x2b7   : > { %v1606_v18 = vmax.f32 %v1450_v14, 0.0 }
 0x2b8   : > { %v1607_v19 = vmax.f32 %v1452_v17, 0.0 }
 0x2ba   : > { %v1663_v60 = vcombine.low %v1606_v18, %v1607_v19 }
 0x2bc   : > { %v1677_v21 = vrot.slane %v1663_v60, %v8081_v15 }
 0x2be   : > { %v1678_v22 = vcombine.low %v1670_v20, %v1677_v21 }
 0x2c0   : > { %1702 = vst [vmem:[#allocation2 + $0x10] sm:$0xff] %v1678_v22 }
 0x2c4   : > { %v1591_v25 = vpop.f32.mrb[12].mxu1 }
 0x2c5   : > { %v1592_v26 = vadd.f32 %v1591_v25, %v1003_v23  ;;  %v1593_v30 = vpop.f32.mrb[13].mxu1 }
 0x2c6   : > { %v1594_v27 = vadd.f32 %v1593_v30, %v1007_v24 }
 0x2c7   : > { %v1610_v29 = vmax.f32 %v1592_v26, 0.0 }
 0x2c8   : > { %v1611_v31 = vmax.f32 %v1594_v27, 0.0 }
 0x2ca   : > { %v1680_v32 = vcombine.low %v1610_v29, %v1611_v31 }
 0x2cc   : > { %v1694_v34 = vrot.slane %v1680_v32, %v8081_v15 }
 0x2ce   : > { %v1695_v35 = vcombine.low %v1687_v33, %v1694_v34 }
 0x2d0   : > { %1703 = vst [vmem:[#allocation2 + $0x18] sm:$0xff] %v1695_v35 }
 0x2d1 PF: > { %v1767_v28 = vld [vmem:[%s7915_s15] sm:$0xff]  ;;  %v1768_v37 = vld [vmem:[%s7915_s15 + $0x8] sm:$0xff]  ;;  %s6223_s8 = sshll.u32 %s7668_s27, 10  ;;  %v7690_v12 = vmov 1983009808   ;;  %v1719_v8 = vlaneseq  ;;  %p6737_p5 = scmp.ne.s32.totalorder %s7668_s27, 1 }
 0x2d2   : > { %v1771_v36 = vld [vmem:[%s7915_s15 + $0x20] sm:$0xff]  ;;  %v1772_v15 = vld [vmem:[%s7915_s15 + $0x28] sm:$0xff]  ;;  %v1717_v6 = vunpack.c.l.s4 %v7690_v12  ;;  %s8306_s13 = sshra.s32 %s6223_s8, 7  ;;  %s9366_s30 = sld [smem:[#allocation16_spill]] (!%p6737_p5)  ;;  %vm6075_vm3 = vcmask (!%p6737_p5), 74752  }
 0x2d3   : > { %v6226_v38 = vcombine.high %v1767_v28, %v1771_v36  ;;  %v6225_v39 = vcombine.low %v1767_v28, %v1771_v36  ;;  %v1775_v40 = vld [vmem:[%s7915_s15 + $0x40] sm:$0xff]  ;;  %v6228_v42 = vcombine.high %v1768_v37, %v1772_v15  ;;  %v6227_v43 = vcombine.low %v1768_v37, %v1772_v15  ;;  %v1776_v45 = vld [vmem:[%s7915_s15 + $0x48] sm:$0xff]  ;;  %s6224_s7 = sshll.u32 %s8306_s13, 1  ;;  %s9367_s16 = sld [smem:[#allocation17_spill]] (!%p6737_p5) }
 0x2d4   : > { %v1779_v41 = vld [vmem:[%s7915_s15 + $0x60] sm:$0xff]  ;;  %v1780_v46 = vld [vmem:[%s7915_s15 + $0x68] sm:$0xff]  ;;  %v1718_v14 = vunpack.c.0.s8 %v1717_v6  ;;  %v8310_v16 = vshrl.u32 %v1719_v8, 7  ;;  %s8322_s0 = scalar_lea.vmem [#allocation2], %s6224_s7 }
 0x2d5   : > { %v6234_v44 = vcombine.high %v1775_v40, %v1779_v41  ;;  %v1783_v47 = vld [vmem:[%s7915_s15 + $0x80] sm:$0xff]  ;;  %4839 = vmatprep.subr.bf16.mxu0 %v6226_v38  ;;  %v6236_v48 = vcombine.high %v1776_v45, %v1780_v46  ;;  %v1784_v50 = vld [vmem:[%s7915_s15 + $0x88] sm:$0xff]  ;;  %5003 = vmatprep.subr.bf16.mxu1 %v6228_v42  ;;  %v6233_v52 = vcombine.low %v1775_v40, %v1779_v41 }
 0x2d6   : > { %v1787_v49 = vld [vmem:[%s7915_s15 + $0xa0] sm:$0xff]  ;;  %v1788_v51 = vld [vmem:[%s7915_s15 + $0xa8] sm:$0xff]  ;;  %4840 = vmatpush1.bf16.msra.mxu0 %v6225_v39  ;;  %5004 = vmatpush1.bf16.msra.mxu1 %v6227_v43  ;;  %v6235_v53 = vcombine.low %v1776_v45, %v1780_v46  ;;  %v8318_v24 = vsub.s32 %v1718_v14, %v8310_v16 }
 0x2d7   : > { %4841 = vmatprep.subr.bf16.mxu0 %v6234_v44  ;;  %v6242_v54 = vcombine.high %v1783_v47, %v1787_v49  ;;  %5005 = vmatprep.subr.bf16.mxu1 %v6236_v48  ;;  %v6244_v55 = vcombine.high %v1784_v50, %v1788_v51  ;;  %v1791_v56 = vld [vmem:[%s7915_s15 + $0xc0] sm:$0xff]  ;;  %v1792_v58 = vld [vmem:[%s7915_s15 + $0xc8] sm:$0xff]  ;;  %v6241_v61 = vcombine.low %v1783_v47, %v1787_v49 }
 0x2d8   : > { %v1795_v57 = vld [vmem:[%s7915_s15 + $0xe0] sm:$0xff]  ;;  %v1796_v59 = vld [vmem:[%s7915_s15 + $0xe8] sm:$0xff]  ;;  %v6243_v62 = vcombine.low %v1784_v50, %v1788_v51 }
 0x2d9   : > { %v6250_v63 = vcombine.high %v1791_v56, %v1795_v57  ;;  %v6252_v0 = vcombine.high %v1792_v58, %v1796_v59  ;;  %v1799_v2 = vld [vmem:[%s7915_s15 + $0x100] sm:$0xff]  ;;  %v1800_v9 = vld [vmem:[%s7915_s15 + $0x108] sm:$0xff]  ;;  %v6249_v1 = vcombine.low %v1791_v56, %v1795_v57  ;;  %v6251_v4 = vcombine.low %v1792_v58, %v1796_v59 }
 0x2da   : > { %4842 = vmatpush1.bf16.msra.mxu0 %v6233_v52  ;;  %5006 = vmatpush1.bf16.msra.mxu1 %v6235_v53  ;;  %v1803_v3 = vld [vmem:[%s7915_s15 + $0x120] sm:$0xff]  ;;  %v1804_v10 = vld [vmem:[%s7915_s15 + $0x128] sm:$0xff] }
 0x2db   : > { %4843 = vmatprep.subr.bf16.mxu0 %v6242_v54  ;;  %5007 = vmatprep.subr.bf16.mxu1 %v6244_v55  ;;  %v6258_v5 = vcombine.high %v1799_v2, %v1803_v3  ;;  %v6260_v7 = vcombine.high %v1800_v9, %v1804_v10  ;;  %v1807_v11 = vld [vmem:[%s7915_s15 + $0x140] sm:$0xff]  ;;  %v1808_v17 = vld [vmem:[%s7915_s15 + $0x148] sm:$0xff]  ;;  %v6257_v19 = vcombine.low %v1799_v2, %v1803_v3 }
 0x2dc   : > { %v1811_v13 = vld [vmem:[%s7915_s15 + $0x160] sm:$0xff]  ;;  %v1812_v18 = vld [vmem:[%s7915_s15 + $0x168] sm:$0xff]  ;;  %v6259_v60 = vcombine.low %v1800_v9, %v1804_v10 }
 0x2dd   : > { %v6266_v20 = vcombine.high %v1807_v11, %v1811_v13  ;;  %v6268_v21 = vcombine.high %v1808_v17, %v1812_v18  ;;  %v1815_v22 = vld [vmem:[%s7915_s15 + $0x180] sm:$0xff]  ;;  %v1816_v25 = vld [vmem:[%s7915_s15 + $0x188] sm:$0xff]  ;;  %v6265_v30 = vcombine.low %v1807_v11, %v1811_v13  ;;  %v6267_v27 = vcombine.low %v1808_v17, %v1812_v18 }
 0x2de   : > { %4844 = vmatpush1.bf16.msra.mxu0 %v6241_v61  ;;  %5008 = vmatpush1.bf16.msra.mxu1 %v6243_v62  ;;  %v1819_v23 = vld [vmem:[%s7915_s15 + $0x1a0] sm:$0xff]  ;;  %v1820_v26 = vld [vmem:[%s7915_s15 + $0x1a8] sm:$0xff] }
 0x2df   : > { %4845 = vmatprep.subr.bf16.mxu0 %v6250_v63  ;;  %5009 = vmatprep.subr.bf16.mxu1 %v6252_v0  ;;  %v6274_v29 = vcombine.high %v1815_v22, %v1819_v23  ;;  %v8325_v31 = vld [vmem:[%s8322_s0] sm:$0xff]  ;;  %v6276_v32 = vcombine.high %v1816_v25, %v1820_v26  ;;  %v1824_v28 = vld [vmem:[%s7915_s15 + $0x1c8] sm:$0xff]  ;;  %v6273_v37 = vcombine.low %v1815_v22, %v1819_v23 }
 0x2e0   : > { %v1823_v33 = vld [vmem:[%s7915_s15 + $0x1c0] sm:$0xff]  ;;  %v8331_v35 = vrot.slane %v8325_v31, %v8318_v24  ;;  %v1828_v36 = vld [vmem:[%s7915_s15 + $0x1e8] sm:$0xff]  ;;  %v6275_v15 = vcombine.low %v1816_v25, %v1820_v26 }
 0x2e1   : > { %v1827_v34 = vld [vmem:[%s7915_s15 + $0x1e0] sm:$0xff]  ;;  %v6284_v40 = vcombine.high %v1824_v28, %v1828_v36  ;;  %v1832_v44 = vld [vmem:[%s7915_s15 + $0x208] sm:$0xff]  ;;  %v6283_v47 = vcombine.low %v1824_v28, %v1828_v36 }
 0x2e2   : > { %4846 = vmatpush1.bf16.msra.mxu0 %v6249_v1  ;;  %5010 = vmatpush1.bf16.msra.mxu1 %v6251_v4  ;;  %v1730_v38 = vcombine.high %v8331_v35, %v8331_v35  ;;  %v6282_v39 = vcombine.high %v1823_v33, %v1827_v34  ;;  %v1831_v41 = vld [vmem:[%s7915_s15 + $0x200] sm:$0xff]  ;;  %v1836_v45 = vld [vmem:[%s7915_s15 + $0x228] sm:$0xff]  ;;  %v6281_v46 = vcombine.low %v1823_v33, %v1827_v34 }
 0x2e3   : > { %4847 = vmatprep.subr.bf16.mxu0 %v6258_v5  ;;  %5011 = vmatprep.subr.bf16.mxu1 %v6260_v7  ;;  %v1835_v42 = vld [vmem:[%s7915_s15 + $0x220] sm:$0xff]  ;;  %v6292_v49 = vcombine.high %v1832_v44, %v1836_v45  ;;  %v1840_v52 = vld [vmem:[%s7915_s15 + $0x248] sm:$0xff]  ;;  %v6291_v55 = vcombine.low %v1832_v44, %v1836_v45 }
 0x2e4   : > { %v8339_v43 = vpack.c.bf16 %v1730_v38, %v1730_v38  ;;  %v6290_v48 = vcombine.high %v1831_v41, %v1835_v42  ;;  %v1839_v50 = vld [vmem:[%s7915_s15 + $0x240] sm:$0xff]  ;;  %v1844_v53 = vld [vmem:[%s7915_s15 + $0x268] sm:$0xff]  ;;  %v6289_v54 = vcombine.low %v1831_v41, %v1835_v42 }
 0x2e5   : > { %v1843_v51 = vld [vmem:[%s7915_s15 + $0x260] sm:$0xff]  ;;  %v6300_v57 = vcombine.high %v1840_v52, %v1844_v53  ;;  %v1848_v61 = vld [vmem:[%s7915_s15 + $0x288] sm:$0xff]  ;;  %v6299_v0 = vcombine.low %v1840_v52, %v1844_v53 }
 0x2e6   : > { %4848 = vmatpush1.bf16.msra.mxu0 %v6257_v19  ;;  %5012 = vmatpush1.bf16.msra.mxu1 %v6259_v60  ;;  %v6298_v56 = vcombine.high %v1839_v50, %v1843_v51  ;;  %v1847_v58 = vld [vmem:[%s7915_s15 + $0x280] sm:$0xff]  ;;  %v1852_v62 = vld [vmem:[%s7915_s15 + $0x2a8] sm:$0xff]  ;;  %v6297_v63 = vcombine.low %v1839_v50, %v1843_v51 }
 0x2e7   : > { %4849 = vmatprep.subr.bf16.mxu0 %v6266_v20  ;;  %5013 = vmatprep.subr.bf16.mxu1 %v6268_v21  ;;  %v1851_v59 = vld [vmem:[%s7915_s15 + $0x2a0] sm:$0xff]  ;;  %v6308_v3 = vcombine.high %v1848_v61, %v1852_v62  ;;  %v1856_v8 = vld [vmem:[%s7915_s15 + $0x2c8] sm:$0xff]  ;;  %v6307_v1 = vcombine.low %v1848_v61, %v1852_v62 }
 0x2e8   : > { %4871 = vmatprep.mubr.bf16.mxu0 %v8339_v43  ;;  %5035 = vmatprep.mubr.bf16.mxu1 %v8339_v43  ;;  %v6306_v2 = vcombine.high %v1847_v58, %v1851_v59  ;;  %v1855_v12 = vld [vmem:[%s7915_s15 + $0x2c0] sm:$0xff]  ;;  %v1860_v9 = vld [vmem:[%s7915_s15 + $0x2e8] sm:$0xff]  ;;  %v6305_v10 = vcombine.low %v1847_v58, %v1851_v59  ;;  %v8388_v59 = vpack.c.bf16 %v8331_v35, %v8331_v35 }
 0x2e9   : > { %v1859_v6 = vld [vmem:[%s7915_s15 + $0x2e0] sm:$0xff]  ;;  %v6316_v5 = vcombine.high %v1856_v8, %v1860_v9  ;;  %v1864_v13 = vld [vmem:[%s7915_s15 + $0x308] sm:$0xff]  ;;  %v6315_v18 = vcombine.low %v1856_v8, %v1860_v9 }
 0x2ea   : > { %4850 = vmatpush1.bf16.msra.mxu0 %v6265_v30  ;;  %5014 = vmatpush1.bf16.msra.mxu1 %v6267_v27  ;;  %v6314_v4 = vcombine.high %v1855_v12, %v1859_v6  ;;  %v1863_v7 = vld [vmem:[%s7915_s15 + $0x300] sm:$0xff]  ;;  %v1868_v14 = vld [vmem:[%s7915_s15 + $0x328] sm:$0xff]  ;;  %v6313_v17 = vcombine.low %v1855_v12, %v1859_v6 }
 0x2eb   : > { %4851 = vmatprep.subr.bf16.mxu0 %v6274_v29  ;;  %5015 = vmatprep.subr.bf16.mxu1 %v6276_v32  ;;  %v1867_v11 = vld [vmem:[%s7915_s15 + $0x320] sm:$0xff]  ;;  %v6324_v60 = vcombine.high %v1864_v13, %v1868_v14  ;;  %v1872_v22 = vld [vmem:[%s7915_s15 + $0x348] sm:$0xff]  ;;  %v6323_v26 = vcombine.low %v1864_v13, %v1868_v14 }
 0x2ec   : > { %v6322_v19 = vcombine.high %v1863_v7, %v1867_v11  ;;  %v1871_v20 = vld [vmem:[%s7915_s15 + $0x340] sm:$0xff]  ;;  %v1876_v23 = vld [vmem:[%s7915_s15 + $0x368] sm:$0xff]  ;;  %v6321_v25 = vcombine.low %v1863_v7, %v1867_v11 }
 0x2ed   : > { %v1875_v21 = vld [vmem:[%s7915_s15 + $0x360] sm:$0xff]  ;;  %v6332_v27 = vcombine.high %v1872_v22, %v1876_v23  ;;  %v1880_v33 = vld [vmem:[%s7915_s15 + $0x388] sm:$0xff]  ;;  %v6331_v36 = vcombine.low %v1872_v22, %v1876_v23 }
 0x2ee   : > { %4852 = vmatpush1.bf16.msra.mxu0 %v6273_v37  ;;  %5016 = vmatpush1.bf16.msra.mxu1 %v6275_v15  ;;  %v6330_v30 = vcombine.high %v1871_v20, %v1875_v21  ;;  %v1879_v29 = vld [vmem:[%s7915_s15 + $0x380] sm:$0xff]  ;;  %v1884_v34 = vld [vmem:[%s7915_s15 + $0x3a8] sm:$0xff]  ;;  %v6329_v28 = vcombine.low %v1871_v20, %v1875_v21 }
 0x2ef   : > { %4853 = vmatprep.subr.bf16.mxu0 %v6282_v39  ;;  %5017 = vmatprep.subr.bf16.mxu1 %v6284_v40  ;;  %v1883_v32 = vld [vmem:[%s7915_s15 + $0x3a0] sm:$0xff]  ;;  %v6340_v38 = vcombine.high %v1880_v33, %v1884_v34  ;;  %v1715_v40 = vcombine.high %v8325_v31, %v8325_v31  ;;  %v1888_v41 = vld [vmem:[%s7915_s15 + $0x3c8] sm:$0xff]  ;;  %v6339_v45 = vcombine.low %v1880_v33, %v1884_v34 }
 0x2f0   : > { %v6338_v37 = vcombine.high %v1879_v29, %v1883_v32  ;;  %v1887_v15 = vld [vmem:[%s7915_s15 + $0x3c0] sm:$0xff]  ;;  %v1892_v42 = vld [vmem:[%s7915_s15 + $0x3e8] sm:$0xff]  ;;  %v6337_v44 = vcombine.low %v1879_v29, %v1883_v32 }
 0x2f1   : > { %v1891_v39 = vld [vmem:[%s7915_s15 + $0x3e0] sm:$0xff]  ;;  %v8378_v50 = vrot.slane %v1715_v40, %v8318_v24  ;;  %v1896_v31 = vld [vmem:[%s7915_s15 + $0x408] sm:$0xff]  ;;  %v6347_v53 = vcombine.low %v1888_v41, %v1892_v42 }
 0x2f2   : > { %4854 = vmatpush1.bf16.msra.mxu0 %v6281_v46  ;;  %5018 = vmatpush1.bf16.msra.mxu1 %v6283_v47  ;;  %v6346_v46 = vcombine.high %v1887_v15, %v1891_v39  ;;  %v6348_v47 = vcombine.high %v1888_v41, %v1892_v42  ;;  %v1900_v51 = vld [vmem:[%s7915_s15 + $0x428] sm:$0xff]  ;;  %v6345_v52 = vcombine.low %v1887_v15, %v1891_v39  ;;  %v1911_v12 = vld [vmem:[%s7915_s15 + $0x480] sm:$0xff] }
 0x2f3   : > { %4855 = vmatprep.subr.bf16.mxu0 %v6290_v48  ;;  %5019 = vmatprep.subr.bf16.mxu1 %v6292_v49  ;;  %v1895_v48 = vld [vmem:[%s7915_s15 + $0x400] sm:$0xff]  ;;  %v1731_v58 = vcombine.high %v8378_v50, %v8378_v50  ;;  %v1904_v61 = vld [vmem:[%s7915_s15 + $0x448] sm:$0xff] }
 0x2f4   : > { %v1899_v49 = vld [vmem:[%s7915_s15 + $0x420] sm:$0xff]  ;;  %v1908_v62 = vld [vmem:[%s7915_s15 + $0x468] sm:$0xff] }
 0x2f5   : > { %v1915_v6 = vld [vmem:[%s7915_s15 + $0x4a0] sm:$0xff]  ;;  %v8394_v8 = vpack.c.bf16 %v1731_v58, %v1731_v58  ;;  %v1912_v35 = vld [vmem:[%s7915_s15 + $0x488] sm:$0xff] }
 0x2f6   : > { %4856 = vmatpush1.bf16.msra.mxu0 %v6289_v54  ;;  %5020 = vmatpush1.bf16.msra.mxu1 %v6291_v55  ;;  %v6354_v54 = vcombine.high %v1895_v48, %v1899_v49  ;;  %v6356_v55 = vcombine.high %v1896_v31, %v1900_v51  ;;  %v1916_v9 = vld [vmem:[%s7915_s15 + $0x4a8] sm:$0xff]  ;;  %v1919_v7 = vld [vmem:[%s7915_s15 + $0x4c0] sm:$0xff] }
 0x2f7   : > { %4857 = vmatprep.subr.bf16.mxu0 %v6298_v56  ;;  %5021 = vmatprep.subr.bf16.mxu1 %v6300_v57  ;;  %v1903_v56 = vld [vmem:[%s7915_s15 + $0x440] sm:$0xff]  ;;  %v1920_v13 = vld [vmem:[%s7915_s15 + $0x4c8] sm:$0xff] }
 0x2f8   : > { %v1907_v57 = vld [vmem:[%s7915_s15 + $0x460] sm:$0xff]  ;;  %v1924_v14 = vld [vmem:[%s7915_s15 + $0x4e8] sm:$0xff] }
 0x2f9   : > { %v1923_v11 = vld [vmem:[%s7915_s15 + $0x4e0] sm:$0xff]  ;;  %v1928_v22 = vld [vmem:[%s7915_s15 + $0x508] sm:$0xff] }
 0x2fa   : > { %4858 = vmatpush1.bf16.msra.mxu0 %v6297_v63  ;;  %5022 = vmatpush1.bf16.msra.mxu1 %v6299_v0  ;;  %v6353_v63 = vcombine.low %v1895_v48, %v1899_v49  ;;  %v6355_v0 = vcombine.low %v1896_v31, %v1900_v51  ;;  %v1927_v20 = vld [vmem:[%s7915_s15 + $0x500] sm:$0xff]  ;;  %v1932_v23 = vld [vmem:[%s7915_s15 + $0x528] sm:$0xff] }
 0x2fb   : > { %4859 = vmatprep.subr.bf16.mxu0 %v6306_v2  ;;  %5023 = vmatprep.subr.bf16.mxu1 %v6308_v3  ;;  %v6362_v2 = vcombine.high %v1903_v56, %v1907_v57  ;;  %v6364_v3 = vcombine.high %v1904_v61, %v1908_v62  ;;  %v1931_v21 = vld [vmem:[%s7915_s15 + $0x520] sm:$0xff]  ;;  %v1936_v33 = vld [vmem:[%s7915_s15 + $0x548] sm:$0xff] }
 0x2fc   : > { %v1935_v29 = vld [vmem:[%s7915_s15 + $0x540] sm:$0xff]  ;;  %v1940_v34 = vld [vmem:[%s7915_s15 + $0x568] sm:$0xff] }
 0x2fd   : > { %v1939_v32 = vld [vmem:[%s7915_s15 + $0x560] sm:$0xff]  ;;  %v1944_v40 = vld [vmem:[%s7915_s15 + $0x588] sm:$0xff] }
 0x2fe   : > { %4860 = vmatpush1.bf16.msra.mxu0 %v6305_v10  ;;  %5024 = vmatpush1.bf16.msra.mxu1 %v6307_v1  ;;  %v6361_v10 = vcombine.low %v1903_v56, %v1907_v57  ;;  %v6363_v1 = vcombine.low %v1904_v61, %v1908_v62  ;;  %v1943_v15 = vld [vmem:[%s7915_s15 + $0x580] sm:$0xff]  ;;  %v1948_v41 = vld [vmem:[%s7915_s15 + $0x5a8] sm:$0xff]  ;;  %v6393_v42 = vcombine.low %v1935_v29, %v1939_v32 }
 0x2ff   : > { %4861 = vmatprep.subr.bf16.mxu0 %v6314_v4  ;;  %5025 = vmatprep.subr.bf16.mxu1 %v6316_v5  ;;  %v6370_v4 = vcombine.high %v1911_v12, %v1915_v6  ;;  %v6372_v5 = vcombine.high %v1912_v35, %v1916_v9  ;;  %v1947_v39 = vld [vmem:[%s7915_s15 + $0x5a0] sm:$0xff]  ;;  %v1952_v49 = vld [vmem:[%s7915_s15 + $0x5c8] sm:$0xff] }
 0x300   : > { %v1955_v48 = vld [vmem:[%s7915_s15 + $0x5e0] sm:$0xff]  ;;  %v1956_v31 = vld [vmem:[%s7915_s15 + $0x5e8] sm:$0xff]  ;;  %v6401_v51 = vcombine.low %v1943_v15, %v1947_v39 }
 0x301   : > { %v1963_v56 = vld [vmem:[%s7915_s15 + $0x620] sm:$0xff]  ;;  %v1960_v57 = vld [vmem:[%s7915_s15 + $0x608] sm:$0xff]  ;;  %v6411_v62 = vcombine.low %v1952_v49, %v1956_v31 }
 0x302   : > { %4862 = vmatpush1.bf16.msra.mxu0 %v6313_v17  ;;  %5026 = vmatpush1.bf16.msra.mxu1 %v6315_v18  ;;  %v6369_v17 = vcombine.low %v1911_v12, %v1915_v6  ;;  %v6371_v18 = vcombine.low %v1912_v35, %v1916_v9  ;;  %v1964_v58 = vld [vmem:[%s7915_s15 + $0x628] sm:$0xff] }
 0x303   : > { %4863 = vmatprep.subr.bf16.mxu0 %v6322_v19  ;;  %5027 = vmatprep.subr.bf16.mxu1 %v6324_v60  ;;  %v6378_v19 = vcombine.high %v1919_v7, %v1923_v11  ;;  %v6380_v60 = vcombine.high %v1920_v13, %v1924_v14  ;;  %v1968_v12 = vld [vmem:[%s7915_s15 + $0x648] sm:$0xff]  ;;  %v6419_v9 = vcombine.low %v1960_v57, %v1964_v58 }
 0x304   : > { %v1972_v6 = vld [vmem:[%s7915_s15 + $0x668] sm:$0xff] }
 0x306   : > { %4864 = vmatpush1.bf16.msra.mxu0 %v6321_v25  ;;  %5028 = vmatpush1.bf16.msra.mxu1 %v6323_v26  ;;  %v6377_v25 = vcombine.low %v1919_v7, %v1923_v11  ;;  %v6379_v26 = vcombine.low %v1920_v13, %v1924_v14  ;;  %v1976_v7 = vld [vmem:[%s7915_s15 + $0x688] sm:$0xff]  ;;  %v6427_v14 = vcombine.low %v1968_v12, %v1972_v6 }
 0x307   : > { %4865 = vmatprep.subr.bf16.mxu0 %v6330_v30  ;;  %5029 = vmatprep.subr.bf16.mxu1 %v6332_v27  ;;  %v6386_v30 = vcombine.high %v1927_v20, %v1931_v21  ;;  %v6388_v27 = vcombine.high %v1928_v22, %v1932_v23  ;;  %v1980_v11 = vld [vmem:[%s7915_s15 + $0x6a8] sm:$0xff] }
 0x30a   : > { %4866 = vmatpush1.bf16.msra.mxu0 %v6329_v28  ;;  %5030 = vmatpush1.bf16.msra.mxu1 %v6331_v36  ;;  %v6385_v28 = vcombine.low %v1927_v20, %v1931_v21  ;;  %v6387_v36 = vcombine.low %v1928_v22, %v1932_v23  ;;  %v1984_v20 = vld [vmem:[%s7915_s15 + $0x6c8] sm:$0xff]  ;;  %v6435_v23 = vcombine.low %v1976_v7, %v1980_v11 }
 0x30b   : > { %4867 = vmatprep.subr.bf16.mxu0 %v6338_v37  ;;  %5031 = vmatprep.subr.bf16.mxu1 %v6340_v38  ;;  %v6394_v37 = vcombine.high %v1935_v29, %v1939_v32  ;;  %v6396_v38 = vcombine.high %v1936_v33, %v1940_v34  ;;  %v1988_v21 = vld [vmem:[%s7915_s15 + $0x6e8] sm:$0xff] }
 0x30c   : > { %v1992_v29 = vld [vmem:[%s7915_s15 + $0x708] sm:$0xff] }
 0x30d   : > { %v1996_v32 = vld [vmem:[%s7915_s15 + $0x728] sm:$0xff] }
 0x30e   : > { %4868 = vmatpush1.bf16.msra.mxu0 %v6337_v44  ;;  %5032 = vmatpush1.bf16.msra.mxu1 %v6339_v45  ;;  %v6395_v44 = vcombine.low %v1936_v33, %v1940_v34  ;;  %v6402_v45 = vcombine.high %v1943_v15, %v1947_v39  ;;  %v6443_v34 = vcombine.low %v1984_v20, %v1988_v21  ;;  %v2000_v15 = vld [vmem:[%s7915_s15 + $0x748] sm:$0xff] }
 0x30f   : > { %4869 = vmatprep.subr.bf16.mxu0 %v6346_v46  ;;  %5033 = vmatprep.subr.bf16.mxu1 %v6348_v47  ;;  %v6404_v46 = vcombine.high %v1944_v40, %v1948_v41  ;;  %v1951_v47 = vld [vmem:[%s7915_s15 + $0x5c0] sm:$0xff]  ;;  %v2004_v39 = vld [vmem:[%s7915_s15 + $0x768] sm:$0xff] }
 0x310   : > { %v6409_v61 = vcombine.low %v1951_v47, %v1955_v48 }
 0x312   : > { %4870 = vmatpush1.bf16.msra.mxu0 %v6345_v52  ;;  %5034 = vmatpush1.bf16.msra.mxu1 %v6347_v53  ;;  %v6403_v52 = vcombine.low %v1944_v40, %v1948_v41  ;;  %v6410_v53 = vcombine.high %v1951_v47, %v1955_v48  ;;  %v6451_v41 = vcombine.low %v1992_v29, %v1996_v32  ;;  %v2008_v47 = vld [vmem:[%s7915_s15 + $0x788] sm:$0xff] }
 0x313   : > { %4880 = vmatprep.subr.bf16.mxu0 %v6354_v54  ;;  %5044 = vmatprep.subr.bf16.mxu1 %v6356_v55  ;;  %v6412_v54 = vcombine.high %v1952_v49, %v1956_v31  ;;  %v1959_v55 = vld [vmem:[%s7915_s15 + $0x600] sm:$0xff]  ;;  %v2012_v48 = vld [vmem:[%s7915_s15 + $0x7a8] sm:$0xff]  ;;  %v6459_v31 = vcombine.low %v2000_v15, %v2004_v39 }
 0x314   : > { %v6417_v35 = vcombine.low %v1959_v55, %v1963_v56 }
 0x315   : > { %4872 = vmatmul.mubr.bf16.vlgmr.msra.gmra.mrb[0].mxu0 %v8388_v59  ;;  %5036 = vmatmul.mubr.bf16.vlgmr.msra.gmra.mrb[0].mxu1 %v8388_v59 }
 0x316   : > { %4881 = vmatpush1.bf16.msra.mxu0 %v6353_v63  ;;  %5045 = vmatpush1.bf16.msra.mxu1 %v6355_v0  ;;  %v6418_v63 = vcombine.high %v1959_v55, %v1963_v56  ;;  %v6420_v0 = vcombine.high %v1960_v57, %v1964_v58  ;;  %v2016_v55 = vld [vmem:[%s7915_s15 + $0x7c8] sm:$0xff] }
 0x317   : > { %4882 = vmatprep.subr.bf16.mxu0 %v6362_v2  ;;  %5046 = vmatprep.subr.bf16.mxu1 %v6364_v3  ;;  %v1967_v2 = vld [vmem:[%s7915_s15 + $0x640] sm:$0xff]  ;;  %v2020_v56 = vld [vmem:[%s7915_s15 + $0x7e8] sm:$0xff] }
 0x318   : > { %4912 = vmatprep.mubr.bf16.mxu0 %v8394_v8  ;;  %5076 = vmatprep.mubr.bf16.mxu1 %v8394_v8  ;;  %v1971_v3 = vld [vmem:[%s7915_s15 + $0x660] sm:$0xff]  ;;  %v8455_v57 = vld [vmem:[%s8322_s0 + $0x8] sm:$0xff] }
 0x319   : > { %v6425_v13 = vcombine.low %v1967_v2, %v1971_v3 }
 0x31a   : > { %4883 = vmatpush1.bf16.msra.mxu0 %v6361_v10  ;;  %5047 = vmatpush1.bf16.msra.mxu1 %v6363_v1  ;;  %v6426_v10 = vcombine.high %v1967_v2, %v1971_v3  ;;  %v6428_v1 = vcombine.high %v1968_v12, %v1972_v6  ;;  %v2027_v2 = vld [vmem:[%s7915_s15 + $0x820] sm:$0xff]  ;;  %v8461_v3 = vrot.slane %v8455_v57, %v8318_v24  ;;  %v2024_v12 = vld [vmem:[%s7915_s15 + $0x808] sm:$0xff] }
 0x31b   : > { %4884 = vmatprep.subr.bf16.mxu0 %v6370_v4  ;;  %5048 = vmatprep.subr.bf16.mxu1 %v6372_v5  ;;  %v1975_v4 = vld [vmem:[%s7915_s15 + $0x680] sm:$0xff]  ;;  %v2028_v6 = vld [vmem:[%s7915_s15 + $0x828] sm:$0xff] }
 0x31c   : > { %v1979_v5 = vld [vmem:[%s7915_s15 + $0x6a0] sm:$0xff] }
 0x31d   : > { %v6433_v22 = vcombine.low %v1975_v4, %v1979_v5 }
 0x31e   : > { %4885 = vmatpush1.bf16.msra.mxu0 %v6369_v17  ;;  %5049 = vmatpush1.bf16.msra.mxu1 %v6371_v18  ;;  %v6434_v17 = vcombine.high %v1975_v4, %v1979_v5  ;;  %v6436_v18 = vcombine.high %v1976_v7, %v1980_v11  ;;  %v2031_v4 = vld [vmem:[%s7915_s15 + $0x840] sm:$0xff]  ;;  %v1747_v7 = vcombine.high %v8461_v3, %v8461_v3 }
 0x31f   : > { %4886 = vmatprep.subr.bf16.mxu0 %v6378_v19  ;;  %5050 = vmatprep.subr.bf16.mxu1 %v6380_v60  ;;  %v1983_v19 = vld [vmem:[%s7915_s15 + $0x6c0] sm:$0xff]  ;;  %v8471_v11 = vpack.c.bf16 %v8378_v50, %v8378_v50  ;;  %v2040_v50 = vld [vmem:[%s7915_s15 + $0x888] sm:$0xff] }
 0x320   : > { %v1987_v60 = vld [vmem:[%s7915_s15 + $0x6e0] sm:$0xff] }
 0x321   : > { %v6441_v33 = vcombine.low %v1983_v19, %v1987_v60  ;;  %v2035_v5 = vld [vmem:[%s7915_s15 + $0x860] sm:$0xff] }
 0x322   : > { %4887 = vmatpush1.bf16.msra.mxu0 %v6377_v25  ;;  %5051 = vmatpush1.bf16.msra.mxu1 %v6379_v26  ;;  %v6442_v25 = vcombine.high %v1983_v19, %v1987_v60  ;;  %v6444_v26 = vcombine.high %v1984_v20, %v1988_v21  ;;  %v6490_v19 = vcombine.high %v2031_v4, %v2035_v5  ;;  %v2039_v20 = vld [vmem:[%s7915_s15 + $0x880] sm:$0xff] }
 0x323   : > { %4888 = vmatprep.subr.bf16.mxu0 %v6386_v30  ;;  %5052 = vmatprep.subr.bf16.mxu1 %v6388_v27  ;;  %v1991_v30 = vld [vmem:[%s7915_s15 + $0x700] sm:$0xff] }
 0x324   : > { %v1995_v27 = vld [vmem:[%s7915_s15 + $0x720] sm:$0xff] }
 0x325   : > { %v6449_v40 = vcombine.low %v1991_v30, %v1995_v27  ;;  %v2043_v21 = vld [vmem:[%s7915_s15 + $0x8a0] sm:$0xff] }
 0x326   : > { %4889 = vmatpush1.bf16.msra.mxu0 %v6385_v28  ;;  %5053 = vmatpush1.bf16.msra.mxu1 %v6387_v36  ;;  %v6450_v28 = vcombine.high %v1991_v30, %v1995_v27  ;;  %v6452_v36 = vcombine.high %v1992_v29, %v1996_v32  ;;  %v6498_v30 = vcombine.high %v2039_v20, %v2043_v21  ;;  %v2047_v29 = vld [vmem:[%s7915_s15 + $0x8c0] sm:$0xff] }
 0x327   : > { %4890 = vmatprep.subr.bf16.mxu0 %v6394_v37  ;;  %5054 = vmatprep.subr.bf16.mxu1 %v6396_v38  ;;  %v1999_v37 = vld [vmem:[%s7915_s15 + $0x740] sm:$0xff] }
 0x328   : > { %v2003_v38 = vld [vmem:[%s7915_s15 + $0x760] sm:$0xff] }
 0x329   : > { %v6457_v49 = vcombine.low %v1999_v37, %v2003_v38  ;;  %v2051_v32 = vld [vmem:[%s7915_s15 + $0x8e0] sm:$0xff] }
 0x32a   : > { %4891 = vmatpush1.bf16.msra.mxu0 %v6393_v42  ;;  %5055 = vmatpush1.bf16.msra.mxu1 %v6395_v44  ;;  %v6458_v42 = vcombine.high %v1999_v37, %v2003_v38  ;;  %v6460_v44 = vcombine.high %v2000_v15, %v2004_v39  ;;  %v6506_v37 = vcombine.high %v2047_v29, %v2051_v32  ;;  %v2055_v15 = vld [vmem:[%s7915_s15 + $0x900] sm:$0xff] }
 0x32b   : > { %4892 = vmatprep.subr.bf16.mxu0 %v6402_v45  ;;  %5056 = vmatprep.subr.bf16.mxu1 %v6404_v46  ;;  %v2007_v45 = vld [vmem:[%s7915_s15 + $0x780] sm:$0xff] }
 0x32c   : > { %v2011_v46 = vld [vmem:[%s7915_s15 + $0x7a0] sm:$0xff] }
 0x32d   : > { %v6465_v58 = vcombine.low %v2007_v45, %v2011_v46  ;;  %v2059_v39 = vld [vmem:[%s7915_s15 + $0x920] sm:$0xff] }
 0x32e   : > { %4893 = vmatpush1.bf16.msra.mxu0 %v6401_v51  ;;  %5057 = vmatpush1.bf16.msra.mxu1 %v6403_v52  ;;  %v6466_v51 = vcombine.high %v2007_v45, %v2011_v46  ;;  %v6468_v52 = vcombine.high %v2008_v47, %v2012_v48  ;;  %v6514_v45 = vcombine.high %v2055_v15, %v2059_v39 }
 0x32f   : > { %4894 = vmatprep.subr.bf16.mxu0 %v6410_v53  ;;  %5058 = vmatprep.subr.bf16.mxu1 %v6412_v54  ;;  %v2015_v53 = vld [vmem:[%s7915_s15 + $0x7c0] sm:$0xff] }
 0x330   : > { %v2019_v54 = vld [vmem:[%s7915_s15 + $0x7e0] sm:$0xff] }
 0x332   : > { %4895 = vmatpush1.bf16.msra.mxu0 %v6409_v61  ;;  %5059 = vmatpush1.bf16.msra.mxu1 %v6411_v62  ;;  %v6467_v61 = vcombine.low %v2008_v47, %v2012_v48  ;;  %v6474_v62 = vcombine.high %v2015_v53, %v2019_v54  ;;  %v2063_v47 = vld [vmem:[%s7915_s15 + $0x940] sm:$0xff] }
 0x333   : > { %4896 = vmatprep.subr.bf16.mxu0 %v6418_v63  ;;  %5060 = vmatprep.subr.bf16.mxu1 %v6420_v0  ;;  %v6476_v63 = vcombine.high %v2016_v55, %v2020_v56  ;;  %v2023_v0 = vld [vmem:[%s7915_s15 + $0x800] sm:$0xff] }
 0x334   : > { %v2067_v48 = vld [vmem:[%s7915_s15 + $0x960] sm:$0xff] }
 0x336   : > { %4897 = vmatpush1.bf16.msra.mxu0 %v6417_v35  ;;  %5061 = vmatpush1.bf16.msra.mxu1 %v6419_v9  ;;  %v6473_v35 = vcombine.low %v2015_v53, %v2019_v54  ;;  %v6475_v9 = vcombine.low %v2016_v55, %v2020_v56  ;;  %v6522_v53 = vcombine.high %v2063_v47, %v2067_v48  ;;  %v2071_v55 = vld [vmem:[%s7915_s15 + $0x980] sm:$0xff] }
 0x337   : > { %4898 = vmatprep.subr.bf16.mxu0 %v6426_v10  ;;  %5062 = vmatprep.subr.bf16.mxu1 %v6428_v1  ;;  %v6482_v10 = vcombine.high %v2023_v0, %v2027_v2  ;;  %v6484_v1 = vcombine.high %v2024_v12, %v2028_v6  ;;  %v2075_v56 = vld [vmem:[%s7915_s15 + $0x9a0] sm:$0xff] }
 0x33a   : > { %4899 = vmatpush1.bf16.msra.mxu0 %v6425_v13  ;;  %5063 = vmatpush1.bf16.msra.mxu1 %v6427_v14  ;;  %v2032_v13 = vld [vmem:[%s7915_s15 + $0x848] sm:$0xff] }
 0x33b   : > { %4900 = vmatprep.subr.bf16.mxu0 %v6434_v17  ;;  %5064 = vmatprep.subr.bf16.mxu1 %v6436_v18  ;;  %v2036_v14 = vld [vmem:[%s7915_s15 + $0x868] sm:$0xff]  ;;  %v6481_v17 = vcombine.low %v2023_v0, %v2027_v2  ;;  %v6483_v18 = vcombine.low %v2024_v12, %v2028_v6  ;;  %v6530_v0 = vcombine.high %v2071_v55, %v2075_v56  ;;  %v2079_v12 = vld [vmem:[%s7915_s15 + $0x9c0] sm:$0xff] }
 0x33c   : > { %v6492_v60 = vcombine.high %v2032_v13, %v2036_v14  ;;  %v2083_v6 = vld [vmem:[%s7915_s15 + $0x9e0] sm:$0xff] }
 0x33e   : > { %4901 = vmatpush1.bf16.msra.mxu0 %v6433_v22  ;;  %5065 = vmatpush1.bf16.msra.mxu1 %v6435_v23  ;;  %v8477_v22 = vpack.c.bf16 %v1747_v7, %v1747_v7  ;;  %v2044_v23 = vld [vmem:[%s7915_s15 + $0x8a8] sm:$0xff]  ;;  %v2087_v7 = vld [vmem:[%s7915_s15 + $0xa00] sm:$0xff] }
 0x33f   : > { %4902 = vmatprep.subr.bf16.mxu0 %v6442_v25  ;;  %5066 = vmatprep.subr.bf16.mxu1 %v6444_v26  ;;  %v6489_v25 = vcombine.low %v2031_v4, %v2035_v5  ;;  %v6491_v26 = vcombine.low %v2032_v13, %v2036_v14  ;;  %v6500_v27 = vcombine.high %v2040_v50, %v2044_v23  ;;  %v2091_v13 = vld [vmem:[%s7915_s15 + $0xa20] sm:$0xff]  ;;  %v2088_v14 = vld [vmem:[%s7915_s15 + $0xa08] sm:$0xff] }
 0x340   : > { %v6538_v4 = vcombine.high %v2079_v12, %v2083_v6 }
 0x342   : > { %4903 = vmatpush1.bf16.msra.mxu0 %v6441_v33  ;;  %5067 = vmatpush1.bf16.msra.mxu1 %v6443_v34  ;;  %v2048_v33 = vld [vmem:[%s7915_s15 + $0x8c8] sm:$0xff] }
 0x343   : > { %4904 = vmatprep.subr.bf16.mxu0 %v6450_v28  ;;  %5068 = vmatprep.subr.bf16.mxu1 %v6452_v36  ;;  %v2052_v34 = vld [vmem:[%s7915_s15 + $0x8e8] sm:$0xff]  ;;  %v6497_v28 = vcombine.low %v2039_v20, %v2043_v21  ;;  %v6499_v36 = vcombine.low %v2040_v50, %v2044_v23  ;;  %v2095_v21 = vld [vmem:[%s7915_s15 + $0xa40] sm:$0xff] }
 0x344   : > { %v6508_v38 = vcombine.high %v2048_v33, %v2052_v34  ;;  %v2099_v50 = vld [vmem:[%s7915_s15 + $0xa60] sm:$0xff]  ;;  %v2096_v23 = vld [vmem:[%s7915_s15 + $0xa48] sm:$0xff] }
 0x346   : > { %4905 = vmatpush1.bf16.msra.mxu0 %v6449_v40  ;;  %5069 = vmatpush1.bf16.msra.mxu1 %v6451_v41  ;;  %v2056_v40 = vld [vmem:[%s7915_s15 + $0x908] sm:$0xff] }
 0x347   : > { %4906 = vmatprep.subr.bf16.mxu0 %v6458_v42  ;;  %5070 = vmatprep.subr.bf16.mxu1 %v6460_v44  ;;  %v2060_v41 = vld [vmem:[%s7915_s15 + $0x928] sm:$0xff]  ;;  %v6505_v42 = vcombine.low %v2047_v29, %v2051_v32  ;;  %v6507_v44 = vcombine.low %v2048_v33, %v2052_v34  ;;  %v2103_v32 = vld [vmem:[%s7915_s15 + $0xa80] sm:$0xff] }
 0x348   : > { %v6516_v46 = vcombine.high %v2056_v40, %v2060_v41  ;;  %v2107_v33 = vld [vmem:[%s7915_s15 + $0xaa0] sm:$0xff]  ;;  %v2104_v34 = vld [vmem:[%s7915_s15 + $0xa88] sm:$0xff] }
 0x34a   : > { %4907 = vmatpush1.bf16.msra.mxu0 %v6457_v49  ;;  %5071 = vmatpush1.bf16.msra.mxu1 %v6459_v31  ;;  %v2064_v49 = vld [vmem:[%s7915_s15 + $0x948] sm:$0xff] }
 0x34b   : > { %4908 = vmatprep.subr.bf16.mxu0 %v6466_v51  ;;  %5072 = vmatprep.subr.bf16.mxu1 %v6468_v52  ;;  %v2068_v31 = vld [vmem:[%s7915_s15 + $0x968] sm:$0xff]  ;;  %v6513_v51 = vcombine.low %v2055_v15, %v2059_v39  ;;  %v6515_v52 = vcombine.low %v2056_v40, %v2060_v41  ;;  %v2111_v39 = vld [vmem:[%s7915_s15 + $0xac0] sm:$0xff] }
 0x34c   : > { %v6524_v54 = vcombine.high %v2064_v49, %v2068_v31  ;;  %v2115_v40 = vld [vmem:[%s7915_s15 + $0xae0] sm:$0xff]  ;;  %v2112_v41 = vld [vmem:[%s7915_s15 + $0xac8] sm:$0xff] }
 0x34e   : > { %4909 = vmatpush1.bf16.msra.mxu0 %v6465_v58  ;;  %5073 = vmatpush1.bf16.msra.mxu1 %v6467_v61  ;;  %v2072_v58 = vld [vmem:[%s7915_s15 + $0x988] sm:$0xff] }
 0x34f   : > { %4910 = vmatprep.subr.bf16.mxu0 %v6474_v62  ;;  %5074 = vmatprep.subr.bf16.mxu1 %v6476_v63  ;;  %v2076_v61 = vld [vmem:[%s7915_s15 + $0x9a8] sm:$0xff]  ;;  %v6521_v62 = vcombine.low %v2063_v47, %v2067_v48  ;;  %v6523_v63 = vcombine.low %v2064_v49, %v2068_v31  ;;  %v2119_v48 = vld [vmem:[%s7915_s15 + $0xb00] sm:$0xff] }
 0x350   : > { %v6532_v2 = vcombine.high %v2072_v58, %v2076_v61  ;;  %v2123_v49 = vld [vmem:[%s7915_s15 + $0xb20] sm:$0xff]  ;;  %v2120_v31 = vld [vmem:[%s7915_s15 + $0xb08] sm:$0xff] }
 0x352   : > { %4911 = vmatpush1.bf16.msra.mxu0 %v6473_v35  ;;  %5075 = vmatpush1.bf16.msra.mxu1 %v6475_v9  ;;  %v2080_v35 = vld [vmem:[%s7915_s15 + $0x9c8] sm:$0xff] }
 0x353   : > { %4921 = vmatprep.subr.bf16.mxu0 %v6482_v10  ;;  %5085 = vmatprep.subr.bf16.mxu1 %v6484_v1  ;;  %v2084_v9 = vld [vmem:[%s7915_s15 + $0x9e8] sm:$0xff]  ;;  %v6529_v10 = vcombine.low %v2071_v55, %v2075_v56  ;;  %v6531_v1 = vcombine.low %v2072_v58, %v2076_v61  ;;  %v2127_v56 = vld [vmem:[%s7915_s15 + $0xb40] sm:$0xff] }
 0x354   : > { %v6540_v5 = vcombine.high %v2080_v35, %v2084_v9  ;;  %v2131_v58 = vld [vmem:[%s7915_s15 + $0xb60] sm:$0xff]  ;;  %v2128_v61 = vld [vmem:[%s7915_s15 + $0xb48] sm:$0xff] }
 0x355   : > { %4913 = vmatmul.mubr.bf16.vlgmr.msra.gmra.mrb[0].mxu0 %v8471_v11  ;;  %5077 = vmatmul.mubr.bf16.vlgmr.msra.gmra.mrb[0].mxu1 %v8471_v11 }
 0x356   : > { %4922 = vmatpush1.bf16.msra.mxu0 %v6481_v17  ;;  %5086 = vmatpush1.bf16.msra.mxu1 %v6483_v18  ;;  %v2092_v17 = vld [vmem:[%s7915_s15 + $0xa28] sm:$0xff]  ;;  %v6537_v18 = vcombine.low %v2079_v12, %v2083_v6  ;;  %v2135_v6 = vld [vmem:[%s7915_s15 + $0xb80] sm:$0xff] }
 0x357   : > { %4923 = vmatprep.subr.bf16.mxu0 %v6490_v19  ;;  %5087 = vmatprep.subr.bf16.mxu1 %v6492_v60  ;;  %v6539_v19 = vcombine.low %v2080_v35, %v2084_v9  ;;  %v6546_v60 = vcombine.high %v2087_v7, %v2091_v13  ;;  %v6548_v20 = vcombine.high %v2088_v14, %v2092_v17  ;;  %v2139_v35 = vld [vmem:[%s7915_s15 + $0xba0] sm:$0xff]  ;;  %v2136_v9 = vld [vmem:[%s7915_s15 + $0xb88] sm:$0xff] }
 0x358   : > { %4953 = vmatprep.mubr.bf16.mxu0 %v8477_v22  ;;  %5117 = vmatprep.mubr.bf16.mxu1 %v8477_v22 }
 0x35a   : > { %4924 = vmatpush1.bf16.msra.mxu0 %v6489_v25  ;;  %5088 = vmatpush1.bf16.msra.mxu1 %v6491_v26  ;;  %v2100_v25 = vld [vmem:[%s7915_s15 + $0xa68] sm:$0xff]  ;;  %v6545_v26 = vcombine.low %v2087_v7, %v2091_v13  ;;  %v2143_v13 = vld [vmem:[%s7915_s15 + $0xbc0] sm:$0xff] }
 0x35b   : > { %4925 = vmatprep.subr.bf16.mxu0 %v6498_v30  ;;  %5089 = vmatprep.subr.bf16.mxu1 %v6500_v27  ;;  %v6547_v30 = vcombine.low %v2088_v14, %v2092_v17  ;;  %v6554_v27 = vcombine.high %v2095_v21, %v2099_v50  ;;  %v6556_v29 = vcombine.high %v2096_v23, %v2100_v25  ;;  %v2147_v14 = vld [vmem:[%s7915_s15 + $0xbe0] sm:$0xff] }
 0x35c   : > { %v1732_v17 = vcombine.high %v8455_v57, %v8455_v57  ;;  %v2152_v57 = vld [vmem:[%s7915_s15 + $0xc08] sm:$0xff] }
 0x35e   : > { %4926 = vmatpush1.bf16.msra.mxu0 %v6497_v28  ;;  %5090 = vmatpush1.bf16.msra.mxu1 %v6499_v36  ;;  %v2108_v28 = vld [vmem:[%s7915_s15 + $0xaa8] sm:$0xff]  ;;  %v6553_v36 = vcombine.low %v2095_v21, %v2099_v50  ;;  %v6602_v21 = vcombine.high %v2143_v13, %v2147_v14 }
 0x35f   : > { %4927 = vmatprep.subr.bf16.mxu0 %v6506_v37  ;;  %5091 = vmatprep.subr.bf16.mxu1 %v6508_v38  ;;  %v6555_v37 = vcombine.low %v2096_v23, %v2100_v25  ;;  %v6562_v38 = vcombine.high %v2103_v32, %v2107_v33  ;;  %v6564_v15 = vcombine.high %v2104_v34, %v2108_v28  ;;  %v2151_v23 = vld [vmem:[%s7915_s15 + $0xc00] sm:$0xff] }
 0x360   : > { %v2155_v25 = vld [vmem:[%s7915_s15 + $0xc20] sm:$0xff] }
 0x362   : > { %4928 = vmatpush1.bf16.msra.mxu0 %v6505_v42  ;;  %5092 = vmatpush1.bf16.msra.mxu1 %v6507_v44  ;;  %v2116_v42 = vld [vmem:[%s7915_s15 + $0xae8] sm:$0xff]  ;;  %v6561_v44 = vcombine.low %v2103_v32, %v2107_v33  ;;  %v6610_v32 = vcombine.high %v2151_v23, %v2155_v25 }
 0x363   : > { %4929 = vmatprep.subr.bf16.mxu0 %v6514_v45  ;;  %5093 = vmatprep.subr.bf16.mxu1 %v6516_v46  ;;  %v6563_v45 = vcombine.low %v2104_v34, %v2108_v28  ;;  %v6570_v46 = vcombine.high %v2111_v39, %v2115_v40  ;;  %v6572_v47 = vcombine.high %v2112_v41, %v2116_v42  ;;  %v2159_v34 = vld [vmem:[%s7915_s15 + $0xc40] sm:$0xff] }
 0x364   : > { %v2163_v28 = vld [vmem:[%s7915_s15 + $0xc60] sm:$0xff] }
 0x366   : > { %4930 = vmatpush1.bf16.msra.mxu0 %v6513_v51  ;;  %5094 = vmatpush1.bf16.msra.mxu1 %v6515_v52  ;;  %v2124_v51 = vld [vmem:[%s7915_s15 + $0xb28] sm:$0xff]  ;;  %v6569_v52 = vcombine.low %v2111_v39, %v2115_v40  ;;  %v6609_v39 = vcombine.low %v2151_v23, %v2155_v25 }
 0x367   : > { %4931 = vmatprep.subr.bf16.mxu0 %v6522_v53  ;;  %5095 = vmatprep.subr.bf16.mxu1 %v6524_v54  ;;  %v6571_v53 = vcombine.low %v2112_v41, %v2116_v42  ;;  %v6578_v54 = vcombine.high %v2119_v48, %v2123_v49  ;;  %v6580_v55 = vcombine.high %v2120_v31, %v2124_v51 }
 0x368   : > { %v6618_v41 = vcombine.high %v2159_v34, %v2163_v28 }
 0x36a   : > { %4932 = vmatpush1.bf16.msra.mxu0 %v6521_v62  ;;  %5096 = vmatpush1.bf16.msra.mxu1 %v6523_v63  ;;  %v2132_v62 = vld [vmem:[%s7915_s15 + $0xb68] sm:$0xff]  ;;  %v6577_v63 = vcombine.low %v2119_v48, %v2123_v49  ;;  %v6617_v48 = vcombine.low %v2159_v34, %v2163_v28 }
 0x36b   : > { %4933 = vmatprep.subr.bf16.mxu0 %v6530_v0  ;;  %5097 = vmatprep.subr.bf16.mxu1 %v6532_v2  ;;  %v6579_v0 = vcombine.low %v2120_v31, %v2124_v51  ;;  %v6586_v2 = vcombine.high %v2127_v56, %v2131_v58  ;;  %v6588_v12 = vcombine.high %v2128_v61, %v2132_v62 }
 0x36e   : > { %4934 = vmatpush1.bf16.msra.mxu0 %v6529_v10  ;;  %5098 = vmatpush1.bf16.msra.mxu1 %v6531_v1  ;;  %v2140_v10 = vld [vmem:[%s7915_s15 + $0xba8] sm:$0xff]  ;;  %v6585_v1 = vcombine.low %v2127_v56, %v2131_v58 }
 0x36f   : > { %4935 = vmatprep.subr.bf16.mxu0 %v6538_v4  ;;  %5099 = vmatprep.subr.bf16.mxu1 %v6540_v5  ;;  %v6587_v4 = vcombine.low %v2128_v61, %v2132_v62  ;;  %v6594_v5 = vcombine.high %v2135_v6, %v2139_v35  ;;  %v6596_v7 = vcombine.high %v2136_v9, %v2140_v10 }
 0x372   : > { %4936 = vmatpush1.bf16.msra.mxu0 %v6537_v18  ;;  %5100 = vmatpush1.bf16.msra.mxu1 %v6539_v19  ;;  %v2144_v18 = vld [vmem:[%s7915_s15 + $0xbc8] sm:$0xff] }
 0x373   : > { %4937 = vmatprep.subr.bf16.mxu0 %v6546_v60  ;;  %5101 = vmatprep.subr.bf16.mxu1 %v6548_v20  ;;  %v2148_v19 = vld [vmem:[%s7915_s15 + $0xbe8] sm:$0xff]  ;;  %v6593_v60 = vcombine.low %v2135_v6, %v2139_v35  ;;  %v6595_v20 = vcombine.low %v2136_v9, %v2140_v10 }
 0x374   : > { %v6604_v50 = vcombine.high %v2144_v18, %v2148_v19 }
 0x376   : > { %4938 = vmatpush1.bf16.msra.mxu0 %v6545_v26  ;;  %5102 = vmatpush1.bf16.msra.mxu1 %v6547_v30  ;;  %v8542_v26 = vrot.slane %v1732_v17, %v8318_v24  ;;  %v2156_v30 = vld [vmem:[%s7915_s15 + $0xc28] sm:$0xff] }
 0x377   : > { %4939 = vmatprep.subr.bf16.mxu0 %v6554_v27  ;;  %5103 = vmatprep.subr.bf16.mxu1 %v6556_v29  ;;  %v6601_v27 = vcombine.low %v2143_v13, %v2147_v14  ;;  %v6603_v29 = vcombine.low %v2144_v18, %v2148_v19  ;;  %v6612_v33 = vcombine.high %v2152_v57, %v2156_v30  ;;  %v2199_v19 = vld [vmem:[%s7915_s15 + $0xd80] sm:$0xff] }
 0x378   : > { %v6611_v40 = vcombine.low %v2152_v57, %v2156_v30  ;;  %v2207_v30 = vld [vmem:[%s7915_s15 + $0xdc0] sm:$0xff] }
 0x37a   : > { %4940 = vmatpush1.bf16.msra.mxu0 %v6553_v36  ;;  %5104 = vmatpush1.bf16.msra.mxu1 %v6555_v37  ;;  %v1748_v36 = vcombine.high %v8542_v26, %v8542_v26  ;;  %v8552_v37 = vpack.c.bf16 %v8461_v3, %v8461_v3  ;;  %v2168_v3 = vld [vmem:[%s7915_s15 + $0xc88] sm:$0xff] }
 0x37b   : > { %4941 = vmatprep.subr.bf16.mxu0 %v6562_v38  ;;  %5105 = vmatprep.subr.bf16.mxu1 %v6564_v15  ;;  %v2160_v38 = vld [vmem:[%s7915_s15 + $0xc48] sm:$0xff] }
 0x37c   : > { %v2164_v15 = vld [vmem:[%s7915_s15 + $0xc68] sm:$0xff] }
 0x37d   : > { %v6620_v42 = vcombine.high %v2160_v38, %v2164_v15  ;;  %v6619_v49 = vcombine.low %v2160_v38, %v2164_v15  ;;  %v2215_v38 = vld [vmem:[%s7915_s15 + $0xe00] sm:$0xff] }
 0x37e   : > { %4942 = vmatpush1.bf16.msra.mxu0 %v6561_v44  ;;  %5106 = vmatpush1.bf16.msra.mxu1 %v6563_v45  ;;  %v2167_v44 = vld [vmem:[%s7915_s15 + $0xc80] sm:$0xff] }
 0x37f   : > { %4943 = vmatprep.subr.bf16.mxu0 %v6570_v46  ;;  %5107 = vmatprep.subr.bf16.mxu1 %v6572_v47  ;;  %v2171_v45 = vld [vmem:[%s7915_s15 + $0xca0] sm:$0xff]  ;;  %v8558_v46 = vpack.c.bf16 %v1748_v36, %v1748_v36  ;;  %v2172_v47 = vld [vmem:[%s7915_s15 + $0xca8] sm:$0xff] }
 0x380   : > { %v6626_v31 = vcombine.high %v2167_v44, %v2171_v45  ;;  %v6628_v51 = vcombine.high %v2168_v3, %v2172_v47  ;;  %v6625_v56 = vcombine.low %v2167_v44, %v2171_v45  ;;  %v6627_v58 = vcombine.low %v2168_v3, %v2172_v47  ;;  %v2219_v15 = vld [vmem:[%s7915_s15 + $0xe20] sm:$0xff] }
 0x381   : > { %v6674_v44 = vcombine.high %v2215_v38, %v2219_v15  ;;  %v2223_v3 = vld [vmem:[%s7915_s15 + $0xe40] sm:$0xff] }
 0x382   : > { %4944 = vmatpush1.bf16.msra.mxu0 %v6569_v52  ;;  %5108 = vmatpush1.bf16.msra.mxu1 %v6571_v53  ;;  %v2175_v52 = vld [vmem:[%s7915_s15 + $0xcc0] sm:$0xff] }
 0x383   : > { %4945 = vmatprep.subr.bf16.mxu0 %v6578_v54  ;;  %5109 = vmatprep.subr.bf16.mxu1 %v6580_v55  ;;  %v2179_v53 = vld [vmem:[%s7915_s15 + $0xce0] sm:$0xff]  ;;  %v2176_v54 = vld [vmem:[%s7915_s15 + $0xcc8] sm:$0xff] }
 0x384   : > { %v2180_v55 = vld [vmem:[%s7915_s15 + $0xce8] sm:$0xff]  ;;  %v6634_v61 = vcombine.high %v2175_v52, %v2179_v53  ;;  %v6633_v6 = vcombine.low %v2175_v52, %v2179_v53  ;;  %v2227_v47 = vld [vmem:[%s7915_s15 + $0xe60] sm:$0xff] }
 0x385   : > { %v6636_v62 = vcombine.high %v2176_v54, %v2180_v55  ;;  %v6635_v35 = vcombine.low %v2176_v54, %v2180_v55  ;;  %v6682_v52 = vcombine.high %v2223_v3, %v2227_v47  ;;  %v2231_v54 = vld [vmem:[%s7915_s15 + $0xe80] sm:$0xff] }
 0x386   : > { %4946 = vmatpush1.bf16.msra.mxu0 %v6577_v63  ;;  %5110 = vmatpush1.bf16.msra.mxu1 %v6579_v0  ;;  %v2183_v63 = vld [vmem:[%s7915_s15 + $0xd00] sm:$0xff] }
 0x387   : > { %4947 = vmatprep.subr.bf16.mxu0 %v6586_v2  ;;  %5111 = vmatprep.subr.bf16.mxu1 %v6588_v12  ;;  %v2187_v0 = vld [vmem:[%s7915_s15 + $0xd20] sm:$0xff]  ;;  %v2184_v2 = vld [vmem:[%s7915_s15 + $0xd08] sm:$0xff] }
 0x388   : > { %v2188_v12 = vld [vmem:[%s7915_s15 + $0xd28] sm:$0xff]  ;;  %v6642_v9 = vcombine.high %v2183_v63, %v2187_v0  ;;  %v6641_v13 = vcombine.low %v2183_v63, %v2187_v0  ;;  %v2235_v55 = vld [vmem:[%s7915_s15 + $0xea0] sm:$0xff] }
 0x389   : > { %v6644_v10 = vcombine.high %v2184_v2, %v2188_v12  ;;  %v6643_v14 = vcombine.low %v2184_v2, %v2188_v12  ;;  %v6690_v63 = vcombine.high %v2231_v54, %v2235_v55  ;;  %v2239_v2 = vld [vmem:[%s7915_s15 + $0xec0] sm:$0xff] }
 0x38a   : > { %4948 = vmatpush1.bf16.msra.mxu0 %v6585_v1  ;;  %5112 = vmatpush1.bf16.msra.mxu1 %v6587_v4  ;;  %v2191_v1 = vld [vmem:[%s7915_s15 + $0xd40] sm:$0xff] }
 0x38b   : > { %4949 = vmatprep.subr.bf16.mxu0 %v6594_v5  ;;  %5113 = vmatprep.subr.bf16.mxu1 %v6596_v7  ;;  %v2195_v4 = vld [vmem:[%s7915_s15 + $0xd60] sm:$0xff]  ;;  %v2192_v5 = vld [vmem:[%s7915_s15 + $0xd48] sm:$0xff] }
 0x38c   : > { %v2196_v7 = vld [vmem:[%s7915_s15 + $0xd68] sm:$0xff]  ;;  %v6650_v17 = vcombine.high %v2191_v1, %v2195_v4  ;;  %v2243_v12 = vld [vmem:[%s7915_s15 + $0xee0] sm:$0xff] }
 0x38d   : > { %v6652_v18 = vcombine.high %v2192_v5, %v2196_v7  ;;  %v6651_v23 = vcombine.low %v2192_v5, %v2196_v7  ;;  %v2247_v5 = vld [vmem:[%s7915_s15 + $0xf00] sm:$0xff] }
 0x38e   : > { %4950 = vmatpush1.bf16.msra.mxu0 %v6593_v60  ;;  %5114 = vmatpush1.bf16.msra.mxu1 %v6595_v20  ;;  %v2203_v60 = vld [vmem:[%s7915_s15 + $0xda0] sm:$0xff]  ;;  %v2200_v20 = vld [vmem:[%s7915_s15 + $0xd88] sm:$0xff] }
 0x38f   : > { %4951 = vmatprep.subr.bf16.mxu0 %v6602_v21  ;;  %5115 = vmatprep.subr.bf16.mxu1 %v6604_v50  ;;  %v2204_v21 = vld [vmem:[%s7915_s15 + $0xda8] sm:$0xff]  ;;  %v6649_v50 = vcombine.low %v2191_v1, %v2195_v4  ;;  %v6658_v25 = vcombine.high %v2199_v19, %v2203_v60  ;;  %v6698_v1 = vcombine.high %v2239_v2, %v2243_v12  ;;  %v2251_v7 = vld [vmem:[%s7915_s15 + $0xf20] sm:$0xff] }
 0x390   : > { %v6660_v57 = vcombine.high %v2200_v20, %v2204_v21  ;;  %v6659_v34 = vcombine.low %v2200_v20, %v2204_v21  ;;  %v2255_v20 = vld [vmem:[%s7915_s15 + $0xf40] sm:$0xff] }
 0x391   : > { %v2259_v21 = vld [vmem:[%s7915_s15 + $0xf60] sm:$0xff] }
 0x392   : > { %4952 = vmatpush1.bf16.msra.mxu0 %v6601_v27  ;;  %5116 = vmatpush1.bf16.msra.mxu1 %v6603_v29  ;;  %v2211_v27 = vld [vmem:[%s7915_s15 + $0xde0] sm:$0xff]  ;;  %v2208_v29 = vld [vmem:[%s7915_s15 + $0xdc8] sm:$0xff] }
 0x393   : > { %4962 = vmatprep.subr.bf16.mxu0 %v6610_v32  ;;  %5126 = vmatprep.subr.bf16.mxu1 %v6612_v33  ;;  %v2212_v32 = vld [vmem:[%s7915_s15 + $0xde8] sm:$0xff]  ;;  %v6657_v33 = vcombine.low %v2199_v19, %v2203_v60  ;;  %v6666_v28 = vcombine.high %v2207_v30, %v2211_v27  ;;  %v6706_v19 = vcombine.high %v2247_v5, %v2251_v7 }
 0x394   : > { %v6668_v36 = vcombine.high %v2208_v29, %v2212_v32 }
 0x395   : > { %4954 = vmatmul.mubr.bf16.vlgmr.msra.gmra.mrb[0].mxu0 %v8552_v37  ;;  %5118 = vmatmul.mubr.bf16.vlgmr.msra.gmra.mrb[0].mxu1 %v8552_v37 }
 0x396   : > { %4963 = vmatpush1.bf16.msra.mxu0 %v6609_v39  ;;  %5127 = vmatpush1.bf16.msra.mxu1 %v6611_v40  ;;  %v2216_v39 = vld [vmem:[%s7915_s15 + $0xe08] sm:$0xff] }
 0x397   : > { %4964 = vmatprep.subr.bf16.mxu0 %v6618_v41  ;;  %5128 = vmatprep.subr.bf16.mxu1 %v6620_v42  ;;  %v2220_v40 = vld [vmem:[%s7915_s15 + $0xe28] sm:$0xff]  ;;  %v6665_v41 = vcombine.low %v2207_v30, %v2211_v27  ;;  %v6667_v42 = vcombine.low %v2208_v29, %v2212_v32  ;;  %v6714_v30 = vcombine.high %v2255_v20, %v2259_v21  ;;  %v2263_v29 = vld [vmem:[%s7915_s15 + $0xf80] sm:$0xff] }
 0x398   : > { %4994 = vmatprep.mubr.bf16.mxu0 %v8558_v46  ;;  %5158 = vmatprep.mubr.bf16.mxu1 %v8558_v46  ;;  %v6676_v45 = vcombine.high %v2216_v39, %v2220_v40  ;;  %v2267_v32 = vld [vmem:[%s7915_s15 + $0xfa0] sm:$0xff] }
 0x39a   : > { %4965 = vmatpush1.bf16.msra.mxu0 %v6617_v48  ;;  %5129 = vmatpush1.bf16.msra.mxu1 %v6619_v49  ;;  %v2224_v48 = vld [vmem:[%s7915_s15 + $0xe48] sm:$0xff] }
 0x39b   : > { %4966 = vmatprep.subr.bf16.mxu0 %v6626_v31  ;;  %5130 = vmatprep.subr.bf16.mxu1 %v6628_v51  ;;  %v2228_v49 = vld [vmem:[%s7915_s15 + $0xe68] sm:$0xff]  ;;  %v6673_v31 = vcombine.low %v2215_v38, %v2219_v15  ;;  %v6675_v51 = vcombine.low %v2216_v39, %v2220_v40  ;;  %v6722_v38 = vcombine.high %v2263_v29, %v2267_v32  ;;  %v2271_v39 = vld [vmem:[%s7915_s15 + $0xfc0] sm:$0xff] }
 0x39c   : > { %v6684_v53 = vcombine.high %v2224_v48, %v2228_v49  ;;  %v2275_v40 = vld [vmem:[%s7915_s15 + $0xfe0] sm:$0xff] }
 0x39e   : > { %4967 = vmatpush1.bf16.msra.mxu0 %v6625_v56  ;;  %5131 = vmatpush1.bf16.msra.mxu1 %v6627_v58  ;;  %v2232_v56 = vld [vmem:[%s7915_s15 + $0xe88] sm:$0xff] }
 0x39f   : > { %4968 = vmatprep.subr.bf16.mxu0 %v6634_v61  ;;  %5132 = vmatprep.subr.bf16.mxu1 %v6636_v62  ;;  %v2236_v58 = vld [vmem:[%s7915_s15 + $0xea8] sm:$0xff]  ;;  %v6681_v61 = vcombine.low %v2223_v3, %v2227_v47  ;;  %v6683_v62 = vcombine.low %v2224_v48, %v2228_v49  ;;  %v6730_v3 = vcombine.high %v2271_v39, %v2275_v40  ;;  %v1769_v48 = vld [vmem:[%s7915_s15 + $0x10] sm:$0xff] }
 0x3a0   : > { %v6692_v0 = vcombine.high %v2232_v56, %v2236_v58  ;;  %v1773_v49 = vld [vmem:[%s7915_s15 + $0x30] sm:$0xff] }
 0x3a2   : > { %4969 = vmatpush1.bf16.msra.mxu0 %v6633_v6  ;;  %5133 = vmatpush1.bf16.msra.mxu1 %v6635_v35  ;;  %v2240_v6 = vld [vmem:[%s7915_s15 + $0xec8] sm:$0xff] }
 0x3a3   : > { %4970 = vmatprep.subr.bf16.mxu0 %v6642_v9  ;;  %5134 = vmatprep.subr.bf16.mxu1 %v6644_v10  ;;  %v2244_v35 = vld [vmem:[%s7915_s15 + $0xee8] sm:$0xff]  ;;  %v6689_v9 = vcombine.low %v2231_v54, %v2235_v55  ;;  %v6691_v10 = vcombine.low %v2232_v56, %v2236_v58  ;;  %v6230_v54 = vcombine.high %v1769_v48, %v1773_v49  ;;  %v1777_v56 = vld [vmem:[%s7915_s15 + $0x50] sm:$0xff] }
 0x3a4   : > { %v6700_v4 = vcombine.high %v2240_v6, %v2244_v35  ;;  %v1781_v58 = vld [vmem:[%s7915_s15 + $0x70] sm:$0xff] }
 0x3a6   : > { %4971 = vmatpush1.bf16.msra.mxu0 %v6641_v13  ;;  %5135 = vmatpush1.bf16.msra.mxu1 %v6643_v14  ;;  %v2248_v13 = vld [vmem:[%s7915_s15 + $0xf08] sm:$0xff] }
 0x3a7   : > { %4972 = vmatprep.subr.bf16.mxu0 %v6650_v17  ;;  %5136 = vmatprep.subr.bf16.mxu1 %v6652_v18  ;;  %v2252_v14 = vld [vmem:[%s7915_s15 + $0xf28] sm:$0xff]  ;;  %v6697_v17 = vcombine.low %v2239_v2, %v2243_v12  ;;  %v6699_v18 = vcombine.low %v2240_v6, %v2244_v35  ;;  %v6238_v12 = vcombine.high %v1777_v56, %v1781_v58  ;;  %v1785_v35 = vld [vmem:[%s7915_s15 + $0x90] sm:$0xff] }
 0x3a8   : > { %v6708_v60 = vcombine.high %v2248_v13, %v2252_v14 }
 0x3aa   : > { %4973 = vmatpush1.bf16.msra.mxu0 %v6649_v50  ;;  %5137 = vmatpush1.bf16.msra.mxu1 %v6651_v23  ;;  %v2256_v50 = vld [vmem:[%s7915_s15 + $0xf48] sm:$0xff] }
 0x3ab   : > { %4974 = vmatprep.subr.bf16.mxu0 %v6658_v25  ;;  %5138 = vmatprep.subr.bf16.mxu1 %v6660_v57  ;;  %v2260_v23 = vld [vmem:[%s7915_s15 + $0xf68] sm:$0xff]  ;;  %v6705_v25 = vcombine.low %v2247_v5, %v2251_v7  ;;  %v6707_v57 = vcombine.low %v2248_v13, %v2252_v14  ;;  %v1793_v13 = vld [vmem:[%s7915_s15 + $0xd0] sm:$0xff] }
 0x3ac   : > { %v6716_v27 = vcombine.high %v2256_v50, %v2260_v23  ;;  %v1797_v14 = vld [vmem:[%s7915_s15 + $0xf0] sm:$0xff] }
 0x3ae   : > { %4975 = vmatpush1.bf16.msra.mxu0 %v6657_v33  ;;  %5139 = vmatpush1.bf16.msra.mxu1 %v6659_v34  ;;  %v2264_v33 = vld [vmem:[%s7915_s15 + $0xf88] sm:$0xff] }
 0x3af   : > { %4976 = vmatprep.subr.bf16.mxu0 %v6666_v28  ;;  %5140 = vmatprep.subr.bf16.mxu1 %v6668_v36  ;;  %v2268_v34 = vld [vmem:[%s7915_s15 + $0xfa8] sm:$0xff]  ;;  %v6713_v28 = vcombine.low %v2255_v20, %v2259_v21  ;;  %v6715_v36 = vcombine.low %v2256_v50, %v2260_v23  ;;  %v6254_v20 = vcombine.high %v1793_v13, %v1797_v14  ;;  %v1801_v50 = vld [vmem:[%s7915_s15 + $0x110] sm:$0xff] }
 0x3b0   : > { %v6724_v15 = vcombine.high %v2264_v33, %v2268_v34  ;;  %v1805_v23 = vld [vmem:[%s7915_s15 + $0x130] sm:$0xff] }
 0x3b2   : > { %4977 = vmatpush1.bf16.msra.mxu0 %v6665_v41  ;;  %5141 = vmatpush1.bf16.msra.mxu1 %v6667_v42  ;;  %v2272_v41 = vld [vmem:[%s7915_s15 + $0xfc8] sm:$0xff] }
 0x3b3   : > { %4978 = vmatprep.subr.bf16.mxu0 %v6674_v44  ;;  %5142 = vmatprep.subr.bf16.mxu1 %v6676_v45  ;;  %v2276_v42 = vld [vmem:[%s7915_s15 + $0xfe8] sm:$0xff]  ;;  %v6721_v44 = vcombine.low %v2263_v29, %v2267_v32  ;;  %v6723_v45 = vcombine.low %v2264_v33, %v2268_v34  ;;  %v1809_v32 = vld [vmem:[%s7915_s15 + $0x150] sm:$0xff]  ;;  %v1810_v34 = vld [vmem:[%s7915_s15 + $0x158] sm:$0xff] }
 0x3b4   : > { %v6732_v47 = vcombine.high %v2272_v41, %v2276_v42  ;;  %v1813_v33 = vld [vmem:[%s7915_s15 + $0x170] sm:$0xff] }
 0x3b6   : > { %4979 = vmatpush1.bf16.msra.mxu0 %v6673_v31  ;;  %5143 = vmatpush1.bf16.msra.mxu1 %v6675_v51  ;;  %v1770_v31 = vld [vmem:[%s7915_s15 + $0x18] sm:$0xff] }
 0x3b7   : > { %4980 = vmatprep.subr.bf16.mxu0 %v6682_v52  ;;  %5144 = vmatprep.subr.bf16.mxu1 %v6684_v53  ;;  %v1774_v51 = vld [vmem:[%s7915_s15 + $0x38] sm:$0xff]  ;;  %v6729_v52 = vcombine.low %v2271_v39, %v2275_v40  ;;  %v6731_v53 = vcombine.low %v2272_v41, %v2276_v42  ;;  %v1817_v40 = vld [vmem:[%s7915_s15 + $0x190] sm:$0xff] }
 0x3b8   : > { %v6232_v55 = vcombine.high %v1770_v31, %v1774_v51  ;;  %v6231_v2 = vcombine.low %v1770_v31, %v1774_v51  ;;  %v1821_v41 = vld [vmem:[%s7915_s15 + $0x1b0] sm:$0xff]  ;;  %v1818_v42 = vld [vmem:[%s7915_s15 + $0x198] sm:$0xff] }
 0x3b9   : > { %v1829_v31 = vld [vmem:[%s7915_s15 + $0x1f0] sm:$0xff]  ;;  %v1826_v51 = vld [vmem:[%s7915_s15 + $0x1d8] sm:$0xff] }
 0x3ba   : > { %4981 = vmatpush1.bf16.msra.mxu0 %v6681_v61  ;;  %5145 = vmatpush1.bf16.msra.mxu1 %v6683_v62  ;;  %v8626_v61 = vpack.c.bf16 %v8542_v26, %v8542_v26  ;;  %v1778_v62 = vld [vmem:[%s7915_s15 + $0x58] sm:$0xff] }
 0x3bb   : > { %4982 = vmatprep.subr.bf16.mxu0 %v6690_v63  ;;  %5146 = vmatprep.subr.bf16.mxu1 %v6692_v0  ;;  %v1782_v63 = vld [vmem:[%s7915_s15 + $0x78] sm:$0xff]  ;;  %v6229_v0 = vcombine.low %v1769_v48, %v1773_v49  ;;  %v1825_v49 = vld [vmem:[%s7915_s15 + $0x1d0] sm:$0xff] }
 0x3bc   : > { %v6240_v6 = vcombine.high %v1778_v62, %v1782_v63  ;;  %v1786_v26 = vld [vmem:[%s7915_s15 + $0x98] sm:$0xff] }
 0x3be   : > { %4983 = vmatpush1.bf16.msra.mxu0 %v6689_v9  ;;  %5147 = vmatpush1.bf16.msra.mxu1 %v6691_v10  ;;  %v1789_v9 = vld [vmem:[%s7915_s15 + $0xb0] sm:$0xff]  ;;  %v1790_v10 = vld [vmem:[%s7915_s15 + $0xb8] sm:$0xff] }
 0x3bf   : > { %4984 = vmatprep.subr.bf16.mxu0 %v6698_v1  ;;  %5148 = vmatprep.subr.bf16.mxu1 %v6700_v4  ;;  %v6237_v1 = vcombine.low %v1777_v56, %v1781_v58  ;;  %v6239_v4 = vcombine.low %v1778_v62, %v1782_v63  ;;  %v6246_v5 = vcombine.high %v1785_v35, %v1789_v9  ;;  %v1833_v58 = vld [vmem:[%s7915_s15 + $0x210] sm:$0xff]  ;;  %v1834_v63 = vld [vmem:[%s7915_s15 + $0x218] sm:$0xff] }
 0x3c0   : > { %v6248_v7 = vcombine.high %v1786_v26, %v1790_v10  ;;  %v1837_v62 = vld [vmem:[%s7915_s15 + $0x230] sm:$0xff] }
 0x3c2   : > { %4985 = vmatpush1.bf16.msra.mxu0 %v6697_v17  ;;  %5149 = vmatpush1.bf16.msra.mxu1 %v6699_v18  ;;  %v1794_v17 = vld [vmem:[%s7915_s15 + $0xd8] sm:$0xff] }
 0x3c3   : > { %4986 = vmatprep.subr.bf16.mxu0 %v6706_v19  ;;  %5150 = vmatprep.subr.bf16.mxu1 %v6708_v60  ;;  %v1798_v18 = vld [vmem:[%s7915_s15 + $0xf8] sm:$0xff]  ;;  %v6245_v19 = vcombine.low %v1785_v35, %v1789_v9  ;;  %v6247_v60 = vcombine.low %v1786_v26, %v1790_v10  ;;  %v1841_v9 = vld [vmem:[%s7915_s15 + $0x250] sm:$0xff] }
 0x3c4   : > { %v6256_v21 = vcombine.high %v1794_v17, %v1798_v18  ;;  %v1845_v26 = vld [vmem:[%s7915_s15 + $0x270] sm:$0xff]  ;;  %v1842_v10 = vld [vmem:[%s7915_s15 + $0x258] sm:$0xff] }
 0x3c6   : > { %4987 = vmatpush1.bf16.msra.mxu0 %v6705_v25  ;;  %5151 = vmatpush1.bf16.msra.mxu1 %v6707_v57  ;;  %v1802_v25 = vld [vmem:[%s7915_s15 + $0x118] sm:$0xff] }
 0x3c7   : > { %4988 = vmatprep.subr.bf16.mxu0 %v6714_v30  ;;  %5152 = vmatprep.subr.bf16.mxu1 %v6716_v27  ;;  %v1806_v57 = vld [vmem:[%s7915_s15 + $0x138] sm:$0xff]  ;;  %v6253_v30 = vcombine.low %v1793_v13, %v1797_v14  ;;  %v6262_v27 = vcombine.high %v1801_v50, %v1805_v23  ;;  %v1849_v14 = vld [vmem:[%s7915_s15 + $0x290] sm:$0xff] }
 0x3c8   : > { %v6264_v29 = vcombine.high %v1802_v25, %v1806_v57 }
 0x3ca   : > { %4989 = vmatpush1.bf16.msra.mxu0 %v6713_v28  ;;  %5153 = vmatpush1.bf16.msra.mxu1 %v6715_v36  ;;  %v1814_v28 = vld [vmem:[%s7915_s15 + $0x178] sm:$0xff]  ;;  %v6261_v36 = vcombine.low %v1801_v50, %v1805_v23  ;;  %v1857_v23 = vld [vmem:[%s7915_s15 + $0x2d0] sm:$0xff] }
 0x3cb   : > { %4990 = vmatprep.subr.bf16.mxu0 %v6722_v38  ;;  %5154 = vmatprep.subr.bf16.mxu1 %v6724_v15  ;;  %v6263_v38 = vcombine.low %v1802_v25, %v1806_v57  ;;  %v6270_v15 = vcombine.high %v1809_v32, %v1813_v33  ;;  %v6272_v39 = vcombine.high %v1810_v34, %v1814_v28  ;;  %v1861_v25 = vld [vmem:[%s7915_s15 + $0x2f0] sm:$0xff]  ;;  %v1858_v57 = vld [vmem:[%s7915_s15 + $0x2d8] sm:$0xff] }
 0x3ce   : > { %4991 = vmatpush1.bf16.msra.mxu0 %v6721_v44  ;;  %5155 = vmatpush1.bf16.msra.mxu1 %v6723_v45  ;;  %v1822_v44 = vld [vmem:[%s7915_s15 + $0x1b8] sm:$0xff]  ;;  %v6269_v45 = vcombine.low %v1809_v32, %v1813_v33  ;;  %v1865_v33 = vld [vmem:[%s7915_s15 + $0x310] sm:$0xff] }
 0x3cf   : > { %4992 = vmatprep.subr.bf16.mxu0 %v6730_v3  ;;  %5156 = vmatprep.subr.bf16.mxu1 %v6732_v47  ;;  %v6271_v3 = vcombine.low %v1810_v34, %v1814_v28  ;;  %v6278_v47 = vcombine.high %v1817_v40, %v1821_v41  ;;  %v6280_v48 = vcombine.high %v1818_v42, %v1822_v44  ;;  %v1869_v34 = vld [vmem:[%s7915_s15 + $0x330] sm:$0xff]  ;;  %v1866_v28 = vld [vmem:[%s7915_s15 + $0x318] sm:$0xff] }
 0x3d2   : > { %4993 = vmatpush1.bf16.msra.mxu0 %v6729_v52  ;;  %5157 = vmatpush1.bf16.msra.mxu1 %v6731_v53  ;;  %v1830_v52 = vld [vmem:[%s7915_s15 + $0x1f8] sm:$0xff]  ;;  %v6277_v53 = vcombine.low %v1817_v40, %v1821_v41  ;;  %v1873_v41 = vld [vmem:[%s7915_s15 + $0x350] sm:$0xff] }
 0x3d3   : > { %5167 = vmatprep.subr.bf16.mxu0 %v6230_v54  ;;  %5331 = vmatprep.subr.bf16.mxu1 %v6232_v55  ;;  %v6279_v54 = vcombine.low %v1818_v42, %v1822_v44  ;;  %v6286_v55 = vcombine.high %v1825_v49, %v1829_v31  ;;  %v6288_v56 = vcombine.high %v1826_v51, %v1830_v52  ;;  %v1877_v42 = vld [vmem:[%s7915_s15 + $0x370] sm:$0xff]  ;;  %v1874_v44 = vld [vmem:[%s7915_s15 + $0x358] sm:$0xff] }
 0x3d5   : > { %4995 = vmatmul.mubr.bf16.vlgmr.msra.gmra.mrb[0].mxu0 %v8626_v61  ;;  %5159 = vmatmul.mubr.bf16.vlgmr.msra.gmra.mrb[0].mxu1 %v8626_v61 }
 0x3d6   : > { %5168 = vmatpush1.bf16.msra.mxu0 %v6229_v0  ;;  %5332 = vmatpush1.bf16.msra.mxu1 %v6231_v2  ;;  %v1838_v0 = vld [vmem:[%s7915_s15 + $0x238] sm:$0xff]  ;;  %v6285_v2 = vcombine.low %v1825_v49, %v1829_v31  ;;  %v1881_v31 = vld [vmem:[%s7915_s15 + $0x390] sm:$0xff] }
 0x3d7   : > { %5169 = vmatprep.subr.bf16.mxu0 %v6238_v12  ;;  %5333 = vmatprep.subr.bf16.mxu1 %v6240_v6  ;;  %v6287_v12 = vcombine.low %v1826_v51, %v1830_v52  ;;  %v6294_v6 = vcombine.high %v1833_v58, %v1837_v62  ;;  %v6296_v35 = vcombine.high %v1834_v63, %v1838_v0  ;;  %v1885_v51 = vld [vmem:[%s7915_s15 + $0x3b0] sm:$0xff]  ;;  %v1882_v52 = vld [vmem:[%s7915_s15 + $0x398] sm:$0xff] }
 0x3d8   : > { %5199 = vmatprep.mubr.bf16.mxu0 %v8339_v43  ;;  %5363 = vmatprep.mubr.bf16.mxu1 %v8339_v43  ;;  %v6255_v43 = vcombine.low %v1794_v17, %v1798_v18  ;;  %v1853_v17 = vld [vmem:[%s7915_s15 + $0x2b0] sm:$0xff]  ;;  %v1850_v18 = vld [vmem:[%s7915_s15 + $0x298] sm:$0xff] }
 0x3da   : > { %5170 = vmatpush1.bf16.msra.mxu0 %v6237_v1  ;;  %5334 = vmatpush1.bf16.msra.mxu1 %v6239_v4  ;;  %v1846_v1 = vld [vmem:[%s7915_s15 + $0x278] sm:$0xff]  ;;  %v6293_v4 = vcombine.low %v1833_v58, %v1837_v62  ;;  %v1889_v62 = vld [vmem:[%s7915_s15 + $0x3d0] sm:$0xff] }
 0x3db   : > { %5171 = vmatprep.subr.bf16.mxu0 %v6246_v5  ;;  %5335 = vmatprep.subr.bf16.mxu1 %v6248_v7  ;;  %v6295_v5 = vcombine.low %v1834_v63, %v1838_v0  ;;  %v6302_v7 = vcombine.high %v1841_v9, %v1845_v26  ;;  %v6304_v13 = vcombine.high %v1842_v10, %v1846_v1  ;;  %v1893_v63 = vld [vmem:[%s7915_s15 + $0x3f0] sm:$0xff]  ;;  %v1890_v0 = vld [vmem:[%s7915_s15 + $0x3d8] sm:$0xff] }
 0x3de   : > { %5172 = vmatpush1.bf16.msra.mxu0 %v6245_v19  ;;  %5336 = vmatpush1.bf16.msra.mxu1 %v6247_v60  ;;  %v1854_v19 = vld [vmem:[%s7915_s15 + $0x2b8] sm:$0xff]  ;;  %v6301_v60 = vcombine.low %v1841_v9, %v1845_v26  ;;  %v1897_v26 = vld [vmem:[%s7915_s15 + $0x410] sm:$0xff] }
 0x3df   : > { %5173 = vmatprep.subr.bf16.mxu0 %v6254_v20  ;;  %5337 = vmatprep.subr.bf16.mxu1 %v6256_v21  ;;  %v6303_v20 = vcombine.low %v1842_v10, %v1846_v1  ;;  %v6310_v21 = vcombine.high %v1849_v14, %v1853_v17  ;;  %v6312_v50 = vcombine.high %v1850_v18, %v1854_v19  ;;  %v1901_v10 = vld [vmem:[%s7915_s15 + $0x430] sm:$0xff]  ;;  %v1898_v1 = vld [vmem:[%s7915_s15 + $0x418] sm:$0xff] }
 0x3e2   : > { %5174 = vmatpush1.bf16.msra.mxu0 %v6253_v30  ;;  %5338 = vmatpush1.bf16.msra.mxu1 %v6255_v43  ;;  %v1862_v30 = vld [vmem:[%s7915_s15 + $0x2f8] sm:$0xff]  ;;  %v6309_v43 = vcombine.low %v1849_v14, %v1853_v17  ;;  %v1905_v17 = vld [vmem:[%s7915_s15 + $0x450] sm:$0xff] }
 0x3e3   : > { %5175 = vmatprep.subr.bf16.mxu0 %v6262_v27  ;;  %5339 = vmatprep.subr.bf16.mxu1 %v6264_v29  ;;  %v6311_v27 = vcombine.low %v1850_v18, %v1854_v19  ;;  %v6318_v29 = vcombine.high %v1857_v23, %v1861_v25  ;;  %v6320_v32 = vcombine.high %v1858_v57, %v1862_v30  ;;  %v1909_v18 = vld [vmem:[%s7915_s15 + $0x470] sm:$0xff]  ;;  %v1906_v19 = vld [vmem:[%s7915_s15 + $0x458] sm:$0xff] }
 0x3e6   : > { %5176 = vmatpush1.bf16.msra.mxu0 %v6261_v36  ;;  %5340 = vmatpush1.bf16.msra.mxu1 %v6263_v38  ;;  %v1870_v36 = vld [vmem:[%s7915_s15 + $0x338] sm:$0xff]  ;;  %v6317_v38 = vcombine.low %v1857_v23, %v1861_v25  ;;  %v1913_v25 = vld [vmem:[%s7915_s15 + $0x490] sm:$0xff] }
 0x3e7   : > { %5177 = vmatprep.subr.bf16.mxu0 %v6270_v15  ;;  %5341 = vmatprep.subr.bf16.mxu1 %v6272_v39  ;;  %v6319_v15 = vcombine.low %v1858_v57, %v1862_v30  ;;  %v6326_v39 = vcombine.high %v1865_v33, %v1869_v34  ;;  %v6328_v40 = vcombine.high %v1866_v28, %v1870_v36  ;;  %v1917_v57 = vld [vmem:[%s7915_s15 + $0x4b0] sm:$0xff]  ;;  %v1914_v30 = vld [vmem:[%s7915_s15 + $0x498] sm:$0xff] }
 0x3ea   : > { %5178 = vmatpush1.bf16.msra.mxu0 %v6269_v45  ;;  %5342 = vmatpush1.bf16.msra.mxu1 %v6271_v3  ;;  %v1878_v45 = vld [vmem:[%s7915_s15 + $0x378] sm:$0xff]  ;;  %v6325_v3 = vcombine.low %v1865_v33, %v1869_v34  ;;  %v1921_v34 = vld [vmem:[%s7915_s15 + $0x4d0] sm:$0xff] }
 0x3eb   : > { %5179 = vmatprep.subr.bf16.mxu0 %v6278_v47  ;;  %5343 = vmatprep.subr.bf16.mxu1 %v6280_v48  ;;  %v6327_v47 = vcombine.low %v1866_v28, %v1870_v36  ;;  %v6334_v48 = vcombine.high %v1873_v41, %v1877_v42  ;;  %v6336_v49 = vcombine.high %v1874_v44, %v1878_v45  ;;  %v1925_v28 = vld [vmem:[%s7915_s15 + $0x4f0] sm:$0xff]  ;;  %v1922_v36 = vld [vmem:[%s7915_s15 + $0x4d8] sm:$0xff] }
 0x3ee   : > { %5180 = vmatpush1.bf16.msra.mxu0 %v6277_v53  ;;  %5344 = vmatpush1.bf16.msra.mxu1 %v6279_v54  ;;  %v1886_v53 = vld [vmem:[%s7915_s15 + $0x3b8] sm:$0xff]  ;;  %v6333_v54 = vcombine.low %v1873_v41, %v1877_v42  ;;  %v1929_v41 = vld [vmem:[%s7915_s15 + $0x510] sm:$0xff] }
 0x3ef   : > { %5181 = vmatprep.subr.bf16.mxu0 %v6286_v55  ;;  %5345 = vmatprep.subr.bf16.mxu1 %v6288_v56  ;;  %v6335_v55 = vcombine.low %v1874_v44, %v1878_v45  ;;  %v6342_v56 = vcombine.high %v1881_v31, %v1885_v51  ;;  %v6344_v58 = vcombine.high %v1882_v52, %v1886_v53  ;;  %v1933_v42 = vld [vmem:[%s7915_s15 + $0x530] sm:$0xff]  ;;  %v1930_v44 = vld [vmem:[%s7915_s15 + $0x518] sm:$0xff] }
 0x3f0   : > { %v1934_v45 = vld [vmem:[%s7915_s15 + $0x538] sm:$0xff] }
 0x3f2   : > { %5182 = vmatpush1.bf16.msra.mxu0 %v6285_v2  ;;  %5346 = vmatpush1.bf16.msra.mxu1 %v6287_v12  ;;  %v1894_v2 = vld [vmem:[%s7915_s15 + $0x3f8] sm:$0xff]  ;;  %v6341_v12 = vcombine.low %v1881_v31, %v1885_v51  ;;  %v1941_v31 = vld [vmem:[%s7915_s15 + $0x570] sm:$0xff] }
 0x3f3   : > { %5183 = vmatprep.subr.bf16.mxu0 %v6294_v6  ;;  %5347 = vmatprep.subr.bf16.mxu1 %v6296_v35  ;;  %v6343_v6 = vcombine.low %v1882_v52, %v1886_v53  ;;  %v6350_v35 = vcombine.high %v1889_v62, %v1893_v63  ;;  %v6352_v9 = vcombine.high %v1890_v0, %v1894_v2  ;;  %v1938_v51 = vld [vmem:[%s7915_s15 + $0x558] sm:$0xff] }
 0x3f4   : > { %v1942_v52 = vld [vmem:[%s7915_s15 + $0x578] sm:$0xff]  ;;  %v6389_v53 = vcombine.low %v1929_v41, %v1933_v42 }
 0x3f6   : > { %5184 = vmatpush1.bf16.msra.mxu0 %v6293_v4  ;;  %5348 = vmatpush1.bf16.msra.mxu1 %v6295_v5  ;;  %v1902_v4 = vld [vmem:[%s7915_s15 + $0x438] sm:$0xff]  ;;  %v6349_v5 = vcombine.low %v1889_v62, %v1893_v63  ;;  %v1949_v62 = vld [vmem:[%s7915_s15 + $0x5b0] sm:$0xff] }
 0x3f7   : > { %5185 = vmatprep.subr.bf16.mxu0 %v6302_v7  ;;  %5349 = vmatprep.subr.bf16.mxu1 %v6304_v13  ;;  %v6351_v7 = vcombine.low %v1890_v0, %v1894_v2  ;;  %v6358_v13 = vcombine.high %v1897_v26, %v1901_v10  ;;  %v6360_v14 = vcombine.high %v1898_v1, %v1902_v4  ;;  %v1946_v63 = vld [vmem:[%s7915_s15 + $0x598] sm:$0xff] }
 0x3f8   : > { %v1950_v0 = vld [vmem:[%s7915_s15 + $0x5b8] sm:$0xff] }
 0x3fa   : > { %5186 = vmatpush1.bf16.msra.mxu0 %v6301_v60  ;;  %5350 = vmatpush1.bf16.msra.mxu1 %v6303_v20  ;;  %v1910_v60 = vld [vmem:[%s7915_s15 + $0x478] sm:$0xff]  ;;  %v6357_v20 = vcombine.low %v1897_v26, %v1901_v10  ;;  %v1957_v26 = vld [vmem:[%s7915_s15 + $0x5f0] sm:$0xff] }
 0x3fb   : > { %5187 = vmatprep.subr.bf16.mxu0 %v6310_v21  ;;  %5351 = vmatprep.subr.bf16.mxu1 %v6312_v50  ;;  %v6359_v21 = vcombine.low %v1898_v1, %v1902_v4  ;;  %v6366_v50 = vcombine.high %v1905_v17, %v1909_v18  ;;  %v6368_v23 = vcombine.high %v1906_v19, %v1910_v60  ;;  %v1954_v10 = vld [vmem:[%s7915_s15 + $0x5d8] sm:$0xff] }
 0x3fc   : > { %v1958_v1 = vld [vmem:[%s7915_s15 + $0x5f8] sm:$0xff] }
 0x3fe   : > { %5188 = vmatpush1.bf16.msra.mxu0 %v6309_v43  ;;  %5352 = vmatpush1.bf16.msra.mxu1 %v6311_v27  ;;  %v1918_v43 = vld [vmem:[%s7915_s15 + $0x4b8] sm:$0xff]  ;;  %v6365_v27 = vcombine.low %v1905_v17, %v1909_v18  ;;  %v1965_v17 = vld [vmem:[%s7915_s15 + $0x630] sm:$0xff] }
 0x3ff   : > { %5189 = vmatprep.subr.bf16.mxu0 %v6318_v29  ;;  %5353 = vmatprep.subr.bf16.mxu1 %v6320_v32  ;;  %v6367_v29 = vcombine.low %v1906_v19, %v1910_v60  ;;  %v6374_v32 = vcombine.high %v1913_v25, %v1917_v57  ;;  %v6376_v33 = vcombine.high %v1914_v30, %v1918_v43  ;;  %v1962_v18 = vld [vmem:[%s7915_s15 + $0x618] sm:$0xff] }
 0x400   : > { %v1966_v19 = vld [vmem:[%s7915_s15 + $0x638] sm:$0xff] }
 0x402   : > { %5190 = vmatpush1.bf16.msra.mxu0 %v6317_v38  ;;  %5354 = vmatpush1.bf16.msra.mxu1 %v6319_v15  ;;  %v1926_v38 = vld [vmem:[%s7915_s15 + $0x4f8] sm:$0xff]  ;;  %v6375_v15 = vcombine.low %v1914_v30, %v1918_v43 }
 0x403   : > { %5191 = vmatprep.subr.bf16.mxu0 %v6326_v39  ;;  %5355 = vmatprep.subr.bf16.mxu1 %v6328_v40  ;;  %v6382_v39 = vcombine.high %v1921_v34, %v1925_v28  ;;  %v6384_v40 = vcombine.high %v1922_v36, %v1926_v38  ;;  %v1974_v30 = vld [vmem:[%s7915_s15 + $0x678] sm:$0xff] }
 0x406   : > { %5192 = vmatpush1.bf16.msra.mxu0 %v6325_v3  ;;  %5356 = vmatpush1.bf16.msra.mxu1 %v6327_v47  ;;  %v6381_v3 = vcombine.low %v1921_v34, %v1925_v28  ;;  %v6390_v47 = vcombine.high %v1929_v41, %v1933_v42  ;;  %v1981_v34 = vld [vmem:[%s7915_s15 + $0x6b0] sm:$0xff]  ;;  %v1978_v28 = vld [vmem:[%s7915_s15 + $0x698] sm:$0xff] }
 0x407   : > { %5193 = vmatprep.subr.bf16.mxu0 %v6334_v48  ;;  %5357 = vmatprep.subr.bf16.mxu1 %v6336_v49  ;;  %v6392_v48 = vcombine.high %v1930_v44, %v1934_v45  ;;  %v1937_v49 = vld [vmem:[%s7915_s15 + $0x550] sm:$0xff]  ;;  %v1986_v42 = vld [vmem:[%s7915_s15 + $0x6d8] sm:$0xff] }
 0x408   : > { %v6397_v2 = vcombine.low %v1937_v49, %v1941_v31  ;;  %v1989_v41 = vld [vmem:[%s7915_s15 + $0x6f0] sm:$0xff] }
 0x40a   : > { %5194 = vmatpush1.bf16.msra.mxu0 %v6333_v54  ;;  %5358 = vmatpush1.bf16.msra.mxu1 %v6335_v55  ;;  %v6391_v54 = vcombine.low %v1930_v44, %v1934_v45  ;;  %v6398_v55 = vcombine.high %v1937_v49, %v1941_v31  ;;  %v1990_v44 = vld [vmem:[%s7915_s15 + $0x6f8] sm:$0xff]  ;;  %v1997_v49 = vld [vmem:[%s7915_s15 + $0x730] sm:$0xff] }
 0x40b   : > { %5195 = vmatprep.subr.bf16.mxu0 %v6342_v56  ;;  %5359 = vmatprep.subr.bf16.mxu1 %v6344_v58  ;;  %v6400_v56 = vcombine.high %v1938_v51, %v1942_v52  ;;  %v1945_v58 = vld [vmem:[%s7915_s15 + $0x590] sm:$0xff]  ;;  %v1994_v31 = vld [vmem:[%s7915_s15 + $0x718] sm:$0xff] }
 0x40c   : > { %v6405_v4 = vcombine.low %v1945_v58, %v1949_v62 }
 0x40e   : > { %5196 = vmatpush1.bf16.msra.mxu0 %v6341_v12  ;;  %5360 = vmatpush1.bf16.msra.mxu1 %v6343_v6  ;;  %v6399_v12 = vcombine.low %v1938_v51, %v1942_v52  ;;  %v6406_v6 = vcombine.high %v1945_v58, %v1949_v62  ;;  %v1998_v51 = vld [vmem:[%s7915_s15 + $0x738] sm:$0xff]  ;;  %v2005_v58 = vld [vmem:[%s7915_s15 + $0x770] sm:$0xff] }
 0x40f   : > { %5197 = vmatprep.subr.bf16.mxu0 %v6350_v35  ;;  %5361 = vmatprep.subr.bf16.mxu1 %v6352_v9  ;;  %v6408_v35 = vcombine.high %v1946_v63, %v1950_v0  ;;  %v1953_v9 = vld [vmem:[%s7915_s15 + $0x5d0] sm:$0xff]  ;;  %v2002_v62 = vld [vmem:[%s7915_s15 + $0x758] sm:$0xff] }
 0x410   : > { %v6413_v60 = vcombine.low %v1953_v9, %v1957_v26 }
 0x412   : > { %5198 = vmatpush1.bf16.msra.mxu0 %v6349_v5  ;;  %5362 = vmatpush1.bf16.msra.mxu1 %v6351_v7  ;;  %v6407_v5 = vcombine.low %v1946_v63, %v1950_v0  ;;  %v6414_v7 = vcombine.high %v1953_v9, %v1957_v26  ;;  %v2006_v63 = vld [vmem:[%s7915_s15 + $0x778] sm:$0xff]  ;;  %v2013_v9 = vld [vmem:[%s7915_s15 + $0x7b0] sm:$0xff] }
 0x413   : > { %5208 = vmatprep.subr.bf16.mxu0 %v6358_v13  ;;  %5372 = vmatprep.subr.bf16.mxu1 %v6360_v14  ;;  %v6416_v13 = vcombine.high %v1954_v10, %v1958_v1  ;;  %v1961_v14 = vld [vmem:[%s7915_s15 + $0x610] sm:$0xff]  ;;  %v2010_v26 = vld [vmem:[%s7915_s15 + $0x798] sm:$0xff] }
 0x414   : > { %v6421_v43 = vcombine.low %v1961_v14, %v1965_v17 }
 0x415   : > { %5200 = vmatmul.mubr.bf16.vlgmr.msra.gmra.mrb[4].mxu0 %v8388_v59  ;;  %5364 = vmatmul.mubr.bf16.vlgmr.msra.gmra.mrb[4].mxu1 %v8388_v59  ;;  %v6373_v59 = vcombine.low %v1913_v25, %v1917_v57  ;;  %v1973_v25 = vld [vmem:[%s7915_s15 + $0x670] sm:$0xff]  ;;  %v1970_v57 = vld [vmem:[%s7915_s15 + $0x658] sm:$0xff] }
 0x416   : > { %5209 = vmatpush1.bf16.msra.mxu0 %v6357_v20  ;;  %5373 = vmatpush1.bf16.msra.mxu1 %v6359_v21  ;;  %v6415_v20 = vcombine.low %v1954_v10, %v1958_v1  ;;  %v6422_v21 = vcombine.high %v1961_v14, %v1965_v17  ;;  %v2014_v10 = vld [vmem:[%s7915_s15 + $0x7b8] sm:$0xff]  ;;  %v2021_v14 = vld [vmem:[%s7915_s15 + $0x7f0] sm:$0xff] }
 0x417   : > { %5210 = vmatprep.subr.bf16.mxu0 %v6366_v50  ;;  %5374 = vmatprep.subr.bf16.mxu1 %v6368_v23  ;;  %v6424_v50 = vcombine.high %v1962_v18, %v1966_v19  ;;  %v1969_v23 = vld [vmem:[%s7915_s15 + $0x650] sm:$0xff]  ;;  %v2018_v17 = vld [vmem:[%s7915_s15 + $0x7d8] sm:$0xff] }
 0x418   : > { %5240 = vmatprep.mubr.bf16.mxu0 %v8394_v8  ;;  %5404 = vmatprep.mubr.bf16.mxu1 %v8394_v8  ;;  %v6383_v8 = vcombine.low %v1922_v36, %v1926_v38  ;;  %v1982_v36 = vld [vmem:[%s7915_s15 + $0x6b8] sm:$0xff]  ;;  %v6429_v38 = vcombine.low %v1969_v23, %v1973_v25 }
 0x41a   : > { %5211 = vmatpush1.bf16.msra.mxu0 %v6365_v27  ;;  %5375 = vmatpush1.bf16.msra.mxu1 %v6367_v29  ;;  %v6423_v27 = vcombine.low %v1962_v18, %v1966_v19  ;;  %v6430_v29 = vcombine.high %v1969_v23, %v1973_v25  ;;  %v2022_v18 = vld [vmem:[%s7915_s15 + $0x7f8] sm:$0xff]  ;;  %v2029_v23 = vld [vmem:[%s7915_s15 + $0x830] sm:$0xff] }
 0x41b   : > { %5212 = vmatprep.subr.bf16.mxu0 %v6374_v32  ;;  %5376 = vmatprep.subr.bf16.mxu1 %v6376_v33  ;;  %v6432_v32 = vcombine.high %v1970_v57, %v1974_v30  ;;  %v1977_v33 = vld [vmem:[%s7915_s15 + $0x690] sm:$0xff]  ;;  %v2026_v25 = vld [vmem:[%s7915_s15 + $0x818] sm:$0xff] }
 0x41c   : > { %v6437_v45 = vcombine.low %v1977_v33, %v1981_v34 }
 0x41e   : > { %5213 = vmatpush1.bf16.msra.mxu0 %v6373_v59  ;;  %5377 = vmatpush1.bf16.msra.mxu1 %v6375_v15  ;;  %v6431_v59 = vcombine.low %v1970_v57, %v1974_v30  ;;  %v6438_v15 = vcombine.high %v1977_v33, %v1981_v34  ;;  %v2030_v57 = vld [vmem:[%s7915_s15 + $0x838] sm:$0xff]  ;;  %v2037_v33 = vld [vmem:[%s7915_s15 + $0x870] sm:$0xff] }
 0x41f   : > { %5214 = vmatprep.subr.bf16.mxu0 %v6382_v39  ;;  %5378 = vmatprep.subr.bf16.mxu1 %v6384_v40  ;;  %v6440_v39 = vcombine.high %v1978_v28, %v1982_v36  ;;  %v1985_v40 = vld [vmem:[%s7915_s15 + $0x6d0] sm:$0xff]  ;;  %v2034_v34 = vld [vmem:[%s7915_s15 + $0x858] sm:$0xff] }
 0x420   : > { %v6445_v52 = vcombine.low %v1985_v40, %v1989_v41 }
 0x422   : > { %5215 = vmatpush1.bf16.msra.mxu0 %v6381_v3  ;;  %5379 = vmatpush1.bf16.msra.mxu1 %v6383_v8  ;;  %v6439_v3 = vcombine.low %v1978_v28, %v1982_v36  ;;  %v6446_v8 = vcombine.high %v1985_v40, %v1989_v41  ;;  %v2038_v28 = vld [vmem:[%s7915_s15 + $0x878] sm:$0xff]  ;;  %v2045_v40 = vld [vmem:[%s7915_s15 + $0x8b0] sm:$0xff] }
 0x423   : > { %5216 = vmatprep.subr.bf16.mxu0 %v6390_v47  ;;  %5380 = vmatprep.subr.bf16.mxu1 %v6392_v48  ;;  %v6448_v47 = vcombine.high %v1986_v42, %v1990_v44  ;;  %v1993_v48 = vld [vmem:[%s7915_s15 + $0x710] sm:$0xff]  ;;  %v2042_v41 = vld [vmem:[%s7915_s15 + $0x898] sm:$0xff] }
 0x424   : > { %v6453_v0 = vcombine.low %v1993_v48, %v1997_v49 }
 0x426   : > { %5217 = vmatpush1.bf16.msra.mxu0 %v6389_v53  ;;  %5381 = vmatpush1.bf16.msra.mxu1 %v6391_v54  ;;  %v6447_v53 = vcombine.low %v1986_v42, %v1990_v44  ;;  %v6454_v54 = vcombine.high %v1993_v48, %v1997_v49  ;;  %v2046_v42 = vld [vmem:[%s7915_s15 + $0x8b8] sm:$0xff]  ;;  %v2053_v48 = vld [vmem:[%s7915_s15 + $0x8f0] sm:$0xff] }
 0x427   : > { %5218 = vmatprep.subr.bf16.mxu0 %v6398_v55  ;;  %5382 = vmatprep.subr.bf16.mxu1 %v6400_v56  ;;  %v6456_v55 = vcombine.high %v1994_v31, %v1998_v51  ;;  %v2001_v56 = vld [vmem:[%s7915_s15 + $0x750] sm:$0xff]  ;;  %v2050_v49 = vld [vmem:[%s7915_s15 + $0x8d8] sm:$0xff] }
 0x428   : > { %v6461_v1 = vcombine.low %v2001_v56, %v2005_v58 }
 0x42a   : > { %5219 = vmatpush1.bf16.msra.mxu0 %v6397_v2  ;;  %5383 = vmatpush1.bf16.msra.mxu1 %v6399_v12  ;;  %v6455_v2 = vcombine.low %v1994_v31, %v1998_v51  ;;  %v6462_v12 = vcombine.high %v2001_v56, %v2005_v58  ;;  %v2054_v31 = vld [vmem:[%s7915_s15 + $0x8f8] sm:$0xff]  ;;  %v6503_v51 = vcombine.low %v2042_v41, %v2046_v42 }
 0x42b   : > { %5220 = vmatprep.subr.bf16.mxu0 %v6406_v6  ;;  %5384 = vmatprep.subr.bf16.mxu1 %v6408_v35  ;;  %v6464_v6 = vcombine.high %v2002_v62, %v2006_v63  ;;  %v2009_v35 = vld [vmem:[%s7915_s15 + $0x790] sm:$0xff]  ;;  %v2058_v56 = vld [vmem:[%s7915_s15 + $0x918] sm:$0xff] }
 0x42c   : > { %v6469_v19 = vcombine.low %v2009_v35, %v2013_v9  ;;  %v2062_v58 = vld [vmem:[%s7915_s15 + $0x938] sm:$0xff] }
 0x42e   : > { %5221 = vmatpush1.bf16.msra.mxu0 %v6405_v4  ;;  %5385 = vmatpush1.bf16.msra.mxu1 %v6407_v5  ;;  %v6463_v4 = vcombine.low %v2002_v62, %v2006_v63  ;;  %v6470_v5 = vcombine.high %v2009_v35, %v2013_v9  ;;  %v2070_v35 = vld [vmem:[%s7915_s15 + $0x978] sm:$0xff] }
 0x42f   : > { %5222 = vmatprep.subr.bf16.mxu0 %v6414_v7  ;;  %5386 = vmatprep.subr.bf16.mxu1 %v6416_v13  ;;  %v6472_v7 = vcombine.high %v2010_v26, %v2014_v10  ;;  %v2017_v13 = vld [vmem:[%s7915_s15 + $0x7d0] sm:$0xff] }
 0x430   : > { %v6477_v30 = vcombine.low %v2017_v13, %v2021_v14 }
 0x432   : > { %5223 = vmatpush1.bf16.msra.mxu0 %v6413_v60  ;;  %5387 = vmatpush1.bf16.msra.mxu1 %v6415_v20  ;;  %v6471_v60 = vcombine.low %v2010_v26, %v2014_v10  ;;  %v6478_v20 = vcombine.high %v2017_v13, %v2021_v14  ;;  %v6519_v26 = vcombine.low %v2058_v56, %v2062_v58  ;;  %v2078_v13 = vld [vmem:[%s7915_s15 + $0x9b8] sm:$0xff] }
 0x433   : > { %5224 = vmatprep.subr.bf16.mxu0 %v6422_v21  ;;  %5388 = vmatprep.subr.bf16.mxu1 %v6424_v50  ;;  %v6480_v21 = vcombine.high %v2018_v17, %v2022_v18  ;;  %v2025_v50 = vld [vmem:[%s7915_s15 + $0x810] sm:$0xff] }
 0x434   : > { %v6485_v36 = vcombine.low %v2025_v50, %v2029_v23 }
 0x436   : > { %5225 = vmatpush1.bf16.msra.mxu0 %v6421_v43  ;;  %5389 = vmatpush1.bf16.msra.mxu1 %v6423_v27  ;;  %v6479_v43 = vcombine.low %v2018_v17, %v2022_v18  ;;  %v6486_v27 = vcombine.high %v2025_v50, %v2029_v23  ;;  %v2086_v50 = vld [vmem:[%s7915_s15 + $0x9f8] sm:$0xff] }
 0x437   : > { %5226 = vmatprep.subr.bf16.mxu0 %v6430_v29  ;;  %5390 = vmatprep.subr.bf16.mxu1 %v6432_v32  ;;  %v6488_v29 = vcombine.high %v2026_v25, %v2030_v57  ;;  %v2033_v32 = vld [vmem:[%s7915_s15 + $0x850] sm:$0xff] }
 0x438   : > { %v6493_v44 = vcombine.low %v2033_v32, %v2037_v33 }
 0x43a   : > { %5227 = vmatpush1.bf16.msra.mxu0 %v6429_v38  ;;  %5391 = vmatpush1.bf16.msra.mxu1 %v6431_v59  ;;  %v6487_v38 = vcombine.low %v2026_v25, %v2030_v57  ;;  %v6494_v59 = vcombine.high %v2033_v32, %v2037_v33  ;;  %v2094_v32 = vld [vmem:[%s7915_s15 + $0xa38] sm:$0xff] }
 0x43b   : > { %5228 = vmatprep.subr.bf16.mxu0 %v6438_v15  ;;  %5392 = vmatprep.subr.bf16.mxu1 %v6440_v39  ;;  %v6496_v15 = vcombine.high %v2034_v34, %v2038_v28  ;;  %v2041_v39 = vld [vmem:[%s7915_s15 + $0x890] sm:$0xff] }
 0x43e   : > { %5229 = vmatpush1.bf16.msra.mxu0 %v6437_v45  ;;  %5393 = vmatpush1.bf16.msra.mxu1 %v6439_v3  ;;  %v6495_v45 = vcombine.low %v2034_v34, %v2038_v28  ;;  %v6502_v3 = vcombine.high %v2041_v39, %v2045_v40 }
 0x43f   : > { %5230 = vmatprep.subr.bf16.mxu0 %v6446_v8  ;;  %5394 = vmatprep.subr.bf16.mxu1 %v6448_v47  ;;  %v6504_v8 = vcombine.high %v2042_v41, %v2046_v42  ;;  %v2049_v47 = vld [vmem:[%s7915_s15 + $0x8d0] sm:$0xff] }
 0x440   : > { %v6509_v62 = vcombine.low %v2049_v47, %v2053_v48 }
 0x442   : > { %5231 = vmatpush1.bf16.msra.mxu0 %v6445_v52  ;;  %5395 = vmatpush1.bf16.msra.mxu1 %v6447_v53  ;;  %v6510_v52 = vcombine.high %v2049_v47, %v2053_v48  ;;  %v6512_v53 = vcombine.high %v2050_v49, %v2054_v31  ;;  %v2110_v47 = vld [vmem:[%s7915_s15 + $0xab8] sm:$0xff] }
 0x443   : > { %5232 = vmatprep.subr.bf16.mxu0 %v6454_v54  ;;  %5396 = vmatprep.subr.bf16.mxu1 %v6456_v55  ;;  %v2057_v54 = vld [vmem:[%s7915_s15 + $0x910] sm:$0xff] }
 0x444   : > { %v2061_v55 = vld [vmem:[%s7915_s15 + $0x930] sm:$0xff] }
 0x445   : > { %v6518_v63 = vcombine.high %v2057_v54, %v2061_v55  ;;  %v6517_v9 = vcombine.low %v2057_v54, %v2061_v55  ;;  %v2118_v54 = vld [vmem:[%s7915_s15 + $0xaf8] sm:$0xff] }
 0x446   : > { %5233 = vmatpush1.bf16.msra.mxu0 %v6453_v0  ;;  %5397 = vmatpush1.bf16.msra.mxu1 %v6455_v2  ;;  %v6520_v0 = vcombine.high %v2058_v56, %v2062_v58  ;;  %v2065_v2 = vld [vmem:[%s7915_s15 + $0x950] sm:$0xff] }
 0x447   : > { %5234 = vmatprep.subr.bf16.mxu0 %v6462_v12  ;;  %5398 = vmatprep.subr.bf16.mxu1 %v6464_v6  ;;  %v2069_v12 = vld [vmem:[%s7915_s15 + $0x970] sm:$0xff]  ;;  %v2066_v6 = vld [vmem:[%s7915_s15 + $0x958] sm:$0xff] }
 0x448   : > { %v6526_v10 = vcombine.high %v2065_v2, %v2069_v12  ;;  %v6525_v14 = vcombine.low %v2065_v2, %v2069_v12  ;;  %v6527_v17 = vcombine.low %v2066_v6, %v2070_v35  ;;  %v2126_v2 = vld [vmem:[%s7915_s15 + $0xb38] sm:$0xff] }
 0x44a   : > { %5235 = vmatpush1.bf16.msra.mxu0 %v6461_v1  ;;  %5399 = vmatpush1.bf16.msra.mxu1 %v6463_v4  ;;  %v6528_v1 = vcombine.high %v2066_v6, %v2070_v35  ;;  %v2073_v4 = vld [vmem:[%s7915_s15 + $0x990] sm:$0xff] }
 0x44b   : > { %5236 = vmatprep.subr.bf16.mxu0 %v6470_v5  ;;  %5400 = vmatprep.subr.bf16.mxu1 %v6472_v7  ;;  %v2077_v5 = vld [vmem:[%s7915_s15 + $0x9b0] sm:$0xff]  ;;  %v2074_v7 = vld [vmem:[%s7915_s15 + $0x998] sm:$0xff] }
 0x44c   : > { %v6534_v18 = vcombine.high %v2073_v4, %v2077_v5  ;;  %v6533_v23 = vcombine.low %v2073_v4, %v2077_v5  ;;  %v6535_v25 = vcombine.low %v2074_v7, %v2078_v13  ;;  %v2134_v4 = vld [vmem:[%s7915_s15 + $0xb78] sm:$0xff] }
 0x44e   : > { %5237 = vmatpush1.bf16.msra.mxu0 %v6469_v19  ;;  %5401 = vmatpush1.bf16.msra.mxu1 %v6471_v60  ;;  %v6536_v19 = vcombine.high %v2074_v7, %v2078_v13  ;;  %v2081_v60 = vld [vmem:[%s7915_s15 + $0x9d0] sm:$0xff] }
 0x44f   : > { %5238 = vmatprep.subr.bf16.mxu0 %v6478_v20  ;;  %5402 = vmatprep.subr.bf16.mxu1 %v6480_v21  ;;  %v2085_v20 = vld [vmem:[%s7915_s15 + $0x9f0] sm:$0xff]  ;;  %v2082_v21 = vld [vmem:[%s7915_s15 + $0x9d8] sm:$0xff] }
 0x450   : > { %v6542_v57 = vcombine.high %v2081_v60, %v2085_v20  ;;  %v6541_v33 = vcombine.low %v2081_v60, %v2085_v20  ;;  %v6543_v34 = vcombine.low %v2082_v21, %v2086_v50  ;;  %v2142_v60 = vld [vmem:[%s7915_s15 + $0xbb8] sm:$0xff] }
 0x452   : > { %5239 = vmatpush1.bf16.msra.mxu0 %v6477_v30  ;;  %5403 = vmatpush1.bf16.msra.mxu1 %v6479_v43  ;;  %v6544_v30 = vcombine.high %v2082_v21, %v2086_v50  ;;  %v2089_v43 = vld [vmem:[%s7915_s15 + $0xa10] sm:$0xff] }
 0x453   : > { %5249 = vmatprep.subr.bf16.mxu0 %v6486_v27  ;;  %5413 = vmatprep.subr.bf16.mxu1 %v6488_v29  ;;  %v2093_v27 = vld [vmem:[%s7915_s15 + $0xa30] sm:$0xff]  ;;  %v2090_v29 = vld [vmem:[%s7915_s15 + $0xa18] sm:$0xff] }
 0x454   : > { %v6550_v28 = vcombine.high %v2089_v43, %v2093_v27  ;;  %v6551_v41 = vcombine.low %v2090_v29, %v2094_v32 }
 0x455   : > { %5241 = vmatmul.mubr.bf16.vlgmr.msra.gmra.mrb[4].mxu0 %v8471_v11  ;;  %5405 = vmatmul.mubr.bf16.vlgmr.msra.gmra.mrb[4].mxu1 %v8471_v11  ;;  %v6501_v11 = vcombine.low %v2041_v39, %v2045_v40  ;;  %v2102_v39 = vld [vmem:[%s7915_s15 + $0xa78] sm:$0xff]  ;;  %v6549_v40 = vcombine.low %v2089_v43, %v2093_v27 }
 0x456   : > { %5250 = vmatpush1.bf16.msra.mxu0 %v6485_v36  ;;  %5414 = vmatpush1.bf16.msra.mxu1 %v6487_v38  ;;  %v6552_v36 = vcombine.high %v2090_v29, %v2094_v32  ;;  %v2097_v38 = vld [vmem:[%s7915_s15 + $0xa50] sm:$0xff]  ;;  %v2150_v43 = vld [vmem:[%s7915_s15 + $0xbf8] sm:$0xff] }
 0x457   : > { %5251 = vmatprep.subr.bf16.mxu0 %v6494_v59  ;;  %5415 = vmatprep.subr.bf16.mxu1 %v6496_v15  ;;  %v2101_v59 = vld [vmem:[%s7915_s15 + $0xa70] sm:$0xff]  ;;  %v2098_v15 = vld [vmem:[%s7915_s15 + $0xa58] sm:$0xff] }
 0x458   : > { %5281 = vmatprep.mubr.bf16.mxu0 %v8477_v22  ;;  %5445 = vmatprep.mubr.bf16.mxu1 %v8477_v22  ;;  %v6511_v22 = vcombine.low %v2050_v49, %v2054_v31  ;;  %v6558_v42 = vcombine.high %v2097_v38, %v2101_v59  ;;  %v6557_v48 = vcombine.low %v2097_v38, %v2101_v59  ;;  %v2158_v38 = vld [vmem:[%s7915_s15 + $0xc38] sm:$0xff] }
 0x459   : > { %v6559_v49 = vcombine.low %v2098_v15, %v2102_v39 }
 0x45a   : > { %5252 = vmatpush1.bf16.msra.mxu0 %v6493_v44  ;;  %5416 = vmatpush1.bf16.msra.mxu1 %v6495_v45  ;;  %v6560_v44 = vcombine.high %v2098_v15, %v2102_v39  ;;  %v2105_v45 = vld [vmem:[%s7915_s15 + $0xa90] sm:$0xff] }
 0x45b   : > { %5253 = vmatprep.subr.bf16.mxu0 %v6502_v3  ;;  %5417 = vmatprep.subr.bf16.mxu1 %v6504_v8  ;;  %v2109_v3 = vld [vmem:[%s7915_s15 + $0xab0] sm:$0xff]  ;;  %v2106_v8 = vld [vmem:[%s7915_s15 + $0xa98] sm:$0xff] }
 0x45c   : > { %v6566_v31 = vcombine.high %v2105_v45, %v2109_v3  ;;  %v6565_v55 = vcombine.low %v2105_v45, %v2109_v3  ;;  %v6567_v56 = vcombine.low %v2106_v8, %v2110_v47  ;;  %v2166_v45 = vld [vmem:[%s7915_s15 + $0xc78] sm:$0xff] }
 0x45e   : > { %5254 = vmatpush1.bf16.msra.mxu0 %v6501_v11  ;;  %5418 = vmatpush1.bf16.msra.mxu1 %v6503_v51  ;;  %v6568_v11 = vcombine.high %v2106_v8, %v2110_v47  ;;  %v2113_v51 = vld [vmem:[%s7915_s15 + $0xad0] sm:$0xff] }
 0x45f   : > { %5255 = vmatprep.subr.bf16.mxu0 %v6510_v52  ;;  %5419 = vmatprep.subr.bf16.mxu1 %v6512_v53  ;;  %v2117_v52 = vld [vmem:[%s7915_s15 + $0xaf0] sm:$0xff]  ;;  %v2114_v53 = vld [vmem:[%s7915_s15 + $0xad8] sm:$0xff] }
 0x460   : > { %v6574_v58 = vcombine.high %v2113_v51, %v2117_v52  ;;  %v6573_v12 = vcombine.low %v2113_v51, %v2117_v52  ;;  %v6575_v6 = vcombine.low %v2114_v53, %v2118_v54  ;;  %v2174_v51 = vld [vmem:[%s7915_s15 + $0xcb8] sm:$0xff] }
 0x462   : > { %5256 = vmatpush1.bf16.msra.mxu0 %v6509_v62  ;;  %5420 = vmatpush1.bf16.msra.mxu1 %v6511_v22  ;;  %v6576_v62 = vcombine.high %v2114_v53, %v2118_v54  ;;  %v2121_v22 = vld [vmem:[%s7915_s15 + $0xb10] sm:$0xff] }
 0x463   : > { %5257 = vmatprep.subr.bf16.mxu0 %v6518_v63  ;;  %5421 = vmatprep.subr.bf16.mxu1 %v6520_v0  ;;  %v2125_v63 = vld [vmem:[%s7915_s15 + $0xb30] sm:$0xff]  ;;  %v2122_v0 = vld [vmem:[%s7915_s15 + $0xb18] sm:$0xff] }
 0x464   : > { %v6582_v35 = vcombine.high %v2121_v22, %v2125_v63  ;;  %v6581_v5 = vcombine.low %v2121_v22, %v2125_v63  ;;  %v6583_v7 = vcombine.low %v2122_v0, %v2126_v2  ;;  %v2182_v22 = vld [vmem:[%s7915_s15 + $0xcf8] sm:$0xff] }
 0x466   : > { %5258 = vmatpush1.bf16.msra.mxu0 %v6517_v9  ;;  %5422 = vmatpush1.bf16.msra.mxu1 %v6519_v26  ;;  %v6584_v9 = vcombine.high %v2122_v0, %v2126_v2  ;;  %v2129_v26 = vld [vmem:[%s7915_s15 + $0xb50] sm:$0xff] }
 0x467   : > { %5259 = vmatprep.subr.bf16.mxu0 %v6526_v10  ;;  %5423 = vmatprep.subr.bf16.mxu1 %v6528_v1  ;;  %v2133_v10 = vld [vmem:[%s7915_s15 + $0xb70] sm:$0xff]  ;;  %v2130_v1 = vld [vmem:[%s7915_s15 + $0xb58] sm:$0xff] }
 0x468   : > { %v6590_v13 = vcombine.high %v2129_v26, %v2133_v10  ;;  %v6589_v20 = vcombine.low %v2129_v26, %v2133_v10  ;;  %v6591_v21 = vcombine.low %v2130_v1, %v2134_v4 }
 0x46a   : > { %5260 = vmatpush1.bf16.msra.mxu0 %v6525_v14  ;;  %5424 = vmatpush1.bf16.msra.mxu1 %v6527_v17  ;;  %v6592_v14 = vcombine.high %v2130_v1, %v2134_v4  ;;  %v2137_v17 = vld [vmem:[%s7915_s15 + $0xb90] sm:$0xff] }
 0x46b   : > { %5261 = vmatprep.subr.bf16.mxu0 %v6534_v18  ;;  %5425 = vmatprep.subr.bf16.mxu1 %v6536_v19  ;;  %v2141_v18 = vld [vmem:[%s7915_s15 + $0xbb0] sm:$0xff]  ;;  %v2138_v19 = vld [vmem:[%s7915_s15 + $0xb98] sm:$0xff] }
 0x46c   : > { %v6598_v50 = vcombine.high %v2137_v17, %v2141_v18  ;;  %v6597_v27 = vcombine.low %v2137_v17, %v2141_v18  ;;  %v6599_v29 = vcombine.low %v2138_v19, %v2142_v60  ;;  %v2193_v4 = vld [vmem:[%s7915_s15 + $0xd50] sm:$0xff] }
 0x46e   : > { %5262 = vmatpush1.bf16.msra.mxu0 %v6533_v23  ;;  %5426 = vmatpush1.bf16.msra.mxu1 %v6535_v25  ;;  %v6600_v23 = vcombine.high %v2138_v19, %v2142_v60  ;;  %v2145_v25 = vld [vmem:[%s7915_s15 + $0xbd0] sm:$0xff] }
 0x46f   : > { %5263 = vmatprep.subr.bf16.mxu0 %v6542_v57  ;;  %5427 = vmatprep.subr.bf16.mxu1 %v6544_v30  ;;  %v2149_v57 = vld [vmem:[%s7915_s15 + $0xbf0] sm:$0xff]  ;;  %v2146_v30 = vld [vmem:[%s7915_s15 + $0xbd8] sm:$0xff] }
 0x470   : > { %v6606_v32 = vcombine.high %v2145_v25, %v2149_v57  ;;  %v6605_v59 = vcombine.low %v2145_v25, %v2149_v57  ;;  %v6607_v15 = vcombine.low %v2146_v30, %v2150_v43  ;;  %v2201_v60 = vld [vmem:[%s7915_s15 + $0xd90] sm:$0xff] }
 0x472   : > { %5264 = vmatpush1.bf16.msra.mxu0 %v6541_v33  ;;  %5428 = vmatpush1.bf16.msra.mxu1 %v6543_v34  ;;  %v6608_v33 = vcombine.high %v2146_v30, %v2150_v43  ;;  %v2153_v34 = vld [vmem:[%s7915_s15 + $0xc10] sm:$0xff] }
 0x473   : > { %5265 = vmatprep.subr.bf16.mxu0 %v6550_v28  ;;  %5429 = vmatprep.subr.bf16.mxu1 %v6552_v36  ;;  %v2157_v28 = vld [vmem:[%s7915_s15 + $0xc30] sm:$0xff]  ;;  %v2154_v36 = vld [vmem:[%s7915_s15 + $0xc18] sm:$0xff] }
 0x474   : > { %v6614_v39 = vcombine.high %v2153_v34, %v2157_v28  ;;  %v6613_v3 = vcombine.low %v2153_v34, %v2157_v28  ;;  %v6615_v8 = vcombine.low %v2154_v36, %v2158_v38  ;;  %v2210_v34 = vld [vmem:[%s7915_s15 + $0xdd8] sm:$0xff] }
 0x475   : > { %v2214_v28 = vld [vmem:[%s7915_s15 + $0xdf8] sm:$0xff] }
 0x476   : > { %5266 = vmatpush1.bf16.msra.mxu0 %v6549_v40  ;;  %5430 = vmatpush1.bf16.msra.mxu1 %v6551_v41  ;;  %v6616_v40 = vcombine.high %v2154_v36, %v2158_v38  ;;  %v2161_v41 = vld [vmem:[%s7915_s15 + $0xc50] sm:$0xff] }
 0x477   : > { %5267 = vmatprep.subr.bf16.mxu0 %v6558_v42  ;;  %5431 = vmatprep.subr.bf16.mxu1 %v6560_v44  ;;  %v2165_v42 = vld [vmem:[%s7915_s15 + $0xc70] sm:$0xff]  ;;  %v2162_v44 = vld [vmem:[%s7915_s15 + $0xc58] sm:$0xff] }
 0x478   : > { %v6622_v47 = vcombine.high %v2161_v41, %v2165_v42  ;;  %v6621_v52 = vcombine.low %v2161_v41, %v2165_v42  ;;  %v6623_v53 = vcombine.low %v2162_v44, %v2166_v45 }
 0x47a   : > { %5268 = vmatpush1.bf16.msra.mxu0 %v6557_v48  ;;  %5432 = vmatpush1.bf16.msra.mxu1 %v6559_v49  ;;  %v6624_v48 = vcombine.high %v2162_v44, %v2166_v45  ;;  %v2169_v49 = vld [vmem:[%s7915_s15 + $0xc90] sm:$0xff] }
 0x47b   : > { %5269 = vmatprep.subr.bf16.mxu0 %v6566_v31  ;;  %5433 = vmatprep.subr.bf16.mxu1 %v6568_v11  ;;  %v2173_v31 = vld [vmem:[%s7915_s15 + $0xcb0] sm:$0xff]  ;;  %v2170_v11 = vld [vmem:[%s7915_s15 + $0xc98] sm:$0xff] }
 0x47c   : > { %v6630_v54 = vcombine.high %v2169_v49, %v2173_v31  ;;  %v6631_v63 = vcombine.low %v2170_v11, %v2174_v51 }
 0x47e   : > { %5270 = vmatpush1.bf16.msra.mxu0 %v6565_v55  ;;  %5434 = vmatpush1.bf16.msra.mxu1 %v6567_v56  ;;  %v6632_v55 = vcombine.high %v2170_v11, %v2174_v51  ;;  %v2177_v56 = vld [vmem:[%s7915_s15 + $0xcd0] sm:$0xff]  ;;  %v2222_v11 = vld [vmem:[%s7915_s15 + $0xe38] sm:$0xff]  ;;  %v1765_v51 = vld [vmem:[#allocation3] sm:$0xff] }
 0x47f   : > { %5271 = vmatprep.subr.bf16.mxu0 %v6574_v58  ;;  %5435 = vmatprep.subr.bf16.mxu1 %v6576_v62  ;;  %v2181_v58 = vld [vmem:[%s7915_s15 + $0xcf0] sm:$0xff]  ;;  %v2178_v62 = vld [vmem:[%s7915_s15 + $0xcd8] sm:$0xff] }
 0x480   : > { %v6638_v0 = vcombine.high %v2177_v56, %v2181_v58  ;;  %v6640_v2 = vcombine.high %v2178_v62, %v2182_v22  ;;  %v6637_v26 = vcombine.low %v2177_v56, %v2181_v58  ;;  %v2225_v58 = vld [vmem:[%s7915_s15 + $0xe50] sm:$0xff] }
 0x482   : > { %5272 = vmatpush1.bf16.msra.mxu0 %v6573_v12  ;;  %5436 = vmatpush1.bf16.msra.mxu1 %v6575_v6  ;;  %v2185_v12 = vld [vmem:[%s7915_s15 + $0xd10] sm:$0xff] }
 0x483   : > { %5273 = vmatprep.subr.bf16.mxu0 %v6582_v35  ;;  %5437 = vmatprep.subr.bf16.mxu1 %v6584_v9  ;;  %v2189_v6 = vld [vmem:[%s7915_s15 + $0xd30] sm:$0xff]  ;;  %v2186_v35 = vld [vmem:[%s7915_s15 + $0xd18] sm:$0xff] }
 0x484   : > { %v2190_v9 = vld [vmem:[%s7915_s15 + $0xd38] sm:$0xff]  ;;  %v6646_v10 = vcombine.high %v2185_v12, %v2189_v6 }
 0x485   : > { %v6648_v1 = vcombine.high %v2186_v35, %v2190_v9  ;;  %v6647_v17 = vcombine.low %v2186_v35, %v2190_v9  ;;  %v2233_v35 = vld [vmem:[%s7915_s15 + $0xe90] sm:$0xff] }
 0x486   : > { %5274 = vmatpush1.bf16.msra.mxu0 %v6581_v5  ;;  %5438 = vmatpush1.bf16.msra.mxu1 %v6583_v7  ;;  %v2197_v5 = vld [vmem:[%s7915_s15 + $0xd70] sm:$0xff]  ;;  %v2194_v7 = vld [vmem:[%s7915_s15 + $0xd58] sm:$0xff] }
 0x487   : > { %5275 = vmatprep.subr.bf16.mxu0 %v6590_v13  ;;  %5439 = vmatprep.subr.bf16.mxu1 %v6592_v14  ;;  %v2198_v13 = vld [vmem:[%s7915_s15 + $0xd78] sm:$0xff]  ;;  %v6645_v14 = vcombine.low %v2185_v12, %v2189_v6  ;;  %v6654_v18 = vcombine.high %v2193_v4, %v2197_v5  ;;  %v2237_v9 = vld [vmem:[%s7915_s15 + $0xeb0] sm:$0xff] }
 0x488   : > { %v6656_v19 = vcombine.high %v2194_v7, %v2198_v13  ;;  %v6655_v25 = vcombine.low %v2194_v7, %v2198_v13  ;;  %v2241_v7 = vld [vmem:[%s7915_s15 + $0xed0] sm:$0xff] }
 0x489   : > { %v2245_v13 = vld [vmem:[%s7915_s15 + $0xef0] sm:$0xff] }
 0x48a   : > { %5276 = vmatpush1.bf16.msra.mxu0 %v6589_v20  ;;  %5440 = vmatpush1.bf16.msra.mxu1 %v6591_v21  ;;  %v2205_v20 = vld [vmem:[%s7915_s15 + $0xdb0] sm:$0xff]  ;;  %v2202_v21 = vld [vmem:[%s7915_s15 + $0xd98] sm:$0xff] }
 0x48b   : > { %5277 = vmatprep.subr.bf16.mxu0 %v6598_v50  ;;  %5441 = vmatprep.subr.bf16.mxu1 %v6600_v23  ;;  %v2206_v50 = vld [vmem:[%s7915_s15 + $0xdb8] sm:$0xff]  ;;  %v6653_v23 = vcombine.low %v2193_v4, %v2197_v5  ;;  %v6662_v57 = vcombine.high %v2201_v60, %v2205_v20  ;;  %v6694_v4 = vcombine.high %v2233_v35, %v2237_v9 }
 0x48c   : > { %v6664_v43 = vcombine.high %v2202_v21, %v2206_v50  ;;  %v6663_v42 = vcombine.low %v2202_v21, %v2206_v50  ;;  %v2249_v21 = vld [vmem:[%s7915_s15 + $0xf10] sm:$0xff] }
 0x48d   : > { %v2253_v50 = vld [vmem:[%s7915_s15 + $0xf30] sm:$0xff] }
 0x48e   : > { %5278 = vmatpush1.bf16.msra.mxu0 %v6597_v27  ;;  %5442 = vmatpush1.bf16.msra.mxu1 %v6599_v29  ;;  %v2209_v27 = vld [vmem:[%s7915_s15 + $0xdd0] sm:$0xff] }
 0x48f   : > { %5279 = vmatprep.subr.bf16.mxu0 %v6606_v32  ;;  %5443 = vmatprep.subr.bf16.mxu1 %v6608_v33  ;;  %v2213_v29 = vld [vmem:[%s7915_s15 + $0xdf0] sm:$0xff] }
 0x490   : > { %v6670_v44 = vcombine.high %v2209_v27, %v2213_v29 }
 0x492   : > { %5280 = vmatpush1.bf16.msra.mxu0 %v6605_v59  ;;  %5444 = vmatpush1.bf16.msra.mxu1 %v6607_v15  ;;  %v6661_v15 = vcombine.low %v2201_v60, %v2205_v20  ;;  %v6702_v60 = vcombine.high %v2241_v7, %v2245_v13 }
 0x493   : > { %5290 = vmatprep.subr.bf16.mxu0 %v6614_v39  ;;  %5454 = vmatprep.subr.bf16.mxu1 %v6616_v40 }
 0x495   : > { %5282 = vmatmul.mubr.bf16.vlgmr.msra.gmra.mrb[4].mxu0 %v8552_v37  ;;  %5446 = vmatmul.mubr.bf16.vlgmr.msra.gmra.mrb[4].mxu1 %v8552_v37  ;;  %v6629_v37 = vcombine.low %v2169_v49, %v2173_v31  ;;  %v2218_v31 = vld [vmem:[%s7915_s15 + $0xe18] sm:$0xff] }
 0x496   : > { %5291 = vmatpush1.bf16.msra.mxu0 %v6613_v3  ;;  %5455 = vmatpush1.bf16.msra.mxu1 %v6615_v8  ;;  %v6672_v8 = vcombine.high %v2210_v34, %v2214_v28  ;;  %v6680_v56 = vcombine.high %v2218_v31, %v2222_v11 }
 0x497   : > { %5292 = vmatprep.subr.bf16.mxu0 %v6622_v47  ;;  %5456 = vmatprep.subr.bf16.mxu1 %v6624_v48  ;;  %v2217_v47 = vld [vmem:[%s7915_s15 + $0xe10] sm:$0xff] }
 0x498   : > { %5322 = vmatprep.mubr.bf16.mxu0 %v8558_v46  ;;  %5486 = vmatprep.mubr.bf16.mxu1 %v8558_v46  ;;  %v6639_v46 = vcombine.low %v2178_v62, %v2182_v22  ;;  %v2221_v48 = vld [vmem:[%s7915_s15 + $0xe30] sm:$0xff] }
 0x499   : > { %v2229_v62 = vld [vmem:[%s7915_s15 + $0xe70] sm:$0xff] }
 0x49a   : > { %5293 = vmatpush1.bf16.msra.mxu0 %v6621_v52  ;;  %5457 = vmatpush1.bf16.msra.mxu1 %v6623_v53  ;;  %v6669_v52 = vcombine.low %v2209_v27, %v2213_v29  ;;  %v6686_v12 = vcombine.high %v2225_v58, %v2229_v62  ;;  %v2257_v29 = vld [vmem:[%s7915_s15 + $0xf50] sm:$0xff] }
 0x49b   : > { %5294 = vmatprep.subr.bf16.mxu0 %v6630_v54  ;;  %5458 = vmatprep.subr.bf16.mxu1 %v6632_v55  ;;  %v6671_v54 = vcombine.low %v2210_v34, %v2214_v28  ;;  %v6678_v55 = vcombine.high %v2217_v47, %v2221_v48  ;;  %v2262_v34 = vld [vmem:[%s7915_s15 + $0xf78] sm:$0xff]  ;;  %v6709_v28 = vcombine.low %v2249_v21, %v2253_v50 }
 0x49e   : > { %5295 = vmatpush1.bf16.msra.mxu0 %v6629_v37  ;;  %5459 = vmatpush1.bf16.msra.mxu1 %v6631_v63  ;;  %v2226_v37 = vld [vmem:[%s7915_s15 + $0xe58] sm:$0xff] }
 0x49f   : > { %5296 = vmatprep.subr.bf16.mxu0 %v6638_v0  ;;  %5460 = vmatprep.subr.bf16.mxu1 %v6640_v2  ;;  %v2230_v63 = vld [vmem:[%s7915_s15 + $0xe78] sm:$0xff]  ;;  %v6677_v0 = vcombine.low %v2217_v47, %v2221_v48  ;;  %v6679_v2 = vcombine.low %v2218_v31, %v2222_v11  ;;  %v2277_v47 = vld [vmem:[%s7915_s15 + $0xff0] sm:$0xff] }
 0x4a0   : > { %v6688_v6 = vcombine.high %v2226_v37, %v2230_v63  ;;  %v2274_v48 = vld [vmem:[%s7915_s15 + $0xfd8] sm:$0xff] }
 0x4a2   : > { %5297 = vmatpush1.bf16.msra.mxu0 %v6637_v26  ;;  %5461 = vmatpush1.bf16.msra.mxu1 %v6639_v46  ;;  %v2234_v26 = vld [vmem:[%s7915_s15 + $0xe98] sm:$0xff] }
 0x4a3   : > { %5298 = vmatprep.subr.bf16.mxu0 %v6646_v10  ;;  %5462 = vmatprep.subr.bf16.mxu1 %v6648_v1  ;;  %v2238_v46 = vld [vmem:[%s7915_s15 + $0xeb8] sm:$0xff]  ;;  %v6685_v10 = vcombine.low %v2225_v58, %v2229_v62  ;;  %v6687_v1 = vcombine.low %v2226_v37, %v2230_v63 }
 0x4a4   : > { %v6696_v5 = vcombine.high %v2234_v26, %v2238_v46 }
 0x4a6   : > { %5299 = vmatpush1.bf16.msra.mxu0 %v6645_v14  ;;  %5463 = vmatpush1.bf16.msra.mxu1 %v6647_v17  ;;  %v2242_v14 = vld [vmem:[%s7915_s15 + $0xed8] sm:$0xff] }
 0x4a7   : > { %5300 = vmatprep.subr.bf16.mxu0 %v6654_v18  ;;  %5464 = vmatprep.subr.bf16.mxu1 %v6656_v19  ;;  %v2246_v17 = vld [vmem:[%s7915_s15 + $0xef8] sm:$0xff]  ;;  %v6693_v18 = vcombine.low %v2233_v35, %v2237_v9  ;;  %v6695_v19 = vcombine.low %v2234_v26, %v2238_v46  ;;  %v1766_v9 = vld [vmem:[#allocation3 + $0x8] sm:$0xff] }
 0x4a8   : > { %v4996_v30 = vpop.f32.mrb[0].mxu0  ;;  %v5160_v32 = vpop.f32.mrb[0].mxu1  ;;  %v6704_v20 = vcombine.high %v2242_v14, %v2246_v17 }
 0x4a9   : > { %v4998_v33 = vpop.f32.mrb[1].mxu0  ;;  %v5162_v38 = vpop.f32.mrb[1].mxu1 }
 0x4aa   : > { %v5503_v36 = vcombine.low %v4996_v30, %v4998_v33  ;;  %v5000_v59 = vpop.f32.mrb[2].mxu0  ;;  %5301 = vmatpush1.bf16.msra.mxu0 %v6653_v23  ;;  %v5504_v39 = vcombine.low %v5160_v32, %v5162_v38  ;;  %v5164_v40 = vpop.f32.mrb[2].mxu1  ;;  %5465 = vmatpush1.bf16.msra.mxu1 %v6655_v25  ;;  %v2250_v23 = vld [vmem:[%s7915_s15 + $0xf18] sm:$0xff]  ;;  %v6703_v30 = vcombine.low %v2242_v14, %v2246_v17  ;;  %v2261_v32 = vld [vmem:[%s7915_s15 + $0xf70] sm:$0xff] }
 0x4ab   : > { %v5001_v41 = vpop.f32.mrb[3].mxu0  ;;  %5302 = vmatprep.subr.bf16.mxu0 %v6662_v57  ;;  %v5165_v3 = vpop.f32.mrb[3].mxu1  ;;  %5466 = vmatprep.subr.bf16.mxu1 %v6664_v43  ;;  %v2254_v25 = vld [vmem:[%s7915_s15 + $0xf38] sm:$0xff]  ;;  %v6701_v57 = vcombine.low %v2241_v7, %v2245_v13  ;;  %v6710_v43 = vcombine.high %v2249_v21, %v2253_v50  ;;  %v6718_v38 = vcombine.high %v2257_v29, %v2261_v32  ;;  %v5623_v7 = vld [vmem:[%s9366_s30] sm:$0xff] (!%p6737_p5)  ;;  %v5624_v13 = vld [vmem:[%s9366_s30 + $0x8] sm:$0xff] (!%p6737_p5) }
 0x4ac   : > { %v5511_v45 = vrot.slane %v5503_v36, %v8318_v24  ;;  %v5518_v49 = vrot.slane %v5504_v39, %v8318_v24  ;;  %v6712_v27 = vcombine.high %v2250_v23, %v2254_v25  ;;  %v2258_v33 = vld [vmem:[%s7915_s15 + $0xf58] sm:$0xff]  ;;  %v6711_v36 = vcombine.low %v2250_v23, %v2254_v25  ;;  %v2269_v39 = vld [vmem:[%s7915_s15 + $0xfb0] sm:$0xff] }
 0x4ad   : > { %v6720_v59 = vcombine.high %v2258_v33, %v2262_v34  ;;  %v2266_v40 = vld [vmem:[%s7915_s15 + $0xf98] sm:$0xff]  ;;  %v7227_v17 = vpack.c.bf16 (!%p6737_p5), %v5624_v13, %v5623_v7  ;;  %v5673_v50 = vld [vmem:[%s9366_s30 + $0x190] sm:$0xff] (!%p6737_p5) }
 0x4ae   : > { %5303 = vmatpush1.bf16.msra.mxu0 %v6661_v15  ;;  %v5519_v53 = vcombine.low %v5511_v45, %v5518_v49  ;;  %5467 = vmatpush1.bf16.msra.mxu1 %v6663_v42  ;;  %v2265_v15 = vld [vmem:[%s7915_s15 + $0xf90] sm:$0xff]  ;;  %v2270_v41 = vld [vmem:[%s7915_s15 + $0xfb8] sm:$0xff]  ;;  %v6717_v42 = vcombine.low %v2257_v29, %v2261_v32 }
 0x4af   : > { %5304 = vmatprep.subr.bf16.mxu0 %v6670_v44  ;;  %5468 = vmatprep.subr.bf16.mxu1 %v6672_v8  ;;  %v6719_v44 = vcombine.low %v2258_v33, %v2262_v34  ;;  %v6726_v45 = vcombine.high %v2265_v15, %v2269_v39  ;;  %v6728_v3 = vcombine.high %v2266_v40, %v2270_v41  ;;  %v2273_v8 = vld [vmem:[%s7915_s15 + $0xfd0] sm:$0xff]  ;;  %v2278_v49 = vld [vmem:[%s7915_s15 + $0xff8] sm:$0xff]  ;;  %v5643_v33 = vld [vmem:[%s9366_s30 + $0xa0] sm:$0xff] (!%p6737_p5) }
 0x4b0   : > { %v5539_v22 = vadd.f32 %v5519_v53, %v1765_v51  ;;  %v6725_v31 = vcombine.low %v2265_v15, %v2269_v39  ;;  %v6727_v11 = vcombine.low %v2266_v40, %v2270_v41  ;;  %v6734_v51 = vcombine.high %v2273_v8, %v2277_v47  ;;  %v5642_v21 = vld [vmem:[%s9366_s30 + $0x98] sm:$0xff] (!%p6737_p5)  ;;  %v5644_v34 = vld [vmem:[%s9366_s30 + $0xa8] sm:$0xff] (!%p6737_p5)  ;;  %v5627_v15 = vld [vmem:[%s9366_s30 + $0x20] sm:$0xff] (!%p6737_p5) }
 0x4b1   : > { %v6733_v53 = vcombine.low %v2273_v8, %v2277_v47  ;;  %v5674_v23 = vld [vmem:[%s9366_s30 + $0x198] sm:$0xff] (!%p6737_p5)  ;;  %v5628_v40 = vld [vmem:[%s9366_s30 + $0x28] sm:$0xff] (!%p6737_p5)  ;;  %v5659_v41 = vld [vmem:[%s9366_s30 + $0x120] sm:$0xff] (!%p6737_p5) }
 0x4b2   : > { %5305 = vmatpush1.bf16.msra.mxu0 %v6669_v52  ;;  %5541 = vst [vmem:[#allocation3] sm:$0xff] %v5539_v22  ;;  %5469 = vmatpush1.bf16.msra.mxu1 %v6671_v54  ;;  %v6736_v52 = vcombine.high %v2274_v48, %v2278_v49  ;;  %v6735_v54 = vcombine.low %v2274_v48, %v2278_v49  ;;  %v5658_v32 = vld [vmem:[%s9366_s30 + $0x118] sm:$0xff] (!%p6737_p5)  ;;  %v5677_v8 = vld [vmem:[%s9366_s30 + $0x1b0] sm:$0xff] (!%p6737_p5) }
 0x4b3   : > { %5306 = vmatprep.subr.bf16.mxu0 %v6678_v55  ;;  %5470 = vmatprep.subr.bf16.mxu1 %v6680_v56  ;;  %v5678_v49 = vld [vmem:[%s9366_s30 + $0x1b8] sm:$0xff] (!%p6737_p5)  ;;  %v5665_v7 = vld [vmem:[%s9366_s30 + $0x150] sm:$0xff] (!%p6737_p5) }
 0x4b6   : > { %5307 = vmatpush1.bf16.msra.mxu0 %v6677_v0  ;;  %5471 = vmatpush1.bf16.msra.mxu1 %v6679_v2 }
 0x4b7   : > { %5308 = vmatprep.subr.bf16.mxu0 %v6686_v12  ;;  %5472 = vmatprep.subr.bf16.mxu1 %v6688_v6 }
 0x4ba   : > { %5309 = vmatpush1.bf16.msra.mxu0 %v6685_v10  ;;  %5473 = vmatpush1.bf16.msra.mxu1 %v6687_v1  ;;  %v5640_v10 = vld [vmem:[%s9366_s30 + $0x88] sm:$0xff] (!%p6737_p5)  ;;  %v5671_v1 = vld [vmem:[%s9366_s30 + $0x180] sm:$0xff] (!%p6737_p5) }
 0x4bb   : > { %5310 = vmatprep.subr.bf16.mxu0 %v6694_v4  ;;  %5474 = vmatprep.subr.bf16.mxu1 %v6696_v5  ;;  %v5672_v5 = vld [vmem:[%s9366_s30 + $0x188] sm:$0xff] (!%p6737_p5) }
 0x4bc   : > { %v7257_v14 = vpack.c.bf16 (!%p6737_p5), %v5672_v5, %v5671_v1  ;;  %v5634_v5 = vld [vmem:[%s9366_s30 + $0x58] sm:$0xff] (!%p6737_p5) }
 0x4be   : > { %5311 = vmatpush1.bf16.msra.mxu0 %v6693_v18  ;;  %5475 = vmatpush1.bf16.msra.mxu1 %v6695_v19  ;;  %v5655_v18 = vld [vmem:[%s9366_s30 + $0x100] sm:$0xff] (!%p6737_p5)  ;;  %v5656_v19 = vld [vmem:[%s9366_s30 + $0x108] sm:$0xff] (!%p6737_p5) }
 0x4bf   : > { %5312 = vmatprep.subr.bf16.mxu0 %v6702_v60  ;;  %5476 = vmatprep.subr.bf16.mxu1 %v6704_v20  ;;  %v5641_v60 = vld [vmem:[%s9366_s30 + $0x90] sm:$0xff] (!%p6737_p5)  ;;  %v7259_v20 = vpack.c.bf16 (!%p6737_p5), %v5656_v19, %v5655_v18  ;;  %v5652_v18 = vld [vmem:[%s9366_s30 + $0xe8] sm:$0xff] (!%p6737_p5)  ;;  %v5553_v19 = vsub.s32 (!%p6737_p5), 0, %v8310_v16 }
 0x4c0   : > { %v7229_v25 = vpack.c.bf16 (!%p6737_p5), %v5642_v21, %v5641_v60  ;;  %v5557_v60 = vsub.s32 (!%p6737_p5), 1, %v8310_v16  ;;  %v5683_v21 = vld [vmem:[%s9366_s30 + $0x1e0] sm:$0xff] (!%p6737_p5) }
 0x4c2   : > { %5313 = vmatpush1.bf16.msra.mxu0 %v6701_v57  ;;  %5477 = vmatpush1.bf16.msra.mxu1 %v6703_v30  ;;  %v7261_v57 = vpack.c.bf16 (!%p6737_p5), %v5674_v23, %v5673_v50  ;;  %v5625_v30 = vld [vmem:[%s9366_s30 + $0x10] sm:$0xff] (!%p6737_p5)  ;;  %v5684_v50 = vld [vmem:[%s9366_s30 + $0x1e8] sm:$0xff] (!%p6737_p5)  ;;  %v5565_v23 = vsub.s32 (!%p6737_p5), 3, %v8310_v16 }
 0x4c3   : > { %5314 = vmatprep.subr.bf16.mxu0 %v6710_v43  ;;  %5478 = vmatprep.subr.bf16.mxu1 %v6712_v27  ;;  %v5626_v43 = vld [vmem:[%s9366_s30 + $0x18] sm:$0xff] (!%p6737_p5)  ;;  %v5657_v27 = vld [vmem:[%s9366_s30 + $0x110] sm:$0xff] (!%p6737_p5) }
 0x4c4   : > { %v7231_v29 = vpack.c.bf16 (!%p6737_p5), %v5626_v43, %v5625_v30 }
 0x4c6   : > { %5315 = vmatpush1.bf16.msra.mxu0 %v6709_v28  ;;  %5479 = vmatpush1.bf16.msra.mxu1 %v6711_v36  ;;  %v7263_v28 = vpack.c.bf16 (!%p6737_p5), %v5658_v32, %v5657_v27  ;;  %v7233_v36 = vpack.c.bf16 (!%p6737_p5), %v5644_v34, %v5643_v33  ;;  %v5636_v27 = vld [vmem:[%s9366_s30 + $0x68] sm:$0xff] (!%p6737_p5)  ;;  %v5549_v32 = vld [vmem:[#allocation9] sm:$0xff] (!%p6737_p5)  ;;  %v7281_v33 = vpack.c.bf16 (!%p6737_p5), %v5684_v50, %v5683_v21 }
 0x4c7   : > { %5316 = vmatprep.subr.bf16.mxu0 %v6718_v38  ;;  %5480 = vmatprep.subr.bf16.mxu1 %v6720_v59  ;;  %v5675_v38 = vld [vmem:[%s9366_s30 + $0x1a0] sm:$0xff] (!%p6737_p5)  ;;  %v5676_v59 = vld [vmem:[%s9366_s30 + $0x1a8] sm:$0xff] (!%p6737_p5) }
 0x4c8   : > { %v7265_v39 = vpack.c.bf16 (!%p6737_p5), %v5676_v59, %v5675_v38  ;;  %v5668_v34 = vld [vmem:[%s9366_s30 + $0x168] sm:$0xff] (!%p6737_p5)  ;;  %v5554_v38 = vrot.slane (!%p6737_p5), %v5549_v32, %v5553_v19  ;;  %v5558_v59 = vrot.slane (!%p6737_p5), %v5549_v32, %v5557_v60  ;;  %v5719_v19 = vld [vmem:[%s9366_s30 + $0x300] sm:$0xff] (!%p6737_p5) }
 0x4c9   : > { %v5720_v60 = vld [vmem:[%s9366_s30 + $0x308] sm:$0xff] (!%p6737_p5) }
 0x4ca   : > { %5317 = vmatpush1.bf16.msra.mxu0 %v6717_v42  ;;  %5481 = vmatpush1.bf16.msra.mxu1 %v6719_v44  ;;  %v5660_v42 = vld [vmem:[%s9366_s30 + $0x128] sm:$0xff] (!%p6737_p5)  ;;  %v7235_v44 = vpack.c.bf16 (!%p6737_p5), %v5628_v40, %v5627_v15  ;;  %v5686_v40 = vld [vmem:[%s9366_s30 + $0x1f8] sm:$0xff] (!%p6737_p5) }
 0x4cb   : > { %5318 = vmatprep.subr.bf16.mxu0 %v6726_v45  ;;  %5482 = vmatprep.subr.bf16.mxu1 %v6728_v3  ;;  %v5645_v45 = vld [vmem:[%s9366_s30 + $0xb0] sm:$0xff] (!%p6737_p5)  ;;  %v5646_v3 = vld [vmem:[%s9366_s30 + $0xb8] sm:$0xff] (!%p6737_p5)  ;;  %v7267_v47 = vpack.c.bf16 (!%p6737_p5), %v5660_v42, %v5659_v41  ;;  %v5566_v41 = vrot.slane (!%p6737_p5), %v5549_v32, %v5565_v23  ;;  %v5569_v42 = vsub.s32 (!%p6737_p5), 4, %v8310_v16 }
 0x4cc   : > { %v7237_v48 = vpack.c.bf16 (!%p6737_p5), %v5646_v3, %v5645_v45  ;;  %v5637_v3 = vld [vmem:[%s9366_s30 + $0x70] sm:$0xff] (!%p6737_p5) }
 0x4ce   : > { %5319 = vmatpush1.bf16.msra.mxu0 %v6725_v31  ;;  %5483 = vmatpush1.bf16.msra.mxu1 %v6727_v11  ;;  %v5629_v31 = vld [vmem:[%s9366_s30 + $0x30] sm:$0xff] (!%p6737_p5)  ;;  %v5630_v11 = vld [vmem:[%s9366_s30 + $0x38] sm:$0xff] (!%p6737_p5) }
 0x4cf   : > { %5320 = vmatprep.subr.bf16.mxu0 %v6734_v51  ;;  %5484 = vmatprep.subr.bf16.mxu1 %v6736_v52  ;;  %v7269_v51 = vpack.c.bf16 (!%p6737_p5), %v5678_v49, %v5677_v8  ;;  %v5661_v52 = vld [vmem:[%s9366_s30 + $0x130] sm:$0xff] (!%p6737_p5)  ;;  %v5638_v8 = vld [vmem:[%s9366_s30 + $0x78] sm:$0xff] (!%p6737_p5)  ;;  %v5581_v49 = vsub.s32 (!%p6737_p5), 7, %v8310_v16 }
 0x4d2   : > { %5321 = vmatpush1.bf16.msra.mxu0 %v6733_v53  ;;  %5485 = vmatpush1.bf16.msra.mxu1 %v6735_v54  ;;  %v5662_v53 = vld [vmem:[%s9366_s30 + $0x138] sm:$0xff] (!%p6737_p5)  ;;  %v5647_v54 = vld [vmem:[%s9366_s30 + $0xc0] sm:$0xff] (!%p6737_p5) }
 0x4d3   : > { %7258 = vmatprep.subr.bf16.mxu1 (!%p6737_p5), %v7257_v14  ;;  %v5666_v14 = vld [vmem:[%s9366_s30 + $0x158] sm:$0xff] (!%p6737_p5) }
 0x4d4   : > { %v7279_v30 = vpack.c.bf16 (!%p6737_p5), %v5666_v14, %v5665_v7  ;;  %v5688_v7 = vld [vmem:[%s9366_s30 + $0x208] sm:$0xff] (!%p6737_p5) }
 0x4d5   : > { %5323 = vmatmul.mubr.bf16.vlgmr.msra.gmra.mrb[4].mxu0 %v8626_v61  ;;  %5487 = vmatmul.mubr.bf16.vlgmr.msra.gmra.mrb[4].mxu1 %v8626_v61  ;;  %v5639_v61 = vld [vmem:[%s9366_s30 + $0x80] sm:$0xff] (!%p6737_p5) }
 0x4d6   : > { %v7225_v4 = vpack.c.bf16 (!%p6737_p5), %v5640_v10, %v5639_v61  ;;  %7260 = vmatpush3.bf16.msra.mxu1 (!%p6737_p5), %v7259_v20  ;;  %v5561_v20 = vsub.s32 (!%p6737_p5), 2, %v8310_v16 }
 0x4d7   : > { %7262 = vmatprep.subr.bf16.mxu1 (!%p6737_p5), %v7261_v57  ;;  %v5635_v57 = vld [vmem:[%s9366_s30 + $0x60] sm:$0xff] (!%p6737_p5) }
 0x4d8   : > { %7226 = vmatprep.subr.bf16.mxu0 (!%p6737_p5), %v7225_v4  ;;  %v5633_v4 = vld [vmem:[%s9366_s30 + $0x50] sm:$0xff] (!%p6737_p5)  ;;  %v5562_v15 = vrot.slane (!%p6737_p5), %v5549_v32, %v5561_v20  ;;  %v7251_v45 = vpack.c.bf16 (!%p6737_p5), %v5636_v27, %v5635_v57 }
 0x4d9   : > { %7228 = vmatpush3.bf16.msra.mxu0 (!%p6737_p5), %v7227_v17  ;;  %v5651_v17 = vld [vmem:[%s9366_s30 + $0xe0] sm:$0xff] (!%p6737_p5)  ;;  %v5737_v57 = vld [vmem:[%s9366_s30 + $0x390] sm:$0xff] (!%p6737_p5) }
 0x4da   : > { %7230 = vmatprep.subr.bf16.mxu0 (!%p6737_p5), %v7229_v25  ;;  %7264 = vmatpush3.bf16.msra.mxu1 (!%p6737_p5), %v7263_v28  ;;  %v7247_v25 = vpack.c.bf16 (!%p6737_p5), %v5634_v5, %v5633_v4  ;;  %v7249_v43 = vpack.c.bf16 (!%p6737_p5), %v5652_v18, %v5651_v17  ;;  %v5653_v28 = vld [vmem:[%s9366_s30 + $0xf0] sm:$0xff] (!%p6737_p5)  ;;  %v5687_v5 = vld [vmem:[%s9366_s30 + $0x200] sm:$0xff] (!%p6737_p5)  ;;  %v5706_v18 = vld [vmem:[%s9366_s30 + $0x298] sm:$0xff] (!%p6737_p5) }
 0x4db   : > { %7266 = vmatprep.subr.bf16.mxu1 (!%p6737_p5), %v7265_v39  ;;  %v5685_v39 = vld [vmem:[%s9366_s30 + $0x1f0] sm:$0xff] (!%p6737_p5) }
 0x4dc   : > { %v5705_v17 = vld [vmem:[%s9366_s30 + $0x290] sm:$0xff] (!%p6737_p5) }
 0x4dd   : > { %7232 = vmatpush3.bf16.msra.mxu0 (!%p6737_p5), %v7231_v29  ;;  %v5667_v29 = vld [vmem:[%s9366_s30 + $0x160] sm:$0xff] (!%p6737_p5)  ;;  %v5689_v27 = vld [vmem:[%s9366_s30 + $0x210] sm:$0xff] (!%p6737_p5) }
 0x4de   : > { %7234 = vmatprep.subr.bf16.mxu0 (!%p6737_p5), %v7233_v36  ;;  %7268 = vmatpush3.bf16.msra.mxu1 (!%p6737_p5), %v7267_v47  ;;  %v5654_v36 = vld [vmem:[%s9366_s30 + $0xf8] sm:$0xff] (!%p6737_p5)  ;;  %v5583_v47 = vcombine.low (!%p6737_p5), %v5554_v38, %v5558_v59  ;;  %v5721_v38 = vld [vmem:[%s9366_s30 + $0x310] sm:$0xff] (!%p6737_p5) }
 0x4df   : > { %7270 = vmatprep.subr.bf16.mxu1 (!%p6737_p5), %v7269_v51  ;;  %v5669_v51 = vld [vmem:[%s9366_s30 + $0x170] sm:$0xff] (!%p6737_p5)  ;;  %v5722_v59 = vld [vmem:[%s9366_s30 + $0x318] sm:$0xff] (!%p6737_p5) }
 0x4e1   : > { %7236 = vmatpush3.bf16.msra.mxu0 (!%p6737_p5), %v7235_v44  ;;  %v5573_v44 = vsub.s32 (!%p6737_p5), 5, %v8310_v16 }
 0x4e2   : > { %7238 = vmatprep.subr.bf16.mxu0 (!%p6737_p5), %v7237_v48  ;;  %v5577_v48 = vsub.s32 (!%p6737_p5), 6, %v8310_v16  ;;  %v5703_v16 = vld [vmem:[%s9366_s30 + $0x280] sm:$0xff] (!%p6737_p5) }
 0x5a8   : > { %v5324_v55 = vpop.f32.mrb[4].mxu0  ;;  %v5488_v56 = vpop.f32.mrb[4].mxu1 }
 0x5a9   : > { %v5326_v58 = vpop.f32.mrb[5].mxu0  ;;  %v5490_v22 = vpop.f32.mrb[5].mxu1 }
 0x5aa   : > { %v5520_v62 = vcombine.low %v5324_v55, %v5326_v58  ;;  %v5328_v37 = vpop.f32.mrb[6].mxu0  ;;  %v5521_v63 = vcombine.low %v5488_v56, %v5490_v22  ;;  %v5492_v0 = vpop.f32.mrb[6].mxu1  ;;  %v5648_v55 = vld [vmem:[%s9366_s30 + $0xc8] sm:$0xff] (!%p6737_p5)  ;;  %v5679_v56 = vld [vmem:[%s9366_s30 + $0x1c0] sm:$0xff] (!%p6737_p5)  ;;  %v7271_v22 = vpack.c.bf16 (!%p6737_p5), %v5662_v53, %v5661_v52  ;;  %v5584_v52 = vcombine.low (!%p6737_p5), %v5562_v15, %v5566_v41 }
 0x5ab   : > { %v5329_v2 = vpop.f32.mrb[7].mxu0  ;;  %v5493_v6 = vpop.f32.mrb[7].mxu1  ;;  %v5680_v58 = vld [vmem:[%s9366_s30 + $0x1c8] sm:$0xff] (!%p6737_p5)  ;;  %v7241_v37 = vpack.c.bf16 (!%p6737_p5), %v5648_v55, %v5647_v54  ;;  %v7285_v53 = vpack.c.bf16 (!%p6737_p5), %v5686_v40, %v5685_v39  ;;  %v5670_v54 = vld [vmem:[%s9366_s30 + $0x178] sm:$0xff] (!%p6737_p5)  ;;  %v5591_v55 = vrot.slane (!%p6737_p5), %v5583_v47, %v8318_v24  ;;  %v5739_v40 = vld [vmem:[%s9366_s30 + $0x3a0] sm:$0xff] (!%p6737_p5) }
 0x5ac   : > { %v5528_v12 = vrot.slane %v5520_v62, %v8318_v24  ;;  %v5535_v35 = vrot.slane %v5521_v63, %v8318_v24  ;;  %5546 = sbr.rel (%p6737_p5) target bundleno = 1725 (0x6bd), region = 72  ;;  %v7239_v62 = vpack.c.bf16 (!%p6737_p5), %v5630_v11, %v5629_v31  ;;  %v5631_v63 = vld [vmem:[%s9366_s30 + $0x40] sm:$0xff] (!%p6737_p5)  ;;  %v5632_v0 = vld [vmem:[%s9366_s30 + $0x48] sm:$0xff] (!%p6737_p5)  ;;  %7272 = vmatpush3.bf16.msra.mxu1 (!%p6737_p5), %v7271_v22  ;;  %v7283_v31 = vpack.c.bf16 (!%p6737_p5), %v5668_v34, %v5667_v29  ;;  %v5690_v29 = vld [vmem:[%s9366_s30 + $0x218] sm:$0xff] (!%p6737_p5) }
 0x5ad   : > { %v5663_v2 = vld [vmem:[%s9366_s30 + $0x140] sm:$0xff] (!%p6737_p5)  ;;  %v5664_v6 = vld [vmem:[%s9366_s30 + $0x148] sm:$0xff] (!%p6737_p5)  ;;  %v7243_v61 = vpack.c.bf16 (!%p6737_p5), %v5632_v0, %v5631_v63  ;;  %v7253_v11 = vpack.c.bf16 (!%p6737_p5), %v5654_v36, %v5653_v28  ;;  %v5570_v0 = vrot.slane (!%p6737_p5), %v5549_v32, %v5569_v42  ;;  %v7295_v39 = vpack.c.bf16 (!%p6737_p5), %v5690_v29, %v5689_v27  ;;  %v5710_v47 = vld [vmem:[%s9366_s30 + $0x2b8] sm:$0xff] (!%p6737_p5) }
 0x5ae   : > { %v5536_v26 = vcombine.low %v5528_v12, %v5535_v35  ;;  %v7273_v12 = vpack.c.bf16 (!%p6737_p5), %v5680_v58, %v5679_v56  ;;  %v5649_v35 = vld [vmem:[%s9366_s30 + $0xd0] sm:$0xff] (!%p6737_p5)  ;;  %7240 = vmatpush3.bf16.msra.mxu0 (!%p6737_p5), %v7239_v62  ;;  %v7275_v10 = vpack.c.bf16 (!%p6737_p5), %v5664_v6, %v5663_v2  ;;  %v5704_v56 = vld [vmem:[%s9366_s30 + $0x288] sm:$0xff] (!%p6737_p5)  ;;  %v7255_v58 = vpack.c.bf16 (!%p6737_p5), %v5638_v8, %v5637_v3  ;;  %v5735_v22 = vld [vmem:[%s9366_s30 + $0x380] sm:$0xff] (!%p6737_p5) }
 0x5af   : > { %7242 = vmatprep.subr.bf16.mxu0 (!%p6737_p5), %v7241_v37  ;;  %v5598_v62 = vrot.slane (!%p6737_p5), %v5584_v52, %v8318_v24  ;;  %v5736_v37 = vld [vmem:[%s9366_s30 + $0x388] sm:$0xff] (!%p6737_p5)  ;;  %v5547_v63 = vld [vmem:[#allocation3] sm:$0xff] (!%p6737_p5)  ;;  %v5574_v2 = vrot.slane (!%p6737_p5), %v5549_v32, %v5573_v44  ;;  %v5582_v6 = vrot.slane (!%p6737_p5), %v5549_v32, %v5581_v49  ;;  %v7327_v3 = vpack.c.bf16 (!%p6737_p5), %v5722_v59, %v5721_v38  ;;  %v5709_v8 = vld [vmem:[%s9366_s30 + $0x2b0] sm:$0xff] (!%p6737_p5) }
 0x5b0   : > { %v5540_v46 = vadd.f32 %v5536_v26, %v1766_v9  ;;  %v5650_v9 = vld [vmem:[%s9366_s30 + $0xd8] sm:$0xff] (!%p6737_p5)  ;;  %v5681_v26 = vld [vmem:[%s9366_s30 + $0x1d0] sm:$0xff] (!%p6737_p5)  ;;  %7274 = vmatprep.subr.bf16.mxu1 (!%p6737_p5), %v7273_v12  ;;  %v5578_v12 = vrot.slane (!%p6737_p5), %v5549_v32, %v5577_v48  ;;  %v5707_v34 = vld [vmem:[%s9366_s30 + $0x2a0] sm:$0xff] (!%p6737_p5) }
 0x5b1   : > { %v7245_v1 = vpack.c.bf16 (!%p6737_p5), %v5650_v9, %v5649_v35  ;;  %7276 = vmatpush3.bf16.msra.mxu1 (!%p6737_p5), %v7275_v10  ;;  %v7287_v35 = vpack.c.bf16 (!%p6737_p5), %v5670_v54, %v5669_v51  ;;  %v5599_v9 = vcombine.low (!%p6737_p5), %v5591_v55, %v5598_v62  ;;  %v5600_v10 = vcombine.low (!%p6737_p5), %v5570_v0, %v5574_v2  ;;  %v5708_v28 = vld [vmem:[%s9366_s30 + $0x2a8] sm:$0xff] (!%p6737_p5)  ;;  %v5691_v44 = vld [vmem:[%s9366_s30 + $0x220] sm:$0xff] (!%p6737_p5)  ;;  %v5742_v54 = vld [vmem:[%s9366_s30 + $0x3b8] sm:$0xff] (!%p6737_p5) }
 0x5b2   : > { %5542 = vst [vmem:[#allocation3 + $0x8] sm:$0xff] %v5540_v46  ;;  %v5682_v46 = vld [vmem:[%s9366_s30 + $0x1d8] sm:$0xff] (!%p6737_p5)  ;;  %7244 = vmatpush3.bf16.msra.mxu0 (!%p6737_p5), %v7243_v61  ;;  %v5740_v41 = vld [vmem:[%s9366_s30 + $0x3a8] sm:$0xff] (!%p6737_p5)  ;;  %v7297_v42 = vpack.c.bf16 (!%p6737_p5), %v5708_v28, %v5707_v34  ;;  %v7301_v55 = vpack.c.bf16 (!%p6737_p5), %v5710_v47, %v5709_v8  ;;  %v5725_v0 = vld [vmem:[%s9366_s30 + $0x330] sm:$0xff] (!%p6737_p5) }
 0x5b3   : > { %v7277_v13 = vpack.c.bf16 %v5682_v46, %v5681_v26  ;;  %7246 = vmatprep.subr.bf16.mxu0 %v7245_v1  ;;  %v7289_v26 = vpack.c.bf16 %v5704_v56, %v5703_v16  ;;  %v7321_v46 = vpack.c.bf16 %v5736_v37, %v5735_v22  ;;  %v5619_v61 = vadd.f32 %v5599_v9, %v5547_v63  ;;  %v5693_v16 = vld [vmem:[%s9366_s30 + $0x230] sm:$0xff]  ;;  %v5694_v56 = vld [vmem:[%s9366_s30 + $0x238] sm:$0xff]  ;;  %v5711_v22 = vld [vmem:[%s9366_s30 + $0x2c0] sm:$0xff] }
 0x5b4   : > { %v5601_v1 = vcombine.low %v5578_v12, %v5582_v6  ;;  %v5608_v20 = vrot.slane %v5600_v10, %v8318_v24  ;;  %v7329_v49 = vpack.c.bf16 %v5740_v41, %v5739_v40  ;;  %v5712_v37 = vld [vmem:[%s9366_s30 + $0x2c8] sm:$0xff]  ;;  %v5726_v2 = vld [vmem:[%s9366_s30 + $0x338] sm:$0xff]  ;;  %v5743_v9 = vld [vmem:[%s9366_s30 + $0x3c0] sm:$0xff] }
 0x5b5   : > { %7278 = vmatprep.subr.bf16.mxu1 %v7277_v13  ;;  %v5621_v4 = vmax.f32 %v5619_v61, 0.0  ;;  %v5695_v61 = vld [vmem:[%s9366_s30 + $0x240] sm:$0xff]  ;;  %v5696_v10 = vld [vmem:[%s9366_s30 + $0x248] sm:$0xff]  ;;  %v5729_v27 = vld [vmem:[%s9366_s30 + $0x350] sm:$0xff] }
 0x5b6   : > { %7248 = vmatpush3.bf16.msra.mxu0 %v7247_v25  ;;  %7280 = vmatpush3.bf16.msra.mxu1 %v7279_v30  ;;  %v5615_v21 = vrot.slane %v5601_v1, %v8318_v24  ;;  %v7291_v25 = vpack.c.bf16 %v5688_v7, %v5687_v5  ;;  %v5738_v30 = vld [vmem:[%s9366_s30 + $0x398] sm:$0xff]  ;;  %v7335_v5 = vpack.c.bf16 %v5726_v2, %v5725_v0  ;;  %v5713_v7 = vld [vmem:[%s9366_s30 + $0x2d0] sm:$0xff]  ;;  %v5748_v34 = vld [vmem:[%s9366_s30 + $0x3e8] sm:$0xff] }
 0x5b7   : > { %7250 = vmatprep.subr.bf16.mxu0 %v7249_v43  ;;  %7282 = vmatprep.subr.bf16.mxu1 %v7281_v33  ;;  %v5760_v13 = vrot.slane %v5621_v4, %v8318_v24  ;;  %v5753_v14 = vcombine.high %v5621_v4, %v5621_v4  ;;  %v7293_v43 = vpack.c.bf16 %v5706_v18, %v5705_v17  ;;  %v5727_v17 = vld [vmem:[%s9366_s30 + $0x340] sm:$0xff]  ;;  %v5730_v29 = vld [vmem:[%s9366_s30 + $0x358] sm:$0xff]  ;;  %v5700_v38 = vld [vmem:[%s9366_s30 + $0x268] sm:$0xff] }
 0x5b8   : > { %v7323_v33 = vpack.c.bf16 %v5720_v60, %v5719_v19  ;;  %v7325_v36 = vpack.c.bf16 %v5738_v30, %v5737_v57  ;;  %v5616_v15 = vcombine.low %v5608_v20, %v5615_v21  ;;  %v7307_v19 = vpack.c.bf16 %v5696_v10, %v5695_v61  ;;  %v5745_v60 = vld [vmem:[%s9366_s30 + $0x3d0] sm:$0xff]  ;;  %v5746_v20 = vld [vmem:[%s9366_s30 + $0x3d8] sm:$0xff]  ;;  %v5715_v57 = vld [vmem:[%s9366_s30 + $0x2e0] sm:$0xff] }
 0x5b9   : > { %v5768_v50 = vcombine.high %v5760_v13, %v5760_v13  ;;  %v5767_v23 = vrot.slane %v5753_v14, %v8318_v24  ;;  %v5548_v48 = vld [vmem:[#allocation3 + $0x8] sm:$0xff]  ;;  %v7343_v59 = vpack.c.bf16 %v5730_v29, %v5729_v27  ;;  %v5731_v41 = vld [vmem:[%s9366_s30 + $0x360] sm:$0xff]  ;;  %v5701_v47 = vld [vmem:[%s9366_s30 + $0x270] sm:$0xff] }
 0x5ba   : > { %7252 = vmatpush3.bf16.msra.mxu0 %v7251_v45  ;;  %7284 = vmatpush3.bf16.msra.mxu1 %v7283_v31  ;;  %v5692_v45 = vld [vmem:[%s9366_s30 + $0x228] sm:$0xff]  ;;  %v5723_v31 = vld [vmem:[%s9366_s30 + $0x320] sm:$0xff]  ;;  %v5620_v51 = vadd.f32 %v5616_v15, %v5548_v48  ;;  %v5717_v15 = vld [vmem:[%s9366_s30 + $0x2f0] sm:$0xff] }
 0x5bb   : > { %7254 = vmatprep.subr.bf16.mxu0 %v7253_v11  ;;  %7286 = vmatprep.subr.bf16.mxu1 %v7285_v53  ;;  %v5769_v32 = vcombine.high %v5767_v23, %v5767_v23  ;;  %v5724_v11 = vld [vmem:[%s9366_s30 + $0x328] sm:$0xff]  ;;  %v7299_v52 = vpack.c.bf16 %v5692_v45, %v5691_v44  ;;  %v5741_v53 = vld [vmem:[%s9366_s30 + $0x3b0] sm:$0xff]  ;;  %v5702_v48 = vld [vmem:[%s9366_s30 + $0x278] sm:$0xff] }
 0x5bc   : > { %5859 = vmatprep.mubr.f32.mxu0 %v5768_v50  ;;  %v7331_v62 = vpack.c.bf16 %v5724_v11, %v5723_v31  ;;  %v7333_v63 = vpack.c.bf16 %v5742_v54, %v5741_v53  ;;  %v5697_v50 = vld [vmem:[%s9366_s30 + $0x250] sm:$0xff]  ;;  %v5716_v30 = vld [vmem:[%s9366_s30 + $0x2e8] sm:$0xff] }
 0x5bd   : > { %5929 = vmatprep.mubr.f32.mxu1 %v5769_v32  ;;  %v7313_v28 = vpack.c.bf16 %v5716_v30, %v5715_v57  ;;  %v5749_v45 = vld [vmem:[%s9366_s30 + $0x3f0] sm:$0xff] }
 0x5be   : > { %7256 = vmatpush3.bf16.msra.mxu0 %v7255_v58  ;;  %7288 = vmatpush3.bf16.msra.mxu1 %v7287_v35  ;;  %v5622_v58 = vmax.f32 %v5620_v51, 0.0  ;;  %v7303_v35 = vpack.c.bf16 %v5694_v56, %v5693_v16  ;;  %v5733_v11 = vld [vmem:[%s9366_s30 + $0x370] sm:$0xff]  ;;  %v5734_v51 = vld [vmem:[%s9366_s30 + $0x378] sm:$0xff] }
 0x5bf   : > { %7290 = vmatprep.subr.bf16.mxu0 %v7289_v26  ;;  %7322 = vmatprep.subr.bf16.mxu1 %v7321_v46  ;;  %v5744_v26 = vld [vmem:[%s9366_s30 + $0x3c8] sm:$0xff]  ;;  %v7305_v46 = vpack.c.bf16 %v5712_v37, %v5711_v22  ;;  %v7351_v53 = vpack.c.bf16 %v5734_v51, %v5733_v11 }
 0x5c0   : > { %v9210_v12 = vrot.slane %v5622_v58, %v8318_v24  ;;  %v5770_v6 = vcombine.high %v5622_v58, %v5622_v58  ;;  %v7337_v14 = vpack.c.bf16 %v5744_v26, %v5743_v9 }
 0x5c1   : > { %5860 = vmatmul.mubr.f32.vlgmr.msra.gmra.mrb[0].mxu0 %v5760_v13  ;;  %5930 = vmatmul.mubr.f32.vlgmr.msra.gmra.mrb[0].mxu1 %v5767_v23  ;;  %v5714_v13 = vld [vmem:[%s9366_s30 + $0x2d8] sm:$0xff] }
 0x5c2   : > { %7292 = vmatpush3.bf16.msra.mxu0 %v7291_v25  ;;  %7324 = vmatpush3.bf16.msra.mxu1 %v7323_v33  ;;  %v5785_v1 = vcombine.high %v9210_v12, %v9210_v12  ;;  %v9227_v4 = vrot.slane %v5770_v6, %v8318_v24  ;;  %v5728_v24 = vld [vmem:[%s9366_s30 + $0x348] sm:$0xff]  ;;  %v7309_v21 = vpack.c.bf16 %v5714_v13, %v5713_v7  ;;  %v5698_v23 = vld [vmem:[%s9366_s30 + $0x258] sm:$0xff]  ;;  %v5747_v33 = vld [vmem:[%s9366_s30 + $0x3e0] sm:$0xff] }
 0x5c3   : > { %7294 = vmatprep.subr.bf16.mxu0 %v7293_v43  ;;  %7326 = vmatprep.subr.bf16.mxu1 %v7325_v36  ;;  %v7339_v25 = vpack.c.bf16 %v5728_v24, %v5727_v17  ;;  %v7341_v43 = vpack.c.bf16 %v5746_v20, %v5745_v60  ;;  %v7311_v32 = vpack.c.bf16 %v5698_v23, %v5697_v50  ;;  %v5699_v36 = vld [vmem:[%s9366_s30 + $0x260] sm:$0xff] }
 0x5c4   : > { %5999 = vmatprep.mubr.f32.mxu0 %v5785_v1  ;;  %v5786_v18 = vcombine.high %v9227_v4, %v9227_v4  ;;  %v7345_v40 = vpack.c.bf16 %v5748_v34, %v5747_v33  ;;  %v7315_v44 = vpack.c.bf16 %v5700_v38, %v5699_v36 }
 0x5c6   : > { %7296 = vmatpush3.bf16.msra.mxu0 %v7295_v39  ;;  %7328 = vmatpush3.bf16.msra.mxu1 %v7327_v3  ;;  %v5718_v39 = vld [vmem:[%s9366_s30 + $0x2f8] sm:$0xff] }
 0x5c7   : > { %7298 = vmatprep.subr.bf16.mxu0 %v7297_v42  ;;  %7330 = vmatprep.subr.bf16.mxu1 %v7329_v49  ;;  %v5732_v42 = vld [vmem:[%s9366_s30 + $0x368] sm:$0xff]  ;;  %v5750_v3 = vld [vmem:[%s9366_s30 + $0x3f8] sm:$0xff]  ;;  %v7317_v8 = vpack.c.bf16 %v5718_v39, %v5717_v15 }
 0x5c8   : > { %6069 = vmatprep.mubr.f32.mxu1 %v5786_v18  ;;  %v7347_v49 = vpack.c.bf16 %v5732_v42, %v5731_v41  ;;  %v7349_v31 = vpack.c.bf16 %v5750_v3, %v5749_v45 }
 0x5ca   : > { %7300 = vmatpush3.bf16.msra.mxu0 %v7299_v52  ;;  %7332 = vmatpush3.bf16.msra.mxu1 %v7331_v62  ;;  %v7319_v52 = vpack.c.bf16 %v5702_v48, %v5701_v47 }
 0x5cb   : > { %7302 = vmatprep.subr.bf16.mxu0 %v7301_v55  ;;  %7334 = vmatprep.subr.bf16.mxu1 %v7333_v63 }
 0x5ce   : > { %7304 = vmatpush3.bf16.msra.mxu0 %v7303_v35  ;;  %7336 = vmatpush3.bf16.msra.mxu1 %v7335_v5 }
 0x5cf   : > { %7306 = vmatprep.subr.bf16.mxu0 %v7305_v46  ;;  %7338 = vmatprep.subr.bf16.mxu1 %v7337_v14 }
 0x5d2   : > { %7308 = vmatpush3.bf16.msra.mxu0 %v7307_v19  ;;  %7340 = vmatpush3.bf16.msra.mxu1 %v7339_v25 }
 0x5d3   : > { %7310 = vmatprep.subr.bf16.mxu0 %v7309_v21  ;;  %7342 = vmatprep.subr.bf16.mxu1 %v7341_v43 }
 0x5d6   : > { %7312 = vmatpush3.bf16.msra.mxu0 %v7311_v32  ;;  %7344 = vmatpush3.bf16.msra.mxu1 %v7343_v59 }
 0x5d7   : > { %7314 = vmatprep.subr.bf16.mxu0 %v7313_v28  ;;  %7346 = vmatprep.subr.bf16.mxu1 %v7345_v40 }
 0x5da   : > { %7316 = vmatpush3.bf16.msra.mxu0 %v7315_v44  ;;  %7348 = vmatpush3.bf16.msra.mxu1 %v7347_v49 }
 0x5db   : > { %7318 = vmatprep.subr.bf16.mxu0 %v7317_v8  ;;  %7350 = vmatprep.subr.bf16.mxu1 %v7349_v31 }
 0x5de   : > { %7320 = vmatpush3.bf16.msra.mxu0 %v7319_v52  ;;  %7352 = vmatpush3.bf16.msra.mxu1 %v7351_v53 }
 0x5e1   : > { %6000 = vmatmul.mubr.f32.vlgmr.msra.gmra.mrb[2].mxu0 %v9210_v12  ;;  %6070 = vmatmul.mubr.f32.vlgmr.msra.gmra.mrb[2].mxu1 %v9227_v4 }
 0x694   : > { %v6883_v54 = vpop.f32.mrb[0].mxu0  ;;  %v6918_v16 = vpop.f32.mrb[0].mxu1 }
 0x695   : > { %v6884_v55 = vpop.f32.mrb[1].mxu0  ;;  %v6919_v58 = vpop.f32.mrb[1].mxu1 }
 0x696   : > { %v6885_v56 = vadd.f32 %v6884_v55, %v6883_v54  ;;  %v6920_v62 = vadd.f32 %v6919_v58, %v6918_v16 }
 0x698   : > { %v5932_v22 = vadd.f32 %v6920_v62, %v6885_v56 }
 0x6b4   : > { %v6953_v37 = vpop.f32.mrb[2].mxu0  ;;  %v6988_v2 = vpop.f32.mrb[2].mxu1 }
 0x6b5   : > { %v6954_v63 = vpop.f32.mrb[3].mxu0  ;;  %v6989_v6 = vpop.f32.mrb[3].mxu1 }
 0x6b6   : > { %v6955_v0 = vadd.f32 %v6954_v63, %v6953_v37  ;;  %v6990_v9 = vadd.f32 %v6989_v6, %v6988_v2 }
 0x6b8   : > { %v6002_v35 = vadd.f32 %v6955_v0, %v5932_v22 }
 0x6ba   : > { %v6072_v26 = vadd.f32 %v6990_v9, %v6002_v35 }
 0x6bc   : > { %6076 = vst.msk [vmem:[%s9367_s16] sm:$0x3] %vm6075_vm3, %v6072_v26 }
 0x6bd PF: > { %s19_s29 = sadd.s32 1, %s7676_s29   ;;  %s9368_s24 = smov %s7660_s25 }
 0x6be   : > { %p16_p6 = scmp.ge.s32.totalorder %s19_s29, 4   ;;  %s9369_s25 = smov %s7664_s26 }
 0x6bf   : > { %s9370_s26 = smov %s7872_s11  ;;  %s9371_s27 = smov %s7672_s28 }
 0x6c0   : > { %s9372_s28 = smov %s9374_s22  ;;  %18 = sbr.rel (!%p16_p6) target bundleno = 9 (0x9), region = 112 }
 0x6c7   :  { %6096 = vsyncpa [#allocation5], 1 }
 0x6c8   :  { %6098 = vsyncpa [#allocation5 + $0x1], 1 }
 0x6c9   :  { %6099 = vsyncpa [#allocation7], 1 }

</bundles_post_ra>
